<compile_context>
chip_gen: v5e
topology: v5e:2x2
jax: 0.10.0
libtpu: 0.0.40
codegen_flags: <defaults>
</compile_context>

<pallas_src>
import jax
import jax.numpy as jnp
from jax import lax
from jax.experimental import pallas as pl
from jax.experimental.pallas import tpu as pltpu

# ----------------------------- small config ---------------------------------
HIDDEN = 32          # hidden_size
EXPAND = 2           # expand_factor
E = EXPAND * HIDDEN  # expanded_size = 64
NSTATE = 8           # state_size
DT_RANK = 4          # time_step_rank
KCONV = 4            # conv_kernel
NLAYERS = 2          # num_hidden_layers (small for the demo)
VOCAB = 256
MAXPOS = 64
EPS = 1e-5
NUM_OUTPUTS = 1

BATCH = 2
SEQ = 8


# ------------------------------ fused kernel --------------------------------
def _forward_kernel(x_ref, mask_ref,
                    in_w_ref, in_b_ref, conv_w_ref, conv_b_ref,
                    xdt_w_ref, xdt_b_ref, a_ref, d_ref,
                    out_w_ref, out_b_ref, fln_w_ref, fln_b_ref,
                    reg_w_ref, reg_b_ref,
                    hid_ref, pred_ref):
    bsz, seq, hid = x_ref.shape
    e = d_ref.shape[1]
    n = a_ref.shape[1]

    mask3 = mask_ref[...]                                    # [B, S, 1]
    # hoisted once: seq-position iota for the causal-conv masks
    seq_iota = lax.broadcasted_iota(jnp.int32, (bsz, seq, e), 1)

    h2d = x_ref[...].astype(jnp.float32).reshape(bsz * seq, hid)

    for li in range(NLAYERS):                                # static unroll
        residual = h2d

        # -------- input LayerNorm (affine folded into in_proj wrapper-side) --
        mu = jnp.mean(h2d, axis=-1, keepdims=True)
        var = jnp.mean(jnp.square(h2d - mu), axis=-1, keepdims=True)
        hn = (h2d - mu) * lax.rsqrt(var + EPS)

        # -------- in_proj (bf16 MXU operands, f32 accumulation) --------
        proj = jnp.dot(hn.astype(jnp.bfloat16), in_w_ref[li],
                       preferred_element_type=jnp.float32)
        proj = proj + in_b_ref[li][None, :]                  # [B*S, 2E]
        xpart = proj[:, :e].reshape(bsz, seq, e)             # [B, S, E]
        gate = proj[:, e:]                                   # [B*S, E]

        # -------- depthwise causal conv1d + SiLU via XLU roll + mask --------
        cw = conv_w_ref[li]                                  # [K, E]
        acc = xpart * cw[KCONV - 1, :][None, None, :]        # shift-0 tap
        for k in range(KCONV - 1):                           # static taps
            s = KCONV - 1 - k                                # shift > 0
            rolled = pltpu.roll(xpart, s, axis=1)            # x[t-s] (wrapped)
            rolled = jnp.where(seq_iota >= s, rolled, 0.0)   # zero wrapped rows
            acc = acc + rolled * cw[k, :][None, None, :]
        acc = acc + conv_b_ref[li][None, None, :]
        u = acc * jax.nn.sigmoid(acc)                        # SiLU (swish)
        u = u * mask3                                        # scan mask

        # -------- folded x_proj + dt_proj: (dt_pre | B | C) --------
        u2d = u.reshape(bsz * seq, e)
        dbc = jnp.dot(u2d.astype(jnp.bfloat16), xdt_w_ref[li],
                      preferred_element_type=jnp.float32)
        dbc = dbc + xdt_b_ref[li][None, :]                   # [B*S, E+2N]
        dt3 = dbc[:, :e].reshape(bsz, seq, e)
        bm3 = dbc[:, e:e + n].reshape(bsz, seq, n)
        cm3 = dbc[:, e + n:].reshape(bsz, seq, n)
        a_neg = a_ref[li]                                    # [N, E] (negative)
        dvec = d_ref[li]                                     # [E]

        # -------- hoisted scan precompute (large EUP/VPU passes) --------
        dt_all = jax.nn.softplus(dt3)                                    # [B,S,E]
        dtu = dt_all * u                                                 # [B,S,E]
        da_all = jnp.exp(dt_all[:, :, None, :] * a_neg[None, None, :, :])  # [B,S,N,E]
        dbu_all = dtu[:, :, None, :] * bm3[:, :, :, None]                # [B,S,N,E]
        c_b = jnp.broadcast_to(cm3[:, :, :, None], (bsz, seq, n, e))     # [B,S,N,E]
        d_skip = u * dvec[None, None, :]                                 # [B,S,E]

        # -------- serial recurrence: lane-dense state [B, N, E] --------
        h_s = jnp.zeros((bsz, n, e), jnp.float32)
        ys = []
        for t in range(seq):                                 # static unroll
            h_s = da_all[:, t] * h_s + dbu_all[:, t]
            ys.append(jnp.sum(h_s * c_b[:, t], axis=1))      # [B, E]
        y2d = (jnp.stack(ys, axis=1) + d_skip).reshape(bsz * seq, e)

        # -------- gate * y, out_proj, residual --------
        gated = jax.nn.sigmoid(gate) * y2d
        h2d = jnp.dot(gated.astype(jnp.bfloat16), out_w_ref[li],
                      preferred_element_type=jnp.float32)
        h2d = h2d + out_b_ref[li][None, :] + residual
        # TODO(synk): FractalLayer definition is not provided in the reference
        # source; treated as identity here.

    # -------- final LayerNorm --------
    mu = jnp.mean(h2d, axis=-1, keepdims=True)
    var = jnp.mean(jnp.square(h2d - mu), axis=-1, keepdims=True)
    hfin = (h2d - mu) * lax.rsqrt(var + EPS)
    hfin = hfin * fln_w_ref[...] + fln_b_ref[...]            # [B*S, H]
    hfin3 = hfin.reshape(bsz, seq, hid)
    hid_ref[...] = hfin3

    # -------- mean pool over seq + regressor (VPU lane reduce, no MXU) -------
    pooled = jnp.mean(hfin3, axis=1)                         # [B, H]
    pred_ref[...] = (jnp.sum(pooled * reg_w_ref[...], axis=-1, keepdims=True)
                     + reg_b_ref[...])


def fused_forward(x, mask, pk):
    """Single fused pallas_call for the whole model forward."""
    bsz, seq, hid = x.shape
    vmem = pl.BlockSpec(memory_space=pltpu.MemorySpace.VMEM)
    return pl.pallas_call(
        _forward_kernel,
        out_shape=(jax.ShapeDtypeStruct((bsz, seq, hid), jnp.float32),
                   jax.ShapeDtypeStruct((bsz, NUM_OUTPUTS), jnp.float32)),
        in_specs=[vmem] * 16,
        out_specs=(vmem, vmem),
    )(x, mask,
      pk["in_w"], pk["in_b"], pk["conv_w"], pk["conv_b"],
      pk["xdt_w"], pk["xdt_b"], pk["a_neg"], pk["d"],
      pk["out_w"], pk["out_b"], pk["fln_w"], pk["fln_b"],
      pk["reg_w"], pk["reg_b"])


# ----------------------------- parameters -----------------------------------
def _kaiming(key, shape):
    # kaiming_normal_(a=sqrt(5), fan_in, leaky_relu): std = sqrt(2/(1+5))/sqrt(fan_in)
    fan_in = shape[0]
    std = (1.0 / (3.0 * fan_in)) ** 0.5
    return std * jax.random.normal(key, shape, jnp.float32)


def init_params(key):
    keys = jax.random.split(key, 3 + NLAYERS)
    emb = 0.02 * jax.random.normal(keys[0], (VOCAB, HIDDEN), jnp.float32)
    emb = emb.at[0].set(0.0)                      # padding_idx = 0
    params = {
        "emb": emb,
        "pos_emb": 0.02 * jax.random.normal(keys[1], (MAXPOS, HIDDEN), jnp.float32),
        "final_ln_w": jnp.ones((1, HIDDEN), jnp.float32),
        "final_ln_b": jnp.zeros((1, HIDDEN), jnp.float32),
        "reg_w": _kaiming(keys[2], (HIDDEN, NUM_OUTPUTS)),
        "reg_b": jnp.zeros((1, NUM_OUTPUTS), jnp.float32),
        "layers": [],
    }
    for li in range(NLAYERS):
        lk = jax.random.split(keys[3 + li], 6)
        params["layers"].append(dict(
            ln_w=jnp.ones((1, HIDDEN), jnp.float32),
            ln_b=jnp.zeros((1, HIDDEN), jnp.float32),
            in_proj_w=_kaiming(lk[0], (HIDDEN, 2 * E)),
            in_proj_b=jnp.zeros((1, 2 * E), jnp.float32),
            conv_w=0.1 * jax.random.normal(lk[1], (KCONV, E), jnp.float32),
            conv_b=jnp.zeros((1, E), jnp.float32),
            x_proj_w=_kaiming(lk[2], (E, DT_RANK + 2 * NSTATE)),
            dt_proj_w=_kaiming(lk[3], (DT_RANK, E)),
            dt_proj_b=jnp.zeros((1, E), jnp.float32),
            A_log=jnp.log(jnp.broadcast_to(
                jnp.arange(1, NSTATE + 1, dtype=jnp.float32), (E, NSTATE))),
            D=jnp.ones((1, E), jnp.float32),
            out_proj_w=_kaiming(lk[4], (E, HIDDEN)),
            out_proj_b=jnp.zeros((1, HIDDEN), jnp.float32),
        ))
    return params


def pack_params(params):
    """Stack per-layer weights, fold LN-affine into in_proj and dt_proj into
    x_proj (all trace-time, exact in f32), then cast MXU weights to bf16."""
    ls = params["layers"]

    def cat(fn):
        return jnp.stack([fn(lp) for lp in ls], axis=0)

    # fold input LayerNorm affine into in_proj
    in_w_list, in_b_list = [], []
    for lp in ls:
        gw = lp["ln_w"].reshape(-1)                                   # [H]
        gb = lp["ln_b"].reshape(-1)                                   # [H]
        in_w_list.append(gw[:, None] * lp["in_proj_w"])               # [H, 2E]
        in_b_list.append(gb @ lp["in_proj_w"] + lp["in_proj_b"].reshape(-1))

    # fold dt_proj into x_proj: one [E, E+2N] matmul -> (dt_pre | B | C)
    xdt_w_list, xdt_b_list = [], []
    for lp in ls:
        w_dt_eff = lp["x_proj_w"][:, :DT_RANK] @ lp["dt_proj_w"]      # [E, E]
        xdt_w_list.append(jnp.concatenate(
            [w_dt_eff, lp["x_proj_w"][:, DT_RANK:]], axis=1))         # [E, E+2N]
        xdt_b_list.append(jnp.concatenate(
            [lp["dt_proj_b"].reshape(-1),
             jnp.zeros((2 * NSTATE,), jnp.float32)]))                 # [E+2N]

    return dict(
        emb=params["emb"],
        pos_emb=params["pos_emb"],
        in_w=jnp.stack(in_w_list, axis=0).astype(jnp.bfloat16),      # [L, H, 2E]
        in_b=jnp.stack(in_b_list, axis=0),                           # [L, 2E]
        conv_w=cat(lambda lp: lp["conv_w"]),                         # [L, K, E]
        conv_b=cat(lambda lp: lp["conv_b"].reshape(-1)),             # [L, E]
        xdt_w=jnp.stack(xdt_w_list, axis=0).astype(jnp.bfloat16),    # [L, E, E+2N]
        xdt_b=jnp.stack(xdt_b_list, axis=0),                         # [L, E+2N]
        a_neg=cat(lambda lp: -jnp.exp(lp["A_log"]).T),               # [L, N, E]
        d=cat(lambda lp: lp["D"].reshape(-1)),                       # [L, E]
        out_w=cat(lambda lp: lp["out_proj_w"]).astype(jnp.bfloat16), # [L, E, H]
        out_b=cat(lambda lp: lp["out_proj_b"].reshape(-1)),          # [L, H]
        fln_w=params["final_ln_w"],                                  # [1, H]
        fln_b=params["final_ln_b"],                                  # [1, H]
        reg_w=params["reg_w"].T,                                     # [1, H]
        reg_b=params["reg_b"],                                       # [1, 1]
    )


# ------------------------------ forward pass ---------------------------------
def fractal_mamba_regression(packed, input_ids, attention_mask=None,
                             position_ids=None):
    bsz, seq = input_ids.shape
    if position_ids is None:
        position_ids = jnp.broadcast_to(jnp.arange(seq), (bsz, seq))
    if attention_mask is None:
        attention_mask = jnp.ones((bsz, seq), jnp.float32)

    # embedding + positional gather (cheap XLA gathers), dropout = identity
    x = packed["emb"][input_ids] + packed["pos_emb"][position_ids]   # [B, S, H]
    mask3 = attention_mask.astype(jnp.float32).reshape(bsz, seq, 1)

    hidden, predictions = fused_forward(x, mask3, packed)
    return {"predictions": predictions, "hidden_states": hidden}


# --------------------------------- main --------------------------------------
if __name__ == "__main__":
    root = jax.random.PRNGKey(0)
    pkey, dkey = jax.random.split(root)
    raw_params = init_params(pkey)
    packed = pack_params(raw_params)
    input_ids = jax.random.randint(dkey, (BATCH, SEQ), 1, VOCAB, dtype=jnp.int32)

    fwd = jax.jit(fractal_mamba_regression)
    out = fwd(packed, input_ids)
    jax.block_until_ready(out["predictions"])

    assert out["predictions"].shape == (BATCH, NUM_OUTPUTS)
    assert out["hidden_states"].shape == (BATCH, SEQ, HIDDEN)
    assert bool(jnp.all(jnp.isfinite(out["predictions"])))
    assert bool(jnp.all(jnp.isfinite(out["hidden_states"])))
    print("KERNEL_OK")
</pallas_src>

<mosaic_0001>
module attributes {stable_mosaic.version = 11 : i64} {
  func.func @_forward_kernel(%arg0: memref<2x8x32xf32, #tpu.memory_space<vmem>>, %arg1: memref<2x8x1xf32, #tpu.memory_space<vmem>>, %arg2: memref<2x32x128xbf16, #tpu.memory_space<vmem>>, %arg3: memref<2x128xf32, #tpu.memory_space<vmem>>, %arg4: memref<2x4x64xf32, #tpu.memory_space<vmem>>, %arg5: memref<2x64xf32, #tpu.memory_space<vmem>>, %arg6: memref<2x64x80xbf16, #tpu.memory_space<vmem>>, %arg7: memref<2x80xf32, #tpu.memory_space<vmem>>, %arg8: memref<2x8x64xf32, #tpu.memory_space<vmem>>, %arg9: memref<2x64xf32, #tpu.memory_space<vmem>>, %arg10: memref<2x64x32xbf16, #tpu.memory_space<vmem>>, %arg11: memref<2x32xf32, #tpu.memory_space<vmem>>, %arg12: memref<1x32xf32, #tpu.memory_space<vmem>>, %arg13: memref<1x32xf32, #tpu.memory_space<vmem>>, %arg14: memref<1x32xf32, #tpu.memory_space<vmem>>, %arg15: memref<1x1xf32, #tpu.memory_space<vmem>>, %arg16: memref<2x8x32xf32, #tpu.memory_space<vmem>>, %arg17: memref<2x1xf32, #tpu.memory_space<vmem>>) attributes {dimension_semantics = [], scalar_prefetch = 0 : i64, scratch_operands = 0 : i64, tpu.core_type = #tpu.core_type<tc>} {
    %c0 = arith.constant 0 : index
    %c0_0 = arith.constant 0 : index
    %c0_1 = arith.constant 0 : index
    %0 = vector.load %arg1[%c0, %c0_0, %c0_1] : memref<2x8x1xf32, #tpu.memory_space<vmem>>, vector<2x8x1xf32>
    %1 = tpu.iota {dimensions = array<i32: 1>} : vector<2x8x64xi32>
    %c0_2 = arith.constant 0 : index
    %c0_3 = arith.constant 0 : index
    %c0_4 = arith.constant 0 : index
    %2 = vector.load %arg0[%c0_2, %c0_3, %c0_4] : memref<2x8x32xf32, #tpu.memory_space<vmem>>, vector<2x8x32xf32>
    %3 = vector.shape_cast %2 : vector<2x8x32xf32> to vector<16x32xf32>
    %cst = arith.constant dense<0.000000e+00> : vector<16xf32>
    %4 = vector.multi_reduction <add>, %3, %cst [1] : vector<16x32xf32> to vector<16xf32>
    %5 = vector.shape_cast %4 : vector<16xf32> to vector<16x1xf32>
    %cst_5 = arith.constant 3.200000e+01 : f32
    %6 = vector.broadcast %cst_5 : f32 to vector<16x1xf32>
    %7 = arith.divf %5, %6 : vector<16x1xf32>
    %8 = vector.broadcast %7 : vector<16x1xf32> to vector<16x32xf32>
    %9 = arith.subf %3, %8 : vector<16x32xf32>
    %10 = arith.mulf %9, %9 : vector<16x32xf32>
    %cst_6 = arith.constant dense<0.000000e+00> : vector<16xf32>
    %11 = vector.multi_reduction <add>, %10, %cst_6 [1] : vector<16x32xf32> to vector<16xf32>
    %12 = vector.shape_cast %11 : vector<16xf32> to vector<16x1xf32>
    %cst_7 = arith.constant 3.200000e+01 : f32
    %13 = vector.broadcast %cst_7 : f32 to vector<16x1xf32>
    %14 = arith.divf %12, %13 : vector<16x1xf32>
    %15 = vector.broadcast %7 : vector<16x1xf32> to vector<16x32xf32>
    %16 = arith.subf %3, %15 : vector<16x32xf32>
    %cst_8 = arith.constant 9.99999974E-6 : f32
    %17 = vector.broadcast %cst_8 : f32 to vector<16x1xf32>
    %18 = arith.addf %14, %17 : vector<16x1xf32>
    %19 = math.rsqrt %18 : vector<16x1xf32>
    %20 = vector.broadcast %19 : vector<16x1xf32> to vector<16x32xf32>
    %21 = arith.mulf %16, %20 : vector<16x32xf32>
    %22 = arith.truncf %21 : vector<16x32xf32> to vector<16x32xbf16>
    %c0_9 = arith.constant 0 : index
    %c0_10 = arith.constant 0 : index
    %c0_11 = arith.constant 0 : index
    %23 = vector.load %arg2[%c0_9, %c0_10, %c0_11] : memref<2x32x128xbf16, #tpu.memory_space<vmem>>, vector<1x32x128xbf16>
    %24 = vector.shape_cast %23 : vector<1x32x128xbf16> to vector<32x128xbf16>
    %cst_12 = arith.constant dense<0.000000e+00> : vector<16x128xf32>
    %25 = tpu.matmul %22, %24, %cst_12 {dimension_numbers = #tpu.dot_dimension_numbers<[1], [0], [0], [1], [0, 0, 1, 1], [], []>} : vector<16x32xbf16>, vector<32x128xbf16>, vector<16x128xf32> -> vector<16x128xf32>
    %c0_13 = arith.constant 0 : index
    %c0_14 = arith.constant 0 : index
    %26 = vector.load %arg3[%c0_13, %c0_14] : memref<2x128xf32, #tpu.memory_space<vmem>>, vector<1x128xf32>
    %27 = vector.shape_cast %26 : vector<1x128xf32> to vector<128xf32>
    %28 = vector.shape_cast %27 : vector<128xf32> to vector<1x128xf32>
    %29 = vector.broadcast %28 : vector<1x128xf32> to vector<16x128xf32>
    %30 = arith.addf %25, %29 : vector<16x128xf32>
    %31 = vector.extract_strided_slice %30 {offsets = [0, 0], sizes = [16, 64], strides = [1, 1]} : vector<16x128xf32> to vector<16x64xf32>
    %32 = vector.shape_cast %31 : vector<16x64xf32> to vector<2x8x64xf32>
    %33 = vector.extract_strided_slice %30 {offsets = [0, 64], sizes = [16, 64], strides = [1, 1]} : vector<16x128xf32> to vector<16x64xf32>
    %c0_15 = arith.constant 0 : index
    %c0_16 = arith.constant 0 : index
    %c0_17 = arith.constant 0 : index
    %34 = vector.load %arg4[%c0_15, %c0_16, %c0_17] : memref<2x4x64xf32, #tpu.memory_space<vmem>>, vector<1x4x64xf32>
    %35 = vector.shape_cast %34 : vector<1x4x64xf32> to vector<4x64xf32>
    %36 = vector.extract_strided_slice %35 {offsets = [3, 0], sizes = [1, 64], strides = [1, 1]} : vector<4x64xf32> to vector<1x64xf32>
    %37 = vector.shape_cast %36 : vector<1x64xf32> to vector<64xf32>
    %38 = vector.shape_cast %37 : vector<64xf32> to vector<1x1x64xf32>
    %39 = vector.broadcast %38 : vector<1x1x64xf32> to vector<2x8x64xf32>
    %40 = arith.mulf %32, %39 : vector<2x8x64xf32>
    %c3_i32 = arith.constant 3 : i32
    %41 = tpu.dynamic_rotate %32 by %c3_i32 dim 1 : vector<2x8x64xf32>, i32 -> vector<2x8x64xf32>
    %c3_i32_18 = arith.constant 3 : i32
    %42 = vector.broadcast %c3_i32_18 : i32 to vector<2x8x64xi32>
    %43 = arith.cmpi sge, %1, %42 : vector<2x8x64xi32>
    %cst_19 = arith.constant 0.000000e+00 : f32
    %44 = vector.broadcast %cst_19 : f32 to vector<2x8x64xf32>
    %45 = arith.select %43, %41, %44 : vector<2x8x64xi1>, vector<2x8x64xf32>
    %46 = vector.extract_strided_slice %35 {offsets = [0, 0], sizes = [1, 64], strides = [1, 1]} : vector<4x64xf32> to vector<1x64xf32>
    %47 = vector.shape_cast %46 : vector<1x64xf32> to vector<64xf32>
    %48 = vector.shape_cast %47 : vector<64xf32> to vector<1x1x64xf32>
    %49 = vector.broadcast %48 : vector<1x1x64xf32> to vector<2x8x64xf32>
    %50 = arith.mulf %45, %49 : vector<2x8x64xf32>
    %51 = arith.addf %40, %50 : vector<2x8x64xf32>
    %c2_i32 = arith.constant 2 : i32
    %52 = tpu.dynamic_rotate %32 by %c2_i32 dim 1 : vector<2x8x64xf32>, i32 -> vector<2x8x64xf32>
    %c2_i32_20 = arith.constant 2 : i32
    %53 = vector.broadcast %c2_i32_20 : i32 to vector<2x8x64xi32>
    %54 = arith.cmpi sge, %1, %53 : vector<2x8x64xi32>
    %cst_21 = arith.constant 0.000000e+00 : f32
    %55 = vector.broadcast %cst_21 : f32 to vector<2x8x64xf32>
    %56 = arith.select %54, %52, %55 : vector<2x8x64xi1>, vector<2x8x64xf32>
    %57 = vector.extract_strided_slice %35 {offsets = [1, 0], sizes = [1, 64], strides = [1, 1]} : vector<4x64xf32> to vector<1x64xf32>
    %58 = vector.shape_cast %57 : vector<1x64xf32> to vector<64xf32>
    %59 = vector.shape_cast %58 : vector<64xf32> to vector<1x1x64xf32>
    %60 = vector.broadcast %59 : vector<1x1x64xf32> to vector<2x8x64xf32>
    %61 = arith.mulf %56, %60 : vector<2x8x64xf32>
    %62 = arith.addf %51, %61 : vector<2x8x64xf32>
    %c1_i32 = arith.constant 1 : i32
    %63 = tpu.dynamic_rotate %32 by %c1_i32 dim 1 : vector<2x8x64xf32>, i32 -> vector<2x8x64xf32>
    %c1_i32_22 = arith.constant 1 : i32
    %64 = vector.broadcast %c1_i32_22 : i32 to vector<2x8x64xi32>
    %65 = arith.cmpi sge, %1, %64 : vector<2x8x64xi32>
    %cst_23 = arith.constant 0.000000e+00 : f32
    %66 = vector.broadcast %cst_23 : f32 to vector<2x8x64xf32>
    %67 = arith.select %65, %63, %66 : vector<2x8x64xi1>, vector<2x8x64xf32>
    %68 = vector.extract_strided_slice %35 {offsets = [2, 0], sizes = [1, 64], strides = [1, 1]} : vector<4x64xf32> to vector<1x64xf32>
    %69 = vector.shape_cast %68 : vector<1x64xf32> to vector<64xf32>
    %70 = vector.shape_cast %69 : vector<64xf32> to vector<1x1x64xf32>
    %71 = vector.broadcast %70 : vector<1x1x64xf32> to vector<2x8x64xf32>
    %72 = arith.mulf %67, %71 : vector<2x8x64xf32>
    %73 = arith.addf %62, %72 : vector<2x8x64xf32>
    %c0_24 = arith.constant 0 : index
    %c0_25 = arith.constant 0 : index
    %74 = vector.load %arg5[%c0_24, %c0_25] : memref<2x64xf32, #tpu.memory_space<vmem>>, vector<1x64xf32>
    %75 = vector.shape_cast %74 : vector<1x64xf32> to vector<64xf32>
    %76 = vector.shape_cast %75 : vector<64xf32> to vector<1x1x64xf32>
    %77 = vector.broadcast %76 : vector<1x1x64xf32> to vector<2x8x64xf32>
    %78 = arith.addf %73, %77 : vector<2x8x64xf32>
    %79 = arith.negf %78 : vector<2x8x64xf32>
    %80 = math.exp %79 : vector<2x8x64xf32>
    %cst_26 = arith.constant 1.000000e+00 : f32
    %81 = vector.broadcast %cst_26 : f32 to vector<2x8x64xf32>
    %82 = arith.addf %81, %80 : vector<2x8x64xf32>
    %83 = arith.divf %81, %82 : vector<2x8x64xf32>
    %84 = arith.mulf %78, %83 : vector<2x8x64xf32>
    %85 = vector.broadcast %0 : vector<2x8x1xf32> to vector<2x8x64xf32>
    %86 = arith.mulf %84, %85 : vector<2x8x64xf32>
    %87 = vector.shape_cast %86 : vector<2x8x64xf32> to vector<16x64xf32>
    %88 = arith.truncf %87 : vector<16x64xf32> to vector<16x64xbf16>
    %c0_27 = arith.constant 0 : index
    %c0_28 = arith.constant 0 : index
    %c0_29 = arith.constant 0 : index
    %89 = vector.load %arg6[%c0_27, %c0_28, %c0_29] : memref<2x64x80xbf16, #tpu.memory_space<vmem>>, vector<1x64x80xbf16>
    %90 = vector.shape_cast %89 : vector<1x64x80xbf16> to vector<64x80xbf16>
    %cst_30 = arith.constant dense<0.000000e+00> : vector<16x80xf32>
    %91 = tpu.matmul %88, %90, %cst_30 {dimension_numbers = #tpu.dot_dimension_numbers<[1], [0], [0], [1], [0, 0, 1, 1], [], []>} : vector<16x64xbf16>, vector<64x80xbf16>, vector<16x80xf32> -> vector<16x80xf32>
    %c0_31 = arith.constant 0 : index
    %c0_32 = arith.constant 0 : index
    %92 = vector.load %arg7[%c0_31, %c0_32] : memref<2x80xf32, #tpu.memory_space<vmem>>, vector<1x80xf32>
    %93 = vector.shape_cast %92 : vector<1x80xf32> to vector<80xf32>
    %94 = vector.shape_cast %93 : vector<80xf32> to vector<1x80xf32>
    %95 = vector.broadcast %94 : vector<1x80xf32> to vector<16x80xf32>
    %96 = arith.addf %91, %95 : vector<16x80xf32>
    %97 = vector.extract_strided_slice %96 {offsets = [0, 0], sizes = [16, 64], strides = [1, 1]} : vector<16x80xf32> to vector<16x64xf32>
    %98 = vector.shape_cast %97 : vector<16x64xf32> to vector<2x8x64xf32>
    %99 = vector.extract_strided_slice %96 {offsets = [0, 64], sizes = [16, 8], strides = [1, 1]} : vector<16x80xf32> to vector<16x8xf32>
    %100 = vector.shape_cast %99 : vector<16x8xf32> to vector<2x8x8xf32>
    %101 = vector.extract_strided_slice %96 {offsets = [0, 72], sizes = [16, 8], strides = [1, 1]} : vector<16x80xf32> to vector<16x8xf32>
    %102 = vector.shape_cast %101 : vector<16x8xf32> to vector<2x8x8xf32>
    %c0_33 = arith.constant 0 : index
    %c0_34 = arith.constant 0 : index
    %c0_35 = arith.constant 0 : index
    %103 = vector.load %arg8[%c0_33, %c0_34, %c0_35] : memref<2x8x64xf32, #tpu.memory_space<vmem>>, vector<1x8x64xf32>
    %104 = vector.shape_cast %103 : vector<1x8x64xf32> to vector<8x64xf32>
    %c0_36 = arith.constant 0 : index
    %c0_37 = arith.constant 0 : index
    %105 = vector.load %arg9[%c0_36, %c0_37] : memref<2x64xf32, #tpu.memory_space<vmem>>, vector<1x64xf32>
    %106 = vector.shape_cast %105 : vector<1x64xf32> to vector<64xf32>
    %cst_38 = arith.constant 0.000000e+00 : f32
    %107 = vector.broadcast %cst_38 : f32 to vector<2x8x64xf32>
    %108 = arith.maximumf %98, %107 : vector<2x8x64xf32>
    %109 = vector.broadcast %cst_38 : f32 to vector<2x8x64xf32>
    %110 = arith.subf %98, %109 : vector<2x8x64xf32>
    %111 = arith.cmpf one, %110, %110 : vector<2x8x64xf32>
    %112 = vector.broadcast %cst_38 : f32 to vector<2x8x64xf32>
    %113 = arith.addf %98, %112 : vector<2x8x64xf32>
    %114 = math.absf %110 : vector<2x8x64xf32>
    %cst_39 = arith.constant 0.000000e+00 : f32
    %115 = vector.broadcast %cst_39 : f32 to vector<2x8x64xf32>
    %116 = arith.subf %115, %114 : vector<2x8x64xf32>
    %117 = math.exp %116 : vector<2x8x64xf32>
    %118 = math.log1p %117 : vector<2x8x64xf32>
    %119 = arith.addf %108, %118 : vector<2x8x64xf32>
    %120 = arith.select %111, %113, %119 : vector<2x8x64xi1>, vector<2x8x64xf32>
    %121 = arith.mulf %120, %86 : vector<2x8x64xf32>
    %122 = vector.shape_cast %120 : vector<2x8x64xf32> to vector<2x8x1x64xf32>
    %123 = vector.shape_cast %104 : vector<8x64xf32> to vector<1x1x8x64xf32>
    %124 = vector.broadcast %122 : vector<2x8x1x64xf32> to vector<2x8x8x64xf32>
    %125 = vector.broadcast %123 : vector<1x1x8x64xf32> to vector<2x8x8x64xf32>
    %126 = arith.mulf %124, %125 : vector<2x8x8x64xf32>
    %127 = math.exp %126 : vector<2x8x8x64xf32>
    %128 = vector.shape_cast %121 : vector<2x8x64xf32> to vector<2x8x1x64xf32>
    %129 = vector.shape_cast %100 : vector<2x8x8xf32> to vector<2x8x8x1xf32>
    %130 = vector.broadcast %128 : vector<2x8x1x64xf32> to vector<2x8x8x64xf32>
    %131 = vector.broadcast %129 : vector<2x8x8x1xf32> to vector<2x8x8x64xf32>
    %132 = arith.mulf %130, %131 : vector<2x8x8x64xf32>
    %133 = vector.shape_cast %102 : vector<2x8x8xf32> to vector<2x8x8x1xf32>
    %134 = vector.shape_cast %133 : vector<2x8x8x1xf32> to vector<2x8x8x1xf32>
    %135 = vector.broadcast %134 : vector<2x8x8x1xf32> to vector<2x8x8x64xf32>
    %136 = vector.shape_cast %106 : vector<64xf32> to vector<1x1x64xf32>
    %137 = vector.broadcast %136 : vector<1x1x64xf32> to vector<2x8x64xf32>
    %138 = arith.mulf %86, %137 : vector<2x8x64xf32>
    %cst_40 = arith.constant 0.000000e+00 : f32
    %139 = vector.broadcast %cst_40 : f32 to vector<2x8x64xf32>
    %140 = vector.extract_strided_slice %127 {offsets = [0, 0, 0, 0], sizes = [2, 1, 8, 64], strides = [1, 1, 1, 1]} : vector<2x8x8x64xf32> to vector<2x1x8x64xf32>
    %141 = vector.shape_cast %140 : vector<2x1x8x64xf32> to vector<2x8x64xf32>
    %142 = arith.mulf %141, %139 : vector<2x8x64xf32>
    %143 = vector.extract_strided_slice %132 {offsets = [0, 0, 0, 0], sizes = [2, 1, 8, 64], strides = [1, 1, 1, 1]} : vector<2x8x8x64xf32> to vector<2x1x8x64xf32>
    %144 = vector.shape_cast %143 : vector<2x1x8x64xf32> to vector<2x8x64xf32>
    %145 = arith.addf %142, %144 : vector<2x8x64xf32>
    %146 = vector.extract_strided_slice %135 {offsets = [0, 0, 0, 0], sizes = [2, 1, 8, 64], strides = [1, 1, 1, 1]} : vector<2x8x8x64xf32> to vector<2x1x8x64xf32>
    %147 = vector.shape_cast %146 : vector<2x1x8x64xf32> to vector<2x8x64xf32>
    %148 = arith.mulf %145, %147 : vector<2x8x64xf32>
    %cst_41 = arith.constant dense<0.000000e+00> : vector<2x64xf32>
    %149 = vector.multi_reduction <add>, %148, %cst_41 [1] : vector<2x8x64xf32> to vector<2x64xf32>
    %150 = vector.extract_strided_slice %127 {offsets = [0, 1, 0, 0], sizes = [2, 1, 8, 64], strides = [1, 1, 1, 1]} : vector<2x8x8x64xf32> to vector<2x1x8x64xf32>
    %151 = vector.shape_cast %150 : vector<2x1x8x64xf32> to vector<2x8x64xf32>
    %152 = arith.mulf %151, %145 : vector<2x8x64xf32>
    %153 = vector.extract_strided_slice %132 {offsets = [0, 1, 0, 0], sizes = [2, 1, 8, 64], strides = [1, 1, 1, 1]} : vector<2x8x8x64xf32> to vector<2x1x8x64xf32>
    %154 = vector.shape_cast %153 : vector<2x1x8x64xf32> to vector<2x8x64xf32>
    %155 = arith.addf %152, %154 : vector<2x8x64xf32>
    %156 = vector.extract_strided_slice %135 {offsets = [0, 1, 0, 0], sizes = [2, 1, 8, 64], strides = [1, 1, 1, 1]} : vector<2x8x8x64xf32> to vector<2x1x8x64xf32>
    %157 = vector.shape_cast %156 : vector<2x1x8x64xf32> to vector<2x8x64xf32>
    %158 = arith.mulf %155, %157 : vector<2x8x64xf32>
    %cst_42 = arith.constant dense<0.000000e+00> : vector<2x64xf32>
    %159 = vector.multi_reduction <add>, %158, %cst_42 [1] : vector<2x8x64xf32> to vector<2x64xf32>
    %160 = vector.extract_strided_slice %127 {offsets = [0, 2, 0, 0], sizes = [2, 1, 8, 64], strides = [1, 1, 1, 1]} : vector<2x8x8x64xf32> to vector<2x1x8x64xf32>
    %161 = vector.shape_cast %160 : vector<2x1x8x64xf32> to vector<2x8x64xf32>
    %162 = arith.mulf %161, %155 : vector<2x8x64xf32>
    %163 = vector.extract_strided_slice %132 {offsets = [0, 2, 0, 0], sizes = [2, 1, 8, 64], strides = [1, 1, 1, 1]} : vector<2x8x8x64xf32> to vector<2x1x8x64xf32>
    %164 = vector.shape_cast %163 : vector<2x1x8x64xf32> to vector<2x8x64xf32>
    %165 = arith.addf %162, %164 : vector<2x8x64xf32>
    %166 = vector.extract_strided_slice %135 {offsets = [0, 2, 0, 0], sizes = [2, 1, 8, 64], strides = [1, 1, 1, 1]} : vector<2x8x8x64xf32> to vector<2x1x8x64xf32>
    %167 = vector.shape_cast %166 : vector<2x1x8x64xf32> to vector<2x8x64xf32>
    %168 = arith.mulf %165, %167 : vector<2x8x64xf32>
    %cst_43 = arith.constant dense<0.000000e+00> : vector<2x64xf32>
    %169 = vector.multi_reduction <add>, %168, %cst_43 [1] : vector<2x8x64xf32> to vector<2x64xf32>
    %170 = vector.extract_strided_slice %127 {offsets = [0, 3, 0, 0], sizes = [2, 1, 8, 64], strides = [1, 1, 1, 1]} : vector<2x8x8x64xf32> to vector<2x1x8x64xf32>
    %171 = vector.shape_cast %170 : vector<2x1x8x64xf32> to vector<2x8x64xf32>
    %172 = arith.mulf %171, %165 : vector<2x8x64xf32>
    %173 = vector.extract_strided_slice %132 {offsets = [0, 3, 0, 0], sizes = [2, 1, 8, 64], strides = [1, 1, 1, 1]} : vector<2x8x8x64xf32> to vector<2x1x8x64xf32>
    %174 = vector.shape_cast %173 : vector<2x1x8x64xf32> to vector<2x8x64xf32>
    %175 = arith.addf %172, %174 : vector<2x8x64xf32>
    %176 = vector.extract_strided_slice %135 {offsets = [0, 3, 0, 0], sizes = [2, 1, 8, 64], strides = [1, 1, 1, 1]} : vector<2x8x8x64xf32> to vector<2x1x8x64xf32>
    %177 = vector.shape_cast %176 : vector<2x1x8x64xf32> to vector<2x8x64xf32>
    %178 = arith.mulf %175, %177 : vector<2x8x64xf32>
    %cst_44 = arith.constant dense<0.000000e+00> : vector<2x64xf32>
    %179 = vector.multi_reduction <add>, %178, %cst_44 [1] : vector<2x8x64xf32> to vector<2x64xf32>
    %180 = vector.extract_strided_slice %127 {offsets = [0, 4, 0, 0], sizes = [2, 1, 8, 64], strides = [1, 1, 1, 1]} : vector<2x8x8x64xf32> to vector<2x1x8x64xf32>
    %181 = vector.shape_cast %180 : vector<2x1x8x64xf32> to vector<2x8x64xf32>
    %182 = arith.mulf %181, %175 : vector<2x8x64xf32>
    %183 = vector.extract_strided_slice %132 {offsets = [0, 4, 0, 0], sizes = [2, 1, 8, 64], strides = [1, 1, 1, 1]} : vector<2x8x8x64xf32> to vector<2x1x8x64xf32>
    %184 = vector.shape_cast %183 : vector<2x1x8x64xf32> to vector<2x8x64xf32>
    %185 = arith.addf %182, %184 : vector<2x8x64xf32>
    %186 = vector.extract_strided_slice %135 {offsets = [0, 4, 0, 0], sizes = [2, 1, 8, 64], strides = [1, 1, 1, 1]} : vector<2x8x8x64xf32> to vector<2x1x8x64xf32>
    %187 = vector.shape_cast %186 : vector<2x1x8x64xf32> to vector<2x8x64xf32>
    %188 = arith.mulf %185, %187 : vector<2x8x64xf32>
    %cst_45 = arith.constant dense<0.000000e+00> : vector<2x64xf32>
    %189 = vector.multi_reduction <add>, %188, %cst_45 [1] : vector<2x8x64xf32> to vector<2x64xf32>
    %190 = vector.extract_strided_slice %127 {offsets = [0, 5, 0, 0], sizes = [2, 1, 8, 64], strides = [1, 1, 1, 1]} : vector<2x8x8x64xf32> to vector<2x1x8x64xf32>
    %191 = vector.shape_cast %190 : vector<2x1x8x64xf32> to vector<2x8x64xf32>
    %192 = arith.mulf %191, %185 : vector<2x8x64xf32>
    %193 = vector.extract_strided_slice %132 {offsets = [0, 5, 0, 0], sizes = [2, 1, 8, 64], strides = [1, 1, 1, 1]} : vector<2x8x8x64xf32> to vector<2x1x8x64xf32>
    %194 = vector.shape_cast %193 : vector<2x1x8x64xf32> to vector<2x8x64xf32>
    %195 = arith.addf %192, %194 : vector<2x8x64xf32>
    %196 = vector.extract_strided_slice %135 {offsets = [0, 5, 0, 0], sizes = [2, 1, 8, 64], strides = [1, 1, 1, 1]} : vector<2x8x8x64xf32> to vector<2x1x8x64xf32>
    %197 = vector.shape_cast %196 : vector<2x1x8x64xf32> to vector<2x8x64xf32>
    %198 = arith.mulf %195, %197 : vector<2x8x64xf32>
    %cst_46 = arith.constant dense<0.000000e+00> : vector<2x64xf32>
    %199 = vector.multi_reduction <add>, %198, %cst_46 [1] : vector<2x8x64xf32> to vector<2x64xf32>
    %200 = vector.extract_strided_slice %127 {offsets = [0, 6, 0, 0], sizes = [2, 1, 8, 64], strides = [1, 1, 1, 1]} : vector<2x8x8x64xf32> to vector<2x1x8x64xf32>
    %201 = vector.shape_cast %200 : vector<2x1x8x64xf32> to vector<2x8x64xf32>
    %202 = arith.mulf %201, %195 : vector<2x8x64xf32>
    %203 = vector.extract_strided_slice %132 {offsets = [0, 6, 0, 0], sizes = [2, 1, 8, 64], strides = [1, 1, 1, 1]} : vector<2x8x8x64xf32> to vector<2x1x8x64xf32>
    %204 = vector.shape_cast %203 : vector<2x1x8x64xf32> to vector<2x8x64xf32>
    %205 = arith.addf %202, %204 : vector<2x8x64xf32>
    %206 = vector.extract_strided_slice %135 {offsets = [0, 6, 0, 0], sizes = [2, 1, 8, 64], strides = [1, 1, 1, 1]} : vector<2x8x8x64xf32> to vector<2x1x8x64xf32>
    %207 = vector.shape_cast %206 : vector<2x1x8x64xf32> to vector<2x8x64xf32>
    %208 = arith.mulf %205, %207 : vector<2x8x64xf32>
    %cst_47 = arith.constant dense<0.000000e+00> : vector<2x64xf32>
    %209 = vector.multi_reduction <add>, %208, %cst_47 [1] : vector<2x8x64xf32> to vector<2x64xf32>
    %210 = vector.extract_strided_slice %127 {offsets = [0, 7, 0, 0], sizes = [2, 1, 8, 64], strides = [1, 1, 1, 1]} : vector<2x8x8x64xf32> to vector<2x1x8x64xf32>
    %211 = vector.shape_cast %210 : vector<2x1x8x64xf32> to vector<2x8x64xf32>
    %212 = arith.mulf %211, %205 : vector<2x8x64xf32>
    %213 = vector.extract_strided_slice %132 {offsets = [0, 7, 0, 0], sizes = [2, 1, 8, 64], strides = [1, 1, 1, 1]} : vector<2x8x8x64xf32> to vector<2x1x8x64xf32>
    %214 = vector.shape_cast %213 : vector<2x1x8x64xf32> to vector<2x8x64xf32>
    %215 = arith.addf %212, %214 : vector<2x8x64xf32>
    %216 = vector.extract_strided_slice %135 {offsets = [0, 7, 0, 0], sizes = [2, 1, 8, 64], strides = [1, 1, 1, 1]} : vector<2x8x8x64xf32> to vector<2x1x8x64xf32>
    %217 = vector.shape_cast %216 : vector<2x1x8x64xf32> to vector<2x8x64xf32>
    %218 = arith.mulf %215, %217 : vector<2x8x64xf32>
    %cst_48 = arith.constant dense<0.000000e+00> : vector<2x64xf32>
    %219 = vector.multi_reduction <add>, %218, %cst_48 [1] : vector<2x8x64xf32> to vector<2x64xf32>
    %220 = vector.shape_cast %149 : vector<2x64xf32> to vector<2x1x64xf32>
    %221 = vector.shape_cast %159 : vector<2x64xf32> to vector<2x1x64xf32>
    %222 = vector.shape_cast %169 : vector<2x64xf32> to vector<2x1x64xf32>
    %223 = vector.shape_cast %179 : vector<2x64xf32> to vector<2x1x64xf32>
    %224 = vector.shape_cast %189 : vector<2x64xf32> to vector<2x1x64xf32>
    %225 = vector.shape_cast %199 : vector<2x64xf32> to vector<2x1x64xf32>
    %226 = vector.shape_cast %209 : vector<2x64xf32> to vector<2x1x64xf32>
    %227 = vector.shape_cast %219 : vector<2x64xf32> to vector<2x1x64xf32>
    %228 = tpu.concatenate %220, %221, %222, %223, %224, %225, %226, %227 in 1 : vector<2x1x64xf32>, vector<2x1x64xf32>, vector<2x1x64xf32>, vector<2x1x64xf32>, vector<2x1x64xf32>, vector<2x1x64xf32>, vector<2x1x64xf32>, vector<2x1x64xf32> -> vector<2x8x64xf32>
    %229 = arith.addf %228, %138 : vector<2x8x64xf32>
    %230 = vector.shape_cast %229 : vector<2x8x64xf32> to vector<16x64xf32>
    %231 = arith.negf %33 : vector<16x64xf32>
    %232 = math.exp %231 : vector<16x64xf32>
    %cst_49 = arith.constant 1.000000e+00 : f32
    %233 = vector.broadcast %cst_49 : f32 to vector<16x64xf32>
    %234 = arith.addf %233, %232 : vector<16x64xf32>
    %235 = arith.divf %233, %234 : vector<16x64xf32>
    %236 = arith.mulf %235, %230 : vector<16x64xf32>
    %237 = arith.truncf %236 : vector<16x64xf32> to vector<16x64xbf16>
    %c0_50 = arith.constant 0 : index
    %c0_51 = arith.constant 0 : index
    %c0_52 = arith.constant 0 : index
    %238 = vector.load %arg10[%c0_50, %c0_51, %c0_52] : memref<2x64x32xbf16, #tpu.memory_space<vmem>>, vector<1x64x32xbf16>
    %239 = vector.shape_cast %238 : vector<1x64x32xbf16> to vector<64x32xbf16>
    %cst_53 = arith.constant dense<0.000000e+00> : vector<16x32xf32>
    %240 = tpu.matmul %237, %239, %cst_53 {dimension_numbers = #tpu.dot_dimension_numbers<[1], [0], [0], [1], [0, 0, 1, 1], [], []>} : vector<16x64xbf16>, vector<64x32xbf16>, vector<16x32xf32> -> vector<16x32xf32>
    %c0_54 = arith.constant 0 : index
    %c0_55 = arith.constant 0 : index
    %241 = vector.load %arg11[%c0_54, %c0_55] : memref<2x32xf32, #tpu.memory_space<vmem>>, vector<1x32xf32>
    %242 = vector.shape_cast %241 : vector<1x32xf32> to vector<32xf32>
    %243 = vector.shape_cast %242 : vector<32xf32> to vector<1x32xf32>
    %244 = vector.broadcast %243 : vector<1x32xf32> to vector<16x32xf32>
    %245 = arith.addf %240, %244 : vector<16x32xf32>
    %246 = arith.addf %245, %3 : vector<16x32xf32>
    %cst_56 = arith.constant dense<0.000000e+00> : vector<16xf32>
    %247 = vector.multi_reduction <add>, %246, %cst_56 [1] : vector<16x32xf32> to vector<16xf32>
    %248 = vector.shape_cast %247 : vector<16xf32> to vector<16x1xf32>
    %cst_57 = arith.constant 3.200000e+01 : f32
    %249 = vector.broadcast %cst_57 : f32 to vector<16x1xf32>
    %250 = arith.divf %248, %249 : vector<16x1xf32>
    %251 = vector.broadcast %250 : vector<16x1xf32> to vector<16x32xf32>
    %252 = arith.subf %246, %251 : vector<16x32xf32>
    %253 = arith.mulf %252, %252 : vector<16x32xf32>
    %cst_58 = arith.constant dense<0.000000e+00> : vector<16xf32>
    %254 = vector.multi_reduction <add>, %253, %cst_58 [1] : vector<16x32xf32> to vector<16xf32>
    %255 = vector.shape_cast %254 : vector<16xf32> to vector<16x1xf32>
    %cst_59 = arith.constant 3.200000e+01 : f32
    %256 = vector.broadcast %cst_59 : f32 to vector<16x1xf32>
    %257 = arith.divf %255, %256 : vector<16x1xf32>
    %258 = vector.broadcast %250 : vector<16x1xf32> to vector<16x32xf32>
    %259 = arith.subf %246, %258 : vector<16x32xf32>
    %cst_60 = arith.constant 9.99999974E-6 : f32
    %260 = vector.broadcast %cst_60 : f32 to vector<16x1xf32>
    %261 = arith.addf %257, %260 : vector<16x1xf32>
    %262 = math.rsqrt %261 : vector<16x1xf32>
    %263 = vector.broadcast %262 : vector<16x1xf32> to vector<16x32xf32>
    %264 = arith.mulf %259, %263 : vector<16x32xf32>
    %265 = arith.truncf %264 : vector<16x32xf32> to vector<16x32xbf16>
    %c1 = arith.constant 1 : index
    %c0_61 = arith.constant 0 : index
    %c0_62 = arith.constant 0 : index
    %266 = vector.load %arg2[%c1, %c0_61, %c0_62] : memref<2x32x128xbf16, #tpu.memory_space<vmem>>, vector<1x32x128xbf16>
    %267 = vector.shape_cast %266 : vector<1x32x128xbf16> to vector<32x128xbf16>
    %cst_63 = arith.constant dense<0.000000e+00> : vector<16x128xf32>
    %268 = tpu.matmul %265, %267, %cst_63 {dimension_numbers = #tpu.dot_dimension_numbers<[1], [0], [0], [1], [0, 0, 1, 1], [], []>} : vector<16x32xbf16>, vector<32x128xbf16>, vector<16x128xf32> -> vector<16x128xf32>
    %c1_64 = arith.constant 1 : index
    %c0_65 = arith.constant 0 : index
    %269 = vector.load %arg3[%c1_64, %c0_65] : memref<2x128xf32, #tpu.memory_space<vmem>>, vector<1x128xf32>
    %270 = vector.shape_cast %269 : vector<1x128xf32> to vector<128xf32>
    %271 = vector.shape_cast %270 : vector<128xf32> to vector<1x128xf32>
    %272 = vector.broadcast %271 : vector<1x128xf32> to vector<16x128xf32>
    %273 = arith.addf %268, %272 : vector<16x128xf32>
    %274 = vector.extract_strided_slice %273 {offsets = [0, 0], sizes = [16, 64], strides = [1, 1]} : vector<16x128xf32> to vector<16x64xf32>
    %275 = vector.shape_cast %274 : vector<16x64xf32> to vector<2x8x64xf32>
    %276 = vector.extract_strided_slice %273 {offsets = [0, 64], sizes = [16, 64], strides = [1, 1]} : vector<16x128xf32> to vector<16x64xf32>
    %c1_66 = arith.constant 1 : index
    %c0_67 = arith.constant 0 : index
    %c0_68 = arith.constant 0 : index
    %277 = vector.load %arg4[%c1_66, %c0_67, %c0_68] : memref<2x4x64xf32, #tpu.memory_space<vmem>>, vector<1x4x64xf32>
    %278 = vector.shape_cast %277 : vector<1x4x64xf32> to vector<4x64xf32>
    %279 = vector.extract_strided_slice %278 {offsets = [3, 0], sizes = [1, 64], strides = [1, 1]} : vector<4x64xf32> to vector<1x64xf32>
    %280 = vector.shape_cast %279 : vector<1x64xf32> to vector<64xf32>
    %281 = vector.shape_cast %280 : vector<64xf32> to vector<1x1x64xf32>
    %282 = vector.broadcast %281 : vector<1x1x64xf32> to vector<2x8x64xf32>
    %283 = arith.mulf %275, %282 : vector<2x8x64xf32>
    %c3_i32_69 = arith.constant 3 : i32
    %284 = tpu.dynamic_rotate %275 by %c3_i32_69 dim 1 : vector<2x8x64xf32>, i32 -> vector<2x8x64xf32>
    %c3_i32_70 = arith.constant 3 : i32
    %285 = vector.broadcast %c3_i32_70 : i32 to vector<2x8x64xi32>
    %286 = arith.cmpi sge, %1, %285 : vector<2x8x64xi32>
    %cst_71 = arith.constant 0.000000e+00 : f32
    %287 = vector.broadcast %cst_71 : f32 to vector<2x8x64xf32>
    %288 = arith.select %286, %284, %287 : vector<2x8x64xi1>, vector<2x8x64xf32>
    %289 = vector.extract_strided_slice %278 {offsets = [0, 0], sizes = [1, 64], strides = [1, 1]} : vector<4x64xf32> to vector<1x64xf32>
    %290 = vector.shape_cast %289 : vector<1x64xf32> to vector<64xf32>
    %291 = vector.shape_cast %290 : vector<64xf32> to vector<1x1x64xf32>
    %292 = vector.broadcast %291 : vector<1x1x64xf32> to vector<2x8x64xf32>
    %293 = arith.mulf %288, %292 : vector<2x8x64xf32>
    %294 = arith.addf %283, %293 : vector<2x8x64xf32>
    %c2_i32_72 = arith.constant 2 : i32
    %295 = tpu.dynamic_rotate %275 by %c2_i32_72 dim 1 : vector<2x8x64xf32>, i32 -> vector<2x8x64xf32>
    %c2_i32_73 = arith.constant 2 : i32
    %296 = vector.broadcast %c2_i32_73 : i32 to vector<2x8x64xi32>
    %297 = arith.cmpi sge, %1, %296 : vector<2x8x64xi32>
    %cst_74 = arith.constant 0.000000e+00 : f32
    %298 = vector.broadcast %cst_74 : f32 to vector<2x8x64xf32>
    %299 = arith.select %297, %295, %298 : vector<2x8x64xi1>, vector<2x8x64xf32>
    %300 = vector.extract_strided_slice %278 {offsets = [1, 0], sizes = [1, 64], strides = [1, 1]} : vector<4x64xf32> to vector<1x64xf32>
    %301 = vector.shape_cast %300 : vector<1x64xf32> to vector<64xf32>
    %302 = vector.shape_cast %301 : vector<64xf32> to vector<1x1x64xf32>
    %303 = vector.broadcast %302 : vector<1x1x64xf32> to vector<2x8x64xf32>
    %304 = arith.mulf %299, %303 : vector<2x8x64xf32>
    %305 = arith.addf %294, %304 : vector<2x8x64xf32>
    %c1_i32_75 = arith.constant 1 : i32
    %306 = tpu.dynamic_rotate %275 by %c1_i32_75 dim 1 : vector<2x8x64xf32>, i32 -> vector<2x8x64xf32>
    %c1_i32_76 = arith.constant 1 : i32
    %307 = vector.broadcast %c1_i32_76 : i32 to vector<2x8x64xi32>
    %308 = arith.cmpi sge, %1, %307 : vector<2x8x64xi32>
    %cst_77 = arith.constant 0.000000e+00 : f32
    %309 = vector.broadcast %cst_77 : f32 to vector<2x8x64xf32>
    %310 = arith.select %308, %306, %309 : vector<2x8x64xi1>, vector<2x8x64xf32>
    %311 = vector.extract_strided_slice %278 {offsets = [2, 0], sizes = [1, 64], strides = [1, 1]} : vector<4x64xf32> to vector<1x64xf32>
    %312 = vector.shape_cast %311 : vector<1x64xf32> to vector<64xf32>
    %313 = vector.shape_cast %312 : vector<64xf32> to vector<1x1x64xf32>
    %314 = vector.broadcast %313 : vector<1x1x64xf32> to vector<2x8x64xf32>
    %315 = arith.mulf %310, %314 : vector<2x8x64xf32>
    %316 = arith.addf %305, %315 : vector<2x8x64xf32>
    %c1_78 = arith.constant 1 : index
    %c0_79 = arith.constant 0 : index
    %317 = vector.load %arg5[%c1_78, %c0_79] : memref<2x64xf32, #tpu.memory_space<vmem>>, vector<1x64xf32>
    %318 = vector.shape_cast %317 : vector<1x64xf32> to vector<64xf32>
    %319 = vector.shape_cast %318 : vector<64xf32> to vector<1x1x64xf32>
    %320 = vector.broadcast %319 : vector<1x1x64xf32> to vector<2x8x64xf32>
    %321 = arith.addf %316, %320 : vector<2x8x64xf32>
    %322 = arith.negf %321 : vector<2x8x64xf32>
    %323 = math.exp %322 : vector<2x8x64xf32>
    %cst_80 = arith.constant 1.000000e+00 : f32
    %324 = vector.broadcast %cst_80 : f32 to vector<2x8x64xf32>
    %325 = arith.addf %324, %323 : vector<2x8x64xf32>
    %326 = arith.divf %324, %325 : vector<2x8x64xf32>
    %327 = arith.mulf %321, %326 : vector<2x8x64xf32>
    %328 = vector.broadcast %0 : vector<2x8x1xf32> to vector<2x8x64xf32>
    %329 = arith.mulf %327, %328 : vector<2x8x64xf32>
    %330 = vector.shape_cast %329 : vector<2x8x64xf32> to vector<16x64xf32>
    %331 = arith.truncf %330 : vector<16x64xf32> to vector<16x64xbf16>
    %c1_81 = arith.constant 1 : index
    %c0_82 = arith.constant 0 : index
    %c0_83 = arith.constant 0 : index
    %332 = vector.load %arg6[%c1_81, %c0_82, %c0_83] : memref<2x64x80xbf16, #tpu.memory_space<vmem>>, vector<1x64x80xbf16>
    %333 = vector.shape_cast %332 : vector<1x64x80xbf16> to vector<64x80xbf16>
    %cst_84 = arith.constant dense<0.000000e+00> : vector<16x80xf32>
    %334 = tpu.matmul %331, %333, %cst_84 {dimension_numbers = #tpu.dot_dimension_numbers<[1], [0], [0], [1], [0, 0, 1, 1], [], []>} : vector<16x64xbf16>, vector<64x80xbf16>, vector<16x80xf32> -> vector<16x80xf32>
    %c1_85 = arith.constant 1 : index
    %c0_86 = arith.constant 0 : index
    %335 = vector.load %arg7[%c1_85, %c0_86] : memref<2x80xf32, #tpu.memory_space<vmem>>, vector<1x80xf32>
    %336 = vector.shape_cast %335 : vector<1x80xf32> to vector<80xf32>
    %337 = vector.shape_cast %336 : vector<80xf32> to vector<1x80xf32>
    %338 = vector.broadcast %337 : vector<1x80xf32> to vector<16x80xf32>
    %339 = arith.addf %334, %338 : vector<16x80xf32>
    %340 = vector.extract_strided_slice %339 {offsets = [0, 0], sizes = [16, 64], strides = [1, 1]} : vector<16x80xf32> to vector<16x64xf32>
    %341 = vector.shape_cast %340 : vector<16x64xf32> to vector<2x8x64xf32>
    %342 = vector.extract_strided_slice %339 {offsets = [0, 64], sizes = [16, 8], strides = [1, 1]} : vector<16x80xf32> to vector<16x8xf32>
    %343 = vector.shape_cast %342 : vector<16x8xf32> to vector<2x8x8xf32>
    %344 = vector.extract_strided_slice %339 {offsets = [0, 72], sizes = [16, 8], strides = [1, 1]} : vector<16x80xf32> to vector<16x8xf32>
    %345 = vector.shape_cast %344 : vector<16x8xf32> to vector<2x8x8xf32>
    %c1_87 = arith.constant 1 : index
    %c0_88 = arith.constant 0 : index
    %c0_89 = arith.constant 0 : index
    %346 = vector.load %arg8[%c1_87, %c0_88, %c0_89] : memref<2x8x64xf32, #tpu.memory_space<vmem>>, vector<1x8x64xf32>
    %347 = vector.shape_cast %346 : vector<1x8x64xf32> to vector<8x64xf32>
    %c1_90 = arith.constant 1 : index
    %c0_91 = arith.constant 0 : index
    %348 = vector.load %arg9[%c1_90, %c0_91] : memref<2x64xf32, #tpu.memory_space<vmem>>, vector<1x64xf32>
    %349 = vector.shape_cast %348 : vector<1x64xf32> to vector<64xf32>
    %cst_92 = arith.constant 0.000000e+00 : f32
    %350 = vector.broadcast %cst_92 : f32 to vector<2x8x64xf32>
    %351 = arith.maximumf %341, %350 : vector<2x8x64xf32>
    %352 = vector.broadcast %cst_92 : f32 to vector<2x8x64xf32>
    %353 = arith.subf %341, %352 : vector<2x8x64xf32>
    %354 = arith.cmpf one, %353, %353 : vector<2x8x64xf32>
    %355 = vector.broadcast %cst_92 : f32 to vector<2x8x64xf32>
    %356 = arith.addf %341, %355 : vector<2x8x64xf32>
    %357 = math.absf %353 : vector<2x8x64xf32>
    %cst_93 = arith.constant 0.000000e+00 : f32
    %358 = vector.broadcast %cst_93 : f32 to vector<2x8x64xf32>
    %359 = arith.subf %358, %357 : vector<2x8x64xf32>
    %360 = math.exp %359 : vector<2x8x64xf32>
    %361 = math.log1p %360 : vector<2x8x64xf32>
    %362 = arith.addf %351, %361 : vector<2x8x64xf32>
    %363 = arith.select %354, %356, %362 : vector<2x8x64xi1>, vector<2x8x64xf32>
    %364 = arith.mulf %363, %329 : vector<2x8x64xf32>
    %365 = vector.shape_cast %363 : vector<2x8x64xf32> to vector<2x8x1x64xf32>
    %366 = vector.shape_cast %347 : vector<8x64xf32> to vector<1x1x8x64xf32>
    %367 = vector.broadcast %365 : vector<2x8x1x64xf32> to vector<2x8x8x64xf32>
    %368 = vector.broadcast %366 : vector<1x1x8x64xf32> to vector<2x8x8x64xf32>
    %369 = arith.mulf %367, %368 : vector<2x8x8x64xf32>
    %370 = math.exp %369 : vector<2x8x8x64xf32>
    %371 = vector.shape_cast %364 : vector<2x8x64xf32> to vector<2x8x1x64xf32>
    %372 = vector.shape_cast %343 : vector<2x8x8xf32> to vector<2x8x8x1xf32>
    %373 = vector.broadcast %371 : vector<2x8x1x64xf32> to vector<2x8x8x64xf32>
    %374 = vector.broadcast %372 : vector<2x8x8x1xf32> to vector<2x8x8x64xf32>
    %375 = arith.mulf %373, %374 : vector<2x8x8x64xf32>
    %376 = vector.shape_cast %345 : vector<2x8x8xf32> to vector<2x8x8x1xf32>
    %377 = vector.shape_cast %376 : vector<2x8x8x1xf32> to vector<2x8x8x1xf32>
    %378 = vector.broadcast %377 : vector<2x8x8x1xf32> to vector<2x8x8x64xf32>
    %379 = vector.shape_cast %349 : vector<64xf32> to vector<1x1x64xf32>
    %380 = vector.broadcast %379 : vector<1x1x64xf32> to vector<2x8x64xf32>
    %381 = arith.mulf %329, %380 : vector<2x8x64xf32>
    %cst_94 = arith.constant 0.000000e+00 : f32
    %382 = vector.broadcast %cst_94 : f32 to vector<2x8x64xf32>
    %383 = vector.extract_strided_slice %370 {offsets = [0, 0, 0, 0], sizes = [2, 1, 8, 64], strides = [1, 1, 1, 1]} : vector<2x8x8x64xf32> to vector<2x1x8x64xf32>
    %384 = vector.shape_cast %383 : vector<2x1x8x64xf32> to vector<2x8x64xf32>
    %385 = arith.mulf %384, %382 : vector<2x8x64xf32>
    %386 = vector.extract_strided_slice %375 {offsets = [0, 0, 0, 0], sizes = [2, 1, 8, 64], strides = [1, 1, 1, 1]} : vector<2x8x8x64xf32> to vector<2x1x8x64xf32>
    %387 = vector.shape_cast %386 : vector<2x1x8x64xf32> to vector<2x8x64xf32>
    %388 = arith.addf %385, %387 : vector<2x8x64xf32>
    %389 = vector.extract_strided_slice %378 {offsets = [0, 0, 0, 0], sizes = [2, 1, 8, 64], strides = [1, 1, 1, 1]} : vector<2x8x8x64xf32> to vector<2x1x8x64xf32>
    %390 = vector.shape_cast %389 : vector<2x1x8x64xf32> to vector<2x8x64xf32>
    %391 = arith.mulf %388, %390 : vector<2x8x64xf32>
    %cst_95 = arith.constant dense<0.000000e+00> : vector<2x64xf32>
    %392 = vector.multi_reduction <add>, %391, %cst_95 [1] : vector<2x8x64xf32> to vector<2x64xf32>
    %393 = vector.extract_strided_slice %370 {offsets = [0, 1, 0, 0], sizes = [2, 1, 8, 64], strides = [1, 1, 1, 1]} : vector<2x8x8x64xf32> to vector<2x1x8x64xf32>
    %394 = vector.shape_cast %393 : vector<2x1x8x64xf32> to vector<2x8x64xf32>
    %395 = arith.mulf %394, %388 : vector<2x8x64xf32>
    %396 = vector.extract_strided_slice %375 {offsets = [0, 1, 0, 0], sizes = [2, 1, 8, 64], strides = [1, 1, 1, 1]} : vector<2x8x8x64xf32> to vector<2x1x8x64xf32>
    %397 = vector.shape_cast %396 : vector<2x1x8x64xf32> to vector<2x8x64xf32>
    %398 = arith.addf %395, %397 : vector<2x8x64xf32>
    %399 = vector.extract_strided_slice %378 {offsets = [0, 1, 0, 0], sizes = [2, 1, 8, 64], strides = [1, 1, 1, 1]} : vector<2x8x8x64xf32> to vector<2x1x8x64xf32>
    %400 = vector.shape_cast %399 : vector<2x1x8x64xf32> to vector<2x8x64xf32>
    %401 = arith.mulf %398, %400 : vector<2x8x64xf32>
    %cst_96 = arith.constant dense<0.000000e+00> : vector<2x64xf32>
    %402 = vector.multi_reduction <add>, %401, %cst_96 [1] : vector<2x8x64xf32> to vector<2x64xf32>
    %403 = vector.extract_strided_slice %370 {offsets = [0, 2, 0, 0], sizes = [2, 1, 8, 64], strides = [1, 1, 1, 1]} : vector<2x8x8x64xf32> to vector<2x1x8x64xf32>
    %404 = vector.shape_cast %403 : vector<2x1x8x64xf32> to vector<2x8x64xf32>
    %405 = arith.mulf %404, %398 : vector<2x8x64xf32>
    %406 = vector.extract_strided_slice %375 {offsets = [0, 2, 0, 0], sizes = [2, 1, 8, 64], strides = [1, 1, 1, 1]} : vector<2x8x8x64xf32> to vector<2x1x8x64xf32>
    %407 = vector.shape_cast %406 : vector<2x1x8x64xf32> to vector<2x8x64xf32>
    %408 = arith.addf %405, %407 : vector<2x8x64xf32>
    %409 = vector.extract_strided_slice %378 {offsets = [0, 2, 0, 0], sizes = [2, 1, 8, 64], strides = [1, 1, 1, 1]} : vector<2x8x8x64xf32> to vector<2x1x8x64xf32>
    %410 = vector.shape_cast %409 : vector<2x1x8x64xf32> to vector<2x8x64xf32>
    %411 = arith.mulf %408, %410 : vector<2x8x64xf32>
    %cst_97 = arith.constant dense<0.000000e+00> : vector<2x64xf32>
    %412 = vector.multi_reduction <add>, %411, %cst_97 [1] : vector<2x8x64xf32> to vector<2x64xf32>
    %413 = vector.extract_strided_slice %370 {offsets = [0, 3, 0, 0], sizes = [2, 1, 8, 64], strides = [1, 1, 1, 1]} : vector<2x8x8x64xf32> to vector<2x1x8x64xf32>
    %414 = vector.shape_cast %413 : vector<2x1x8x64xf32> to vector<2x8x64xf32>
    %415 = arith.mulf %414, %408 : vector<2x8x64xf32>
    %416 = vector.extract_strided_slice %375 {offsets = [0, 3, 0, 0], sizes = [2, 1, 8, 64], strides = [1, 1, 1, 1]} : vector<2x8x8x64xf32> to vector<2x1x8x64xf32>
    %417 = vector.shape_cast %416 : vector<2x1x8x64xf32> to vector<2x8x64xf32>
    %418 = arith.addf %415, %417 : vector<2x8x64xf32>
    %419 = vector.extract_strided_slice %378 {offsets = [0, 3, 0, 0], sizes = [2, 1, 8, 64], strides = [1, 1, 1, 1]} : vector<2x8x8x64xf32> to vector<2x1x8x64xf32>
    %420 = vector.shape_cast %419 : vector<2x1x8x64xf32> to vector<2x8x64xf32>
    %421 = arith.mulf %418, %420 : vector<2x8x64xf32>
    %cst_98 = arith.constant dense<0.000000e+00> : vector<2x64xf32>
    %422 = vector.multi_reduction <add>, %421, %cst_98 [1] : vector<2x8x64xf32> to vector<2x64xf32>
    %423 = vector.extract_strided_slice %370 {offsets = [0, 4, 0, 0], sizes = [2, 1, 8, 64], strides = [1, 1, 1, 1]} : vector<2x8x8x64xf32> to vector<2x1x8x64xf32>
    %424 = vector.shape_cast %423 : vector<2x1x8x64xf32> to vector<2x8x64xf32>
    %425 = arith.mulf %424, %418 : vector<2x8x64xf32>
    %426 = vector.extract_strided_slice %375 {offsets = [0, 4, 0, 0], sizes = [2, 1, 8, 64], strides = [1, 1, 1, 1]} : vector<2x8x8x64xf32> to vector<2x1x8x64xf32>
    %427 = vector.shape_cast %426 : vector<2x1x8x64xf32> to vector<2x8x64xf32>
    %428 = arith.addf %425, %427 : vector<2x8x64xf32>
    %429 = vector.extract_strided_slice %378 {offsets = [0, 4, 0, 0], sizes = [2, 1, 8, 64], strides = [1, 1, 1, 1]} : vector<2x8x8x64xf32> to vector<2x1x8x64xf32>
    %430 = vector.shape_cast %429 : vector<2x1x8x64xf32> to vector<2x8x64xf32>
    %431 = arith.mulf %428, %430 : vector<2x8x64xf32>
    %cst_99 = arith.constant dense<0.000000e+00> : vector<2x64xf32>
    %432 = vector.multi_reduction <add>, %431, %cst_99 [1] : vector<2x8x64xf32> to vector<2x64xf32>
    %433 = vector.extract_strided_slice %370 {offsets = [0, 5, 0, 0], sizes = [2, 1, 8, 64], strides = [1, 1, 1, 1]} : vector<2x8x8x64xf32> to vector<2x1x8x64xf32>
    %434 = vector.shape_cast %433 : vector<2x1x8x64xf32> to vector<2x8x64xf32>
    %435 = arith.mulf %434, %428 : vector<2x8x64xf32>
    %436 = vector.extract_strided_slice %375 {offsets = [0, 5, 0, 0], sizes = [2, 1, 8, 64], strides = [1, 1, 1, 1]} : vector<2x8x8x64xf32> to vector<2x1x8x64xf32>
    %437 = vector.shape_cast %436 : vector<2x1x8x64xf32> to vector<2x8x64xf32>
    %438 = arith.addf %435, %437 : vector<2x8x64xf32>
    %439 = vector.extract_strided_slice %378 {offsets = [0, 5, 0, 0], sizes = [2, 1, 8, 64], strides = [1, 1, 1, 1]} : vector<2x8x8x64xf32> to vector<2x1x8x64xf32>
    %440 = vector.shape_cast %439 : vector<2x1x8x64xf32> to vector<2x8x64xf32>
    %441 = arith.mulf %438, %440 : vector<2x8x64xf32>
    %cst_100 = arith.constant dense<0.000000e+00> : vector<2x64xf32>
    %442 = vector.multi_reduction <add>, %441, %cst_100 [1] : vector<2x8x64xf32> to vector<2x64xf32>
    %443 = vector.extract_strided_slice %370 {offsets = [0, 6, 0, 0], sizes = [2, 1, 8, 64], strides = [1, 1, 1, 1]} : vector<2x8x8x64xf32> to vector<2x1x8x64xf32>
    %444 = vector.shape_cast %443 : vector<2x1x8x64xf32> to vector<2x8x64xf32>
    %445 = arith.mulf %444, %438 : vector<2x8x64xf32>
    %446 = vector.extract_strided_slice %375 {offsets = [0, 6, 0, 0], sizes = [2, 1, 8, 64], strides = [1, 1, 1, 1]} : vector<2x8x8x64xf32> to vector<2x1x8x64xf32>
    %447 = vector.shape_cast %446 : vector<2x1x8x64xf32> to vector<2x8x64xf32>
    %448 = arith.addf %445, %447 : vector<2x8x64xf32>
    %449 = vector.extract_strided_slice %378 {offsets = [0, 6, 0, 0], sizes = [2, 1, 8, 64], strides = [1, 1, 1, 1]} : vector<2x8x8x64xf32> to vector<2x1x8x64xf32>
    %450 = vector.shape_cast %449 : vector<2x1x8x64xf32> to vector<2x8x64xf32>
    %451 = arith.mulf %448, %450 : vector<2x8x64xf32>
    %cst_101 = arith.constant dense<0.000000e+00> : vector<2x64xf32>
    %452 = vector.multi_reduction <add>, %451, %cst_101 [1] : vector<2x8x64xf32> to vector<2x64xf32>
    %453 = vector.extract_strided_slice %370 {offsets = [0, 7, 0, 0], sizes = [2, 1, 8, 64], strides = [1, 1, 1, 1]} : vector<2x8x8x64xf32> to vector<2x1x8x64xf32>
    %454 = vector.shape_cast %453 : vector<2x1x8x64xf32> to vector<2x8x64xf32>
    %455 = arith.mulf %454, %448 : vector<2x8x64xf32>
    %456 = vector.extract_strided_slice %375 {offsets = [0, 7, 0, 0], sizes = [2, 1, 8, 64], strides = [1, 1, 1, 1]} : vector<2x8x8x64xf32> to vector<2x1x8x64xf32>
    %457 = vector.shape_cast %456 : vector<2x1x8x64xf32> to vector<2x8x64xf32>
    %458 = arith.addf %455, %457 : vector<2x8x64xf32>
    %459 = vector.extract_strided_slice %378 {offsets = [0, 7, 0, 0], sizes = [2, 1, 8, 64], strides = [1, 1, 1, 1]} : vector<2x8x8x64xf32> to vector<2x1x8x64xf32>
    %460 = vector.shape_cast %459 : vector<2x1x8x64xf32> to vector<2x8x64xf32>
    %461 = arith.mulf %458, %460 : vector<2x8x64xf32>
    %cst_102 = arith.constant dense<0.000000e+00> : vector<2x64xf32>
    %462 = vector.multi_reduction <add>, %461, %cst_102 [1] : vector<2x8x64xf32> to vector<2x64xf32>
    %463 = vector.shape_cast %392 : vector<2x64xf32> to vector<2x1x64xf32>
    %464 = vector.shape_cast %402 : vector<2x64xf32> to vector<2x1x64xf32>
    %465 = vector.shape_cast %412 : vector<2x64xf32> to vector<2x1x64xf32>
    %466 = vector.shape_cast %422 : vector<2x64xf32> to vector<2x1x64xf32>
    %467 = vector.shape_cast %432 : vector<2x64xf32> to vector<2x1x64xf32>
    %468 = vector.shape_cast %442 : vector<2x64xf32> to vector<2x1x64xf32>
    %469 = vector.shape_cast %452 : vector<2x64xf32> to vector<2x1x64xf32>
    %470 = vector.shape_cast %462 : vector<2x64xf32> to vector<2x1x64xf32>
    %471 = tpu.concatenate %463, %464, %465, %466, %467, %468, %469, %470 in 1 : vector<2x1x64xf32>, vector<2x1x64xf32>, vector<2x1x64xf32>, vector<2x1x64xf32>, vector<2x1x64xf32>, vector<2x1x64xf32>, vector<2x1x64xf32>, vector<2x1x64xf32> -> vector<2x8x64xf32>
    %472 = arith.addf %471, %381 : vector<2x8x64xf32>
    %473 = vector.shape_cast %472 : vector<2x8x64xf32> to vector<16x64xf32>
    %474 = arith.negf %276 : vector<16x64xf32>
    %475 = math.exp %474 : vector<16x64xf32>
    %cst_103 = arith.constant 1.000000e+00 : f32
    %476 = vector.broadcast %cst_103 : f32 to vector<16x64xf32>
    %477 = arith.addf %476, %475 : vector<16x64xf32>
    %478 = arith.divf %476, %477 : vector<16x64xf32>
    %479 = arith.mulf %478, %473 : vector<16x64xf32>
    %480 = arith.truncf %479 : vector<16x64xf32> to vector<16x64xbf16>
    %c1_104 = arith.constant 1 : index
    %c0_105 = arith.constant 0 : index
    %c0_106 = arith.constant 0 : index
    %481 = vector.load %arg10[%c1_104, %c0_105, %c0_106] : memref<2x64x32xbf16, #tpu.memory_space<vmem>>, vector<1x64x32xbf16>
    %482 = vector.shape_cast %481 : vector<1x64x32xbf16> to vector<64x32xbf16>
    %cst_107 = arith.constant dense<0.000000e+00> : vector<16x32xf32>
    %483 = tpu.matmul %480, %482, %cst_107 {dimension_numbers = #tpu.dot_dimension_numbers<[1], [0], [0], [1], [0, 0, 1, 1], [], []>} : vector<16x64xbf16>, vector<64x32xbf16>, vector<16x32xf32> -> vector<16x32xf32>
    %c1_108 = arith.constant 1 : index
    %c0_109 = arith.constant 0 : index
    %484 = vector.load %arg11[%c1_108, %c0_109] : memref<2x32xf32, #tpu.memory_space<vmem>>, vector<1x32xf32>
    %485 = vector.shape_cast %484 : vector<1x32xf32> to vector<32xf32>
    %486 = vector.shape_cast %485 : vector<32xf32> to vector<1x32xf32>
    %487 = vector.broadcast %486 : vector<1x32xf32> to vector<16x32xf32>
    %488 = arith.addf %483, %487 : vector<16x32xf32>
    %489 = arith.addf %488, %246 : vector<16x32xf32>
    %cst_110 = arith.constant dense<0.000000e+00> : vector<16xf32>
    %490 = vector.multi_reduction <add>, %489, %cst_110 [1] : vector<16x32xf32> to vector<16xf32>
    %491 = vector.shape_cast %490 : vector<16xf32> to vector<16x1xf32>
    %cst_111 = arith.constant 3.200000e+01 : f32
    %492 = vector.broadcast %cst_111 : f32 to vector<16x1xf32>
    %493 = arith.divf %491, %492 : vector<16x1xf32>
    %494 = vector.broadcast %493 : vector<16x1xf32> to vector<16x32xf32>
    %495 = arith.subf %489, %494 : vector<16x32xf32>
    %496 = arith.mulf %495, %495 : vector<16x32xf32>
    %cst_112 = arith.constant dense<0.000000e+00> : vector<16xf32>
    %497 = vector.multi_reduction <add>, %496, %cst_112 [1] : vector<16x32xf32> to vector<16xf32>
    %498 = vector.shape_cast %497 : vector<16xf32> to vector<16x1xf32>
    %cst_113 = arith.constant 3.200000e+01 : f32
    %499 = vector.broadcast %cst_113 : f32 to vector<16x1xf32>
    %500 = arith.divf %498, %499 : vector<16x1xf32>
    %501 = vector.broadcast %493 : vector<16x1xf32> to vector<16x32xf32>
    %502 = arith.subf %489, %501 : vector<16x32xf32>
    %cst_114 = arith.constant 9.99999974E-6 : f32
    %503 = vector.broadcast %cst_114 : f32 to vector<16x1xf32>
    %504 = arith.addf %500, %503 : vector<16x1xf32>
    %505 = math.rsqrt %504 : vector<16x1xf32>
    %506 = vector.broadcast %505 : vector<16x1xf32> to vector<16x32xf32>
    %507 = arith.mulf %502, %506 : vector<16x32xf32>
    %c0_115 = arith.constant 0 : index
    %c0_116 = arith.constant 0 : index
    %508 = vector.load %arg12[%c0_115, %c0_116] : memref<1x32xf32, #tpu.memory_space<vmem>>, vector<1x32xf32>
    %509 = vector.broadcast %508 : vector<1x32xf32> to vector<16x32xf32>
    %510 = arith.mulf %507, %509 : vector<16x32xf32>
    %c0_117 = arith.constant 0 : index
    %c0_118 = arith.constant 0 : index
    %511 = vector.load %arg13[%c0_117, %c0_118] : memref<1x32xf32, #tpu.memory_space<vmem>>, vector<1x32xf32>
    %512 = vector.broadcast %511 : vector<1x32xf32> to vector<16x32xf32>
    %513 = arith.addf %510, %512 : vector<16x32xf32>
    %514 = vector.shape_cast %513 : vector<16x32xf32> to vector<2x8x32xf32>
    %c0_119 = arith.constant 0 : index
    %c0_120 = arith.constant 0 : index
    %c0_121 = arith.constant 0 : index
    %515 = vector.load %arg16[%c0_119, %c0_120, %c0_121] : memref<2x8x32xf32, #tpu.memory_space<vmem>>, vector<2x8x32xf32>
    tpu.vector_store %arg16[%c0_119, %c0_120, %c0_121], %514 {strides = array<i32>} : memref<2x8x32xf32, #tpu.memory_space<vmem>>, vector<2x8x32xf32>,
    %cst_122 = arith.constant dense<0.000000e+00> : vector<2x32xf32>
    %516 = vector.multi_reduction <add>, %514, %cst_122 [1] : vector<2x8x32xf32> to vector<2x32xf32>
    %cst_123 = arith.constant 8.000000e+00 : f32
    %517 = vector.broadcast %cst_123 : f32 to vector<2x32xf32>
    %518 = arith.divf %516, %517 : vector<2x32xf32>
    %c0_124 = arith.constant 0 : index
    %c0_125 = arith.constant 0 : index
    %519 = vector.load %arg14[%c0_124, %c0_125] : memref<1x32xf32, #tpu.memory_space<vmem>>, vector<1x32xf32>
    %520 = vector.broadcast %519 : vector<1x32xf32> to vector<2x32xf32>
    %521 = arith.mulf %518, %520 : vector<2x32xf32>
    %cst_126 = arith.constant dense<0.000000e+00> : vector<2xf32>
    %522 = vector.multi_reduction <add>, %521, %cst_126 [1] : vector<2x32xf32> to vector<2xf32>
    %523 = vector.shape_cast %522 : vector<2xf32> to vector<2x1xf32>
    %c0_127 = arith.constant 0 : index
    %c0_128 = arith.constant 0 : index
    %524 = vector.load %arg15[%c0_127, %c0_128] : memref<1x1xf32, #tpu.memory_space<vmem>>, vector<1x1xf32>
    %525 = vector.broadcast %524 : vector<1x1xf32> to vector<2x1xf32>
    %526 = arith.addf %523, %525 : vector<2x1xf32>
    %c0_129 = arith.constant 0 : index
    %c0_130 = arith.constant 0 : index
    %527 = vector.load %arg17[%c0_129, %c0_130] : memref<2x1xf32, #tpu.memory_space<vmem>>, vector<2x1xf32>
    tpu.vector_store %arg17[%c0_129, %c0_130], %526 {strides = array<i32>} : memref<2x1xf32, #tpu.memory_space<vmem>>, vector<2x1xf32>,
    return
  }
}

</mosaic_0001>

<bundles_post_ra>
// kernel: fractal_mamba_regression.1
= control target key start
LH: loop header
LB: loop body
LE: loop exit
PB: predicated region body
PF: predicated region fallthrough
CT: control target
= control target key end

     0   :  { %s3146_s0 = inlined_call_operand.vmem [shape: f32[2,8,32], index: 0, kind: input, shape index: {}]   ;;  %s3147_s1 = inlined_call_operand.vmem [shape: f32[2,8,1], index: 1, kind: input, shape index: {}]   ;;  %s3148_s2 = inlined_call_operand.vmem [shape: bf16[2,32,128], index: 2, kind: input, shape index: {}]   ;;  %s3149_s3 = inlined_call_operand.vmem [shape: f32[2,128], index: 3, kind: input, shape index: {}]   ;;  %s3150_s4 = inlined_call_operand.vmem [shape: f32[2,4,64], index: 4, kind: input, shape index: {}]   ;;  %s3151_s5 = inlined_call_operand.vmem [shape: f32[2,64], index: 5, kind: input, shape index: {}]   ;;  %s3152_s6 = inlined_call_operand.vmem [shape: bf16[2,64,80], index: 6, kind: input, shape index: {}]   ;;  %s3153_s7 = inlined_call_operand.vmem [shape: f32[2,80], index: 7, kind: input, shape index: {}]   ;;  %s3154_s8 = inlined_call_operand.vmem [shape: f32[2,8,64], index: 8, kind: input, shape index: {}]   ;;  %s3155_s9 = inlined_call_operand.vmem [shape: f32[2,64], index: 9, kind: input, shape index: {}]   ;;  %s3156_s10 = inlined_call_operand.vmem [shape: bf16[2,64,32], index: 10, kind: input, shape index: {}]   ;;  %s3157_s11 = inlined_call_operand.vmem [shape: f32[2,32], index: 11, kind: input, shape index: {}]   ;;  %s3158_s12 = inlined_call_operand.vmem [shape: f32[1,32], index: 12, kind: input, shape index: {}]   ;;  %s3159_s13 = inlined_call_operand.vmem [shape: f32[1,32], index: 13, kind: input, shape index: {}]   ;;  %s3160_s14 = inlined_call_operand.vmem [shape: f32[1,32], index: 14, kind: input, shape index: {}]   ;;  %s3161_s15 = inlined_call_operand.<no memory space> [shape: f32[1,1], index: 15, kind: input, shape index: {}]   ;;  %s3162_s16 = inlined_call_operand.hbm [shape: f32[2,8,32], index: 16, kind: output, shape index: {0}]   ;;  %s3163_s17 = inlined_call_operand.vmem [shape: f32[2,1], index: 17, kind: output, shape index: {1}]  }
   0x1   :  { %3170 = sst [smem:[#allocation6_spill]] %s3146_s0  ;;  %v23_v0 = vstv %s3161_s15 }
   0x2   :  { %3171 = sst [smem:[#allocation7_spill]] %s3147_s1  ;;  %24 = vst [vmem:[#allocation2] sm:$0x1] %v23_v0 }
   0x3   :  { %s3172_s28 = sld [smem:[#allocation6_spill]]  ;;  %vm65_vm0 = vcmask 261120  }
   0x9   :  { %v63_v1 = vld [vmem:[%s3172_s28] sm:$0xff]  ;;  %v64_v3 = vld [vmem:[%s3172_s28 + $0x8] sm:$0xff] }
   0xa   :  { %v66_v2 = vsel %vm65_vm0, %v63_v1, 0.0 }
   0xb   :  { %67 = vadd.xlane.f32.xlu0 %v66_v2 }
   0xc   :  { %25 = vsyncpa [#allocation4], 0  ;;  %v69_v4 = vsel %vm65_vm0, %v64_v3, 0.0  ;;  %v2371_v5 = vmov 32.0   ;;  %v2144_v22 = vld [vmem:[%s3148_s2 + $0x8] sm:$0xff]  ;;  %v2143_v23 = vld [vmem:[%s3148_s2] sm:$0xff]  ;;  %v61_v50 = vlaneseq }
   0xd   :  { %2215 = vrcp.f32 %v2371_v5  ;;  %145 = vmatpush.bf16.msra.mxu0 %v2144_v22  ;;  %s3173_s21 = sld [smem:[#allocation7_spill]]  ;;  %v2372_v28 = vmov 0   ;;  %v2201_v51 = vld [vmem:[%s3149_s3] ss:$0 sm:$0xff]  ;;  %s2373_s0 = smov 64  }
   0xe   :  { %2170 = vset.pattern.permute.xlu2 %v2372_v28  ;;  %v2503_v52 = vshrl.u32 %v61_v50, 7  ;;  %v153_v53 = vld [vmem:[%s3150_s4] sm:$0xf]  ;;  %s2011_s25 = sshll.u32 %s3162_s16, 4  ;;  %s2375_s26 = smov [#allocation3]   ;;  %s2012_s25 = int_to_ptr.hbm [resolvable:$true] %s2011_s25 }
   0xf   :  { %v154_v56 = vperm.slane %v153_v53, 3  ;;  %v162_v57 = vperm.slane %v153_v53, 0  ;;  %v172_v60 = vperm.slane %v153_v53, 1  ;;  %v182_v2 = vperm.slane %v153_v53, 2  ;;  %s2009_s27 = sshll.u32 %s2375_s26, 4  ;;  %s2010_s27 = int_to_ptr.vmem [resolvable:$true] %s2009_s27 }
  0x10   :  { %vm159_vm8 = vcmp.ge.s32.totalorder %v2503_v52, 3  ;;  %vm169_vm9 = vcmp.ge.s32.totalorder %v2503_v52, 2  ;;  %vm179_vm10 = vcmp.ge.s32.totalorder %v2503_v52, 1 }
  0x11   :  { %146 = vmatpush.bf16.msra.mxu0 %v2143_v23 }
  0x13   :  { %70 = vadd.xlane.f32.xlu0 %v69_v4  ;;  %v2216_v6 = vpop.eup %2215  ;;  %v59_v27 = vld [vmem:[%s3173_s21] sm:$0xff]  ;;  %v60_v31 = vld [vmem:[%s3173_s21 + $0x8] sm:$0xff] }
  0x14   :  { %v73_v7 = vmul.f32 32.0, %v2216_v6  ;;  %vm77_vm1 = vweird.f32 %v2216_v6  ;;  %233 = vperm.xlu2 %2170, %v59_v27  }
  0x16   :  { %v74_v8 = vsub.f32 1.0, %v73_v7 }
  0x18   :  { %v75_v9 = vmul.f32 %v2216_v6, %v74_v8 }
  0x1a   :  { %v76_v10 = vadd.f32 %v2216_v6, %v75_v9 }
  0x1c   :  { %v2479_v11 = vsel %vm77_vm1, %v2216_v6, %v76_v10  ;;  %238 = vperm.xlu2 %2170, %v60_v31   ;;  %v2202_v10 = vld [vmem:[%s3151_s5] ss:$0 sm:$0xff] }
  0x7e   :  { %v68_v12 = vpop.xlane.xlu0 %67 }
  0x7f   :  { %v79_v13 = vmul.f32 %v2479_v11, %v68_v12  ;;  %v2148_v12 = vld [vmem:[%s3152_s6 + $0x18] sm:$0xff] }
  0x80   :  { %286 = vmatpush.bf16.msra.mxu1 %v2148_v12 }
  0x81   :  { %v81_v14 = vsub.f32 %v63_v1, %v79_v13 }
  0x83   :  { %v83_v15 = vmul.f32 %v81_v14, %v81_v14 }
  0x85   :  { %v85_v16 = vsel %vm65_vm0, %v83_v15, 0.0 }
  0x86   :  { %86 = vadd.xlane.f32.xlu1 %v85_v16  ;;  %v71_v17 = vpop.xlane.xlu0 %70  ;;  %v2534_v16 = vadd.s32 64, %v2503_v52 }
  0x87   :  { %v80_v18 = vmul.f32 %v2479_v11, %v71_v17 }
  0x88   :  { %2173 = vset.pattern.permute.xlu1 %v2534_v16  ;;  %2171 = vset.pattern.permute.xlu0 %v2534_v16 }
  0x89   :  { %v82_v19 = vsub.f32 %v64_v3, %v80_v18  ;;  %2172 = vset.pattern.permute.xlu2 %v2534_v16 }
  0x8b   :  { %v84_v20 = vmul.f32 %v82_v19, %v82_v19 }
  0x8d   :  { %v88_v21 = vsel %vm65_vm0, %v84_v20, 0.0 }
  0x8e   :  { %89 = vadd.xlane.f32.xlu1 %v88_v21 }
  0xf9   :  { %v87_v24 = vpop.xlane.xlu1 %86 }
  0xfa   :  { %v91_v25 = vmul.f32 %v87_v24, %v2479_v11  ;;  %v2147_v24 = vld [vmem:[%s3152_s6 + $0x10] sm:$0xff] }
  0xfb   :  { %287 = vmatpush.bf16.msra.mxu1 %v2147_v24 }
  0xfc   :  { %v93_v26 = vadd.f32 1e-05, %v91_v25 }
  0xfe   :  { %2217 = vrsqrt.f32 %v93_v26  ;;  %vm101_vm3 = vweird.f32 %v93_v26 }
 0x101   :  { %v90_v29 = vpop.xlane.xlu1 %89 }
 0x102   :  { %v92_v30 = vmul.f32 %v90_v29, %v2479_v11 }
 0x104   :  { %v2218_v32 = vpop.eup %2217  ;;  %v94_v33 = vadd.f32 1e-05, %v92_v30  ;;  %v2146_v30 = vld [vmem:[%s3152_s6 + $0x8] sm:$0xff] }
 0x105   :  { %v96_v34 = vmul.f32 %v2218_v32, %v93_v26  ;;  %vm102_vm2 = vweird.f32 %v2218_v32  ;;  %288 = vmatpush.bf16.msra.mxu1 %v2146_v30 }
 0x106   :  { %2219 = vrsqrt.f32 %v94_v33  ;;  %vm103_vm5 = vmor %vm101_vm3, %vm102_vm2  ;;  %vm111_vm6 = vweird.f32 %v94_v33 }
 0x107   :  { %v97_v35 = vmul.f32 %v2218_v32, %v96_v34 }
 0x109   :  { %v98_v36 = vmul.f32 0.5, %v97_v35 }
 0x10b   :  { %v99_v38 = vsub.f32 1.5, %v98_v36 }
 0x10c   :  { %v2220_v37 = vpop.eup %2219 }
 0x10d   :  { %v106_v39 = vmul.f32 %v2220_v37, %v94_v33  ;;  %v100_v41 = vmul.f32 %v2218_v32, %v99_v38  ;;  %vm112_vm4 = vweird.f32 %v2220_v37  ;;  %v2145_v33 = vld [vmem:[%s3152_s6] sm:$0xff] }
 0x10e   :  { %vm113_vm7 = vmor %vm111_vm6, %vm112_vm4  ;;  %289 = vmatpush.bf16.msra.mxu1 %v2145_v33  ;;  %vm278_vm4 = vcmask 523264  }
 0x10f   :  { %v107_v40 = vmul.f32 %v2220_v37, %v106_v39  ;;  %v104_v45 = vsel %vm103_vm5, %v2218_v32, %v100_v41 }
 0x110   :  { %v115_v47 = vmul.f32 %v104_v45, %v81_v14 }
 0x111   :  { %v108_v42 = vmul.f32 0.5, %v107_v40 }
 0x113   :  { %v109_v43 = vsub.f32 1.5, %v108_v42 }
 0x115   :  { %v110_v44 = vmul.f32 %v2220_v37, %v109_v43 }
 0x117   :  { %v114_v46 = vsel %vm113_vm7, %v2220_v37, %v110_v44 }
 0x118   :  { %v116_v48 = vmul.f32 %v114_v46, %v82_v19 }
 0x11a   :  { %v117_v49 = vpack.c.bf16 %v116_v48, %v115_v47  ;;  %v2556_v48 = vpop.permute.xlu2 %233 }
 0x11c   :  { %2035 = vmatmul.msk.bf16.vlgmr.msra.gmra.mxu0 %vm65_vm0, %v117_v49 }
 0x199   :  { %v148_v54 = vpop.f32.mrf.mxu0 }
 0x19a   :  { %v2508_v55 = vadd.f32 %v2201_v51, %v148_v54 }
 0x19c   :  { %v157_v58 = vrot.slane %v2508_v55, 5  ;;  %v167_v59 = vrot.slane %v2508_v55, 6  ;;  %v177_v61 = vrot.slane %v2508_v55, 7  ;;  %v155_v0 = vmul.f32 %v154_v56, %v2508_v55 }
 0x19e   :  { %v160_v62 = vsel %vm159_vm8, %v157_v58, 0.0  ;;  %v170_v63 = vsel %vm169_vm9, %v167_v59, 0.0  ;;  %v180_v3 = vsel %vm179_vm10, %v177_v61, 0.0 }
 0x19f   :  { %v163_v1 = vmul.f32 %v162_v57, %v160_v62  ;;  %v173_v6 = vmul.f32 %v172_v60, %v170_v63  ;;  %v183_v9 = vmul.f32 %v182_v2, %v180_v3 }
 0x1a1   :  { %v150_v4 = vpop.f32.mrf.mxu0  ;;  %v165_v5 = vadd.f32 %v163_v1, %v155_v0  ;;  %v2558_v0 = vpop.permute.xlu2 %238 }
 0x1a2   :  { %v2523_v7 = vadd.f32 %v2201_v51, %v150_v4  ;;  %v2203_v4 = vld [vmem:[%s3153_s7] ss:$0 sm:$0xff] }
 0x1a3   :  { %v175_v8 = vadd.f32 %v173_v6, %v165_v5 }
 0x1a4   :  { %v158_v13 = vrot.slane %v2523_v7, 5  ;;  %v168_v14 = vrot.slane %v2523_v7, 6  ;;  %v178_v19 = vrot.slane %v2523_v7, 7  ;;  %v156_v20 = vmul.f32 %v154_v56, %v2523_v7 }
 0x1a5   :  { %v185_v15 = vadd.f32 %v183_v9, %v175_v8 }
 0x1a6   :  { %v161_v17 = vsel %vm159_vm8, %v158_v13, 0.0  ;;  %v171_v18 = vsel %vm169_vm9, %v168_v14, 0.0  ;;  %v181_v23 = vsel %vm179_vm10, %v178_v19, 0.0 }
 0x1a7   :  { %v189_v21 = vadd.f32 %v2202_v10, %v185_v15  ;;  %v164_v22 = vmul.f32 %v162_v57, %v161_v17  ;;  %v174_v27 = vmul.f32 %v172_v60, %v171_v18  ;;  %v184_v29 = vmul.f32 %v182_v2, %v181_v23 }
 0x1a9   :  { %v2036_v25 = vmul.f32 -1.442695, %v189_v21  ;;  %v166_v26 = vadd.f32 %v164_v22, %v156_v20 }
 0x1ab   :  { %2221 = vpow2.f32 %v2036_v25  ;;  %v176_v28 = vadd.f32 %v174_v27, %v166_v26 }
 0x1ad   :  { %v186_v31 = vadd.f32 %v184_v29, %v176_v28 }
 0x1af   :  { %v190_v32 = vadd.f32 %v2202_v10, %v186_v31 }
 0x1b1   :  { %v2222_v34 = vpop.eup %2221  ;;  %v2037_v35 = vmul.f32 -1.442695, %v190_v32 }
 0x1b2   :  { %v197_v36 = vadd.f32 1.0, %v2222_v34 }
 0x1b3   :  { %2223 = vpow2.f32 %v2037_v35 }
 0x1b4   :  { %2225 = vrcp.f32 %v197_v36  ;;  %v210_v45 = vand.u32 2147483648, %v197_v36  ;;  %vm204_vm12 = vweird.f32 %v197_v36  ;;  %v208_v46 = vand.u32 2147483647, %v197_v36 }
 0x1b6   :  { %v211_v51 = vor.u32 1.1754944e-38, %v210_v45  ;;  %vm209_vm14 = vcmp.eq.f32.partialorder %v208_v46, 8.507059e+37 }
 0x1b9   :  { %v2224_v37 = vpop.eup %2223 }
 0x1ba   :  { %v2226_v38 = vpop.eup %2225  ;;  %v198_v39 = vadd.f32 1.0, %v2224_v37 }
 0x1bb   :  { %v200_v40 = vmul.f32 %v2226_v38, %v197_v36  ;;  %vm205_vm11 = vweird.f32 %v2226_v38 }
 0x1bc   :  { %2227 = vrcp.f32 %v198_v39  ;;  %vm206_vm13 = vmor %vm204_vm12, %vm205_vm11  ;;  %v225_v53 = vand.u32 2147483648, %v198_v39  ;;  %v223_v56 = vand.u32 2147483647, %v198_v39  ;;  %vm219_vm1 = vweird.f32 %v198_v39 }
 0x1bd   :  { %v201_v41 = vsub.f32 1.0, %v200_v40  ;;  %vm867_vm12 = vcmask 1040384  }
 0x1be   :  { %v226_v59 = vor.u32 1.1754944e-38, %v225_v53  ;;  %vm224_vm3 = vcmp.eq.f32.partialorder %v223_v56, 8.507059e+37 }
 0x1bf   :  { %v202_v42 = vmul.f32 %v2226_v38, %v201_v41 }
 0x1c1   :  { %v203_v43 = vadd.f32 %v2226_v38, %v202_v42 }
 0x1c2   :  { %v2228_v44 = vpop.eup %2227 }
 0x1c3   :  { %v215_v47 = vmul.f32 %v2228_v44, %v198_v39  ;;  %v207_v49 = vsel %vm206_vm13, %v2226_v38, %v203_v43  ;;  %vm220_vm15 = vweird.f32 %v2228_v44  ;;  %v2607_v43 = vld [vmem:[%s3154_s8] sm:$0xff]  ;;  %vm870_vm13 = vcmask 1041408  }
 0x1c4   :  { %v212_v57 = vsel %vm209_vm14, %v211_v51, %v207_v49  ;;  %vm221_vm2 = vmor %vm219_vm1, %vm220_vm15  ;;  %vm873_vm14 = vcmask 1042432   ;;  %vm3169_vm15 = vcmask 1043456   ;;  %vm3168_vm1 = vcmask 1044480  }
 0x1c5   :  { %v216_v50 = vsub.f32 1.0, %v215_v47  ;;  %v229_v60 = vmul.f32 %v212_v57, %v189_v21  ;;  %v2584_v21 = vadd.s32 72, %v2503_v52 }
 0x1c7   :  { %v217_v54 = vmul.f32 %v2228_v44, %v216_v50  ;;  %v2561_v1 = vmul.f32 %v2556_v48, %v229_v60 }
 0x1c9   :  { %v218_v58 = vadd.f32 %v2228_v44, %v217_v54 }
 0x1cb   :  { %v222_v61 = vsel %vm221_vm2, %v2228_v44, %v218_v58  ;;  %vm3167_vm2 = vcmask 1045504  }
 0x1cc   :  { %v227_v62 = vsel %vm224_vm3, %v226_v59, %v222_v61  ;;  %vm3166_vm3 = vcmask 1046528  }
 0x1cd   :  { %v230_v63 = vmul.f32 %v227_v62, %v190_v32 }
 0x1cf   :  { %v2564_v2 = vmul.f32 %v2558_v0, %v230_v63 }
 0x1d1   :  { %v243_v3 = vpack.c.bf16 %v2564_v2, %v2561_v1 }
 0x1d3   :  { %2054 = vmatmul.msk.bf16.vlgmr.msra.gmra.mxu1 %vm278_vm4, %v243_v3 }
 0x250   :  { %v291_v5 = vpop.f32.mrf.mxu1 }
 0x251   :  { %v2572_v6 = vadd.f32 %v2203_v4, %v291_v5 }
 0x253   :  { %v469_v8 = vperm.slane %v2572_v6, 3  ;;  %v455_v9 = vperm.slane %v2572_v6, 1  ;;  %v448_v10 = vperm.slane %v2572_v6, 0  ;;  %v476_v15 = vperm.slane %v2572_v6, 4 }
 0x254   :  { %v462_v17 = vperm.slane %v2572_v6, 2  ;;  %v490_v18 = vperm.slane %v2572_v6, 6  ;;  %v483_v22 = vperm.slane %v2572_v6, 5  ;;  %v497_v31 = vperm.slane %v2572_v6, 7 }
 0x255   :  { %474 = vperm.xlu1 %2173, %v469_v8   ;;  %460 = vperm.xlu2 %2172, %v455_v9   ;;  %v304_v37 = vand.u32 2147483647, %v2572_v6  ;;  %vm300_vm11 = vcmp.ne.f32.partialorder %v2572_v6, %v2572_v6 }
 0x256   :  { %453 = vperm.xlu0 %2171, %v448_v10  }
 0x257   :  { %v306_v46 = vsub.f32 0.0, %v304_v37 }
 0x258   :  { %v293_v12 = vpop.f32.mrf.mxu1 }
 0x259   :  { %v2577_v13 = vadd.f32 %v2203_v4, %v293_v12  ;;  %v308_v51 = vmul.f32 1.442695, %v306_v46 }
 0x25b   :  { %v305_v14 = vand.u32 2147483647, %v2577_v13  ;;  %v299_v33 = vmax.f32 %v2577_v13, 0.0  ;;  %vm301_vm6 = vcmp.ne.f32.partialorder %v2577_v13, %v2577_v13  ;;  %v532_v35 = vperm.slane %v2577_v13, 4 }
 0x25c   :  { %v504_v45 = vperm.slane %v2577_v13, 0  ;;  %v511_v53 = vperm.slane %v2577_v13, 1  ;;  %v539_v54 = vperm.slane %v2577_v13, 5  ;;  %v518_v57 = vperm.slane %v2577_v13, 2 }
 0x25d   :  { %481 = vperm.xlu1 %2173, %v476_v15   ;;  %467 = vperm.xlu2 %2172, %v462_v17   ;;  %v307_v19 = vsub.f32 0.0, %v305_v14  ;;  %v525_v59 = vperm.slane %v2577_v13, 3  ;;  %v546_v4 = vperm.slane %v2577_v13, 6 }
 0x25e   :  { %495 = vperm.xlu0 %2171, %v490_v18  }
 0x25f   :  { %v310_v20 = vmul.f32 1.442695, %v307_v19 }
 0x261   :  { %2229 = vpow2.f32 %v310_v20 }
 0x265   :  { %2174 = vset.pattern.permute.xlu1 %v2584_v21  ;;  %488 = vperm.xlu2 %2172, %v483_v22  }
 0x266   :  { %2175 = vset.pattern.permute.xlu0 %v2584_v21 }
 0x267   :  { %v2230_v23 = vpop.eup %2229 }
 0x268   :  { %v321_v24 = vadd.f32 1.0, %v2230_v23  ;;  %v324_v25 = vmul.f32 -0.5, %v2230_v23  ;;  %v327_v28 = vand.u32 2147483647, %v2230_v23 }
 0x26a   :  { %2231 = vlog2.f32 %v321_v24  ;;  %v325_v27 = vadd.f32 1.0, %v324_v25  ;;  %vm328_vm5 = vcmp.lt.f32.partialorder %v327_v28, 0.0004427343 }
 0x26b   :  { %2233 = vpow2.f32 %v308_v51 }
 0x26c   :  { %v326_v30 = vmul.f32 %v2230_v23, %v325_v27 }
 0x26d   :  { %2176 = vset.pattern.permute.xlu2 %v2584_v21  ;;  %612 = vperm.xlu1 %2174, %v448_v10  }
 0x26e   :  { %618 = vperm.xlu0 %2175, %v455_v9   ;;  %v298_v9 = vmax.f32 %v2572_v6, 0.0 }
 0x270   :  { %v2232_v26 = vpop.eup %2231 }
 0x271   :  { %v323_v29 = vmul.f32 0.6931472, %v2232_v26  ;;  %v2234_v56 = vpop.eup %2233 }
 0x272   :  { %v312_v58 = vadd.f32 1.0, %v2234_v56  ;;  %v315_v60 = vmul.f32 -0.5, %v2234_v56  ;;  %v318_v63 = vand.u32 2147483647, %v2234_v56 }
 0x273   :  { %v329_v32 = vsel %vm328_vm5, %v326_v30, %v323_v29 }
 0x274   :  { %v331_v34 = vadd.f32 %v329_v32, %v299_v33  ;;  %2235 = vlog2.f32 %v312_v58  ;;  %v316_v62 = vadd.f32 1.0, %v315_v60  ;;  %vm319_vm7 = vcmp.lt.f32.partialorder %v318_v63, 0.0004427343 }
 0x275   :  { %624 = vperm.xlu2 %2176, %v462_v17   ;;  %630 = vperm.xlu1 %2174, %v469_v8   ;;  %v553_v32 = vperm.slane %v2577_v13, 7 }
 0x276   :  { %2177 = vset.pattern.permute.xlu0 %v2534_v16  ;;  %v2597_v36 = vsel %vm301_vm6, %v2577_v13, %v331_v34  ;;  %v317_v5 = vmul.f32 %v2234_v56, %v316_v62 }
 0x277   :  { %v349_v38 = vrot.slane %v2597_v36, 5  ;;  %v350_v39 = vrot.slane %v2597_v36, 6  ;;  %v351_v40 = vrot.slane %v2597_v36, 7 }
 0x279   :  { %v365_v41 = vperm.slane %v349_v38, 0  ;;  %v366_v42 = vperm.slane %v350_v39, 0  ;;  %v367_v44 = vperm.slane %v351_v40, 0 }
 0x27a   :  { %v2236_v61 = vpop.eup %2235 }
 0x27b   :  { %v2611_v47 = vmul.f32 %v365_v41, %v2607_v43  ;;  %v2614_v49 = vmul.f32 %v366_v42, %v2607_v43  ;;  %v2617_v50 = vmul.f32 %v367_v44, %v2607_v43  ;;  %v314_v3 = vmul.f32 0.6931472, %v2236_v61 }
 0x27d   :  { %642 = vperm.xlu2 %2176, %v483_v22   ;;  %636 = vperm.xlu1 %2174, %v476_v15   ;;  %v320_v8 = vsel %vm319_vm7, %v317_v5, %v314_v3 }
 0x27e   :  { %502 = vperm.xlu0 %2177, %v497_v31   ;;  %v330_v10 = vadd.f32 %v320_v8, %v298_v9 }
 0x280   :  { %v2634_v12 = vsel %vm300_vm11, %v2572_v6, %v330_v10 }
 0x281   :  { %v352_v14 = vperm.slane %v2634_v12, 0  ;;  %v338_v15 = vrot.slane %v2634_v12, 1  ;;  %v339_v22 = vrot.slane %v2634_v12, 2  ;;  %v2644_v6 = vmul.f32 %v2634_v12, %v2561_v1 }
 0x282   :  { %v340_v33 = vrot.slane %v2634_v12, 3  ;;  %v341_v46 = vrot.slane %v2634_v12, 4  ;;  %v342_v5 = vrot.slane %v2634_v12, 5 }
 0x283   :  { %v384_v17 = vmul.f32 %v352_v14, %v2607_v43  ;;  %v353_v19 = vperm.slane %v338_v15, 0  ;;  %v354_v25 = vperm.slane %v339_v22, 0  ;;  %v560_v28 = vperm.slane %v2644_v6, 0 }
 0x284   :  { %v355_v39 = vperm.slane %v340_v33, 0  ;;  %v436_v9 = vrot.slane %v2644_v6, 3  ;;  %v357_v15 = vperm.slane %v342_v5, 0 }
 0x285   :  { %648 = vperm.xlu2 %2176, %v490_v18   ;;  %2178 = vset.pattern.permute.xlu1 %v2534_v16  ;;  %v400_v20 = vmul.f32 1.442695, %v384_v17  ;;  %v385_v23 = vmul.f32 %v353_v19, %v2607_v43 }
 0x286   :  { %537 = vperm.xlu0 %2177, %v532_v35   ;;  %v387_v51 = vmul.f32 %v355_v39, %v2607_v43  ;;  %v389_v22 = vmul.f32 %v357_v15, %v2607_v43  ;;  %v439_v15 = vrot.slane %v2644_v6, 6 }
 0x287   :  { %2237 = vpow2.f32 %v400_v20  ;;  %v402_v26 = vmul.f32 1.442695, %v385_v23  ;;  %v343_v23 = vrot.slane %v2634_v12, 6 }
 0x288   :  { %v406_v58 = vmul.f32 1.442695, %v387_v51 }
 0x289   :  { %2239 = vpow2.f32 %v402_v26 }
 0x28d   :  { %2179 = vset.pattern.permute.xlu2 %v2534_v16  ;;  %509 = vperm.xlu1 %2178, %v504_v45   ;;  %v2238_v29 = vpop.eup %2237 }
 0x28e   :  { %2184 = vset.pattern.permute.xlu0 %v2584_v21  ;;  %v707_v34 = vmul.f32 0.0, %v2238_v29 }
 0x28f   :  { %v2240_v40 = vpop.eup %2239 }
 0x295   :  { %516 = vperm.xlu2 %2179, %v511_v53   ;;  %544 = vperm.xlu1 %2178, %v539_v54  }
 0x296   :  { %684 = vperm.xlu0 %2184, %v532_v35   ;;  %v434_v35 = vrot.slane %v2644_v6, 1 }
 0x298   :  { %v561_v44 = vperm.slane %v434_v35, 0 }
 0x29d   :  { %523 = vperm.xlu2 %2179, %v518_v57   ;;  %2181 = vset.pattern.permute.xlu1 %v2584_v21 }
 0x29e   :  { %654 = vperm.xlu0 %2184, %v497_v31   ;;  %v386_v31 = vmul.f32 %v354_v25, %v2607_v43 }
 0x2a0   :  { %v404_v38 = vmul.f32 1.442695, %v386_v31 }
 0x2a2   :  { %2241 = vpow2.f32 %v404_v38 }
 0x2a3   :  { %2243 = vpow2.f32 %v406_v58 }
 0x2a5   :  { %530 = vperm.xlu2 %2179, %v525_v59   ;;  %666 = vperm.xlu1 %2181, %v511_v53  }
 0x2a6   :  { %2187 = vset.pattern.permute.xlu0 %v2534_v16 }
 0x2a8   :  { %v2242_v60 = vpop.eup %2241 }
 0x2a9   :  { %v2244_v17 = vpop.eup %2243 }
 0x2ad   :  { %551 = vperm.xlu2 %2179, %v546_v4   ;;  %672 = vperm.xlu1 %2181, %v518_v57   ;;  %v356_v57 = vperm.slane %v341_v46, 0 }
 0x2af   :  { %v461_v18 = vpop.permute.xlu2 %460 }
 0x2b0   :  { %v593_v53 = vmul.f32 %v561_v44, %v461_v18  ;;  %v563_v18 = vperm.slane %v436_v9, 0 }
 0x2b5   :  { %2180 = vset.pattern.permute.xlu2 %v2584_v21  ;;  %690 = vperm.xlu1 %2181, %v539_v54   ;;  %v435_v54 = vrot.slane %v2644_v6, 2 }
 0x2b7   :  { %v468_v24 = vpop.permute.xlu2 %467  ;;  %v562_v62 = vperm.slane %v435_v54, 0 }
 0x2b9   :  { %v594_v8 = vmul.f32 %v562_v62, %v468_v24  ;;  %v344_v62 = vrot.slane %v2634_v12, 7 }
 0x2bb   :  { %v359_v12 = vperm.slane %v344_v62, 0 }
 0x2bd   :  { %660 = vperm.xlu2 %2180, %v504_v45   ;;  %696 = vperm.xlu1 %2181, %v546_v4   ;;  %v388_v4 = vmul.f32 %v356_v57, %v2607_v43 }
 0x2bf   :  { %v2655_v41 = vpop.permute.xlu2 %488  ;;  %v408_v14 = vmul.f32 1.442695, %v388_v4 }
 0x2c1   :  { %2245 = vpow2.f32 %v408_v14  ;;  %v347_v14 = vrot.slane %v2597_v36, 3 }
 0x2c5   :  { %2182 = vset.pattern.permute.xlu2 %v2534_v16  ;;  %2186 = vset.pattern.permute.xlu1 %v2534_v16 }
 0x2c7   :  { %v475_v42 = vpop.permute.xlu1 %474  ;;  %v2246_v29 = vpop.eup %2245 }
 0x2c8   :  { %v454_v27 = vpop.permute.xlu0 %453  ;;  %v595_v13 = vmul.f32 %v563_v18, %v475_v42 }
 0x2c9   :  { %v592_v30 = vmul.f32 %v560_v28, %v454_v27  ;;  %v410_v27 = vmul.f32 1.442695, %v389_v22  ;;  %v358_v28 = vperm.slane %v343_v23, 0  ;;  %v348_v22 = vrot.slane %v2597_v36, 4 }
 0x2cb   :  { %v2653_v37 = vadd.f32 %v707_v34, %v592_v30  ;;  %2247 = vpow2.f32 %v410_v27  ;;  %v390_v33 = vmul.f32 %v358_v28, %v2607_v43  ;;  %v360_v34 = vperm.slane %v2597_v36, 0 }
 0x2cc   :  { %v363_v27 = vperm.slane %v347_v14, 0 }
 0x2cd   :  { %558 = vperm.xlu2 %2182, %v553_v32   ;;  %v727_v45 = vmul.f32 %v2240_v40, %v2653_v37  ;;  %v438_v40 = vrot.slane %v2644_v6, 5  ;;  %v392_v46 = vmul.f32 %v360_v34, %v2607_v43 }
 0x2cf   :  { %v729_v56 = vadd.f32 %v727_v45, %v593_v53  ;;  %v2662_v61 = vpop.permute.xlu2 %624  ;;  %v482_v3 = vpop.permute.xlu1 %481  ;;  %v412_v45 = vmul.f32 1.442695, %v390_v33  ;;  %v346_v53 = vrot.slane %v2597_v36, 2  ;;  %v565_v57 = vperm.slane %v438_v40, 0 }
 0x2d0   :  { %v496_v26 = vpop.permute.xlu0 %495 }
 0x2d1   :  { %v747_v63 = vmul.f32 %v2242_v60, %v729_v56  ;;  %v2248_v51 = vpop.eup %2247  ;;  %2249 = vpow2.f32 %v412_v45  ;;  %v416_v60 = vmul.f32 1.442695, %v392_v46 }
 0x2d3   :  { %v2669_v10 = vadd.f32 %v747_v63, %v594_v8  ;;  %v597_v63 = vmul.f32 %v565_v57, %v2655_v41  ;;  %v362_v8 = vperm.slane %v346_v53, 0  ;;  %2251 = vpow2.f32 %v416_v60 }
 0x2d5   :  { %2183 = vset.pattern.permute.xlu2 %v2584_v21  ;;  %v767_v19 = vmul.f32 %v2244_v17, %v2669_v10  ;;  %v751_v28 = vmul.f32 %v2669_v10, %v2662_v61  ;;  %v395_v10 = vmul.f32 %v363_v27, %v2607_v43 }
 0x2d7   :  { %v2672_v20 = vpop.permute.xlu2 %642  ;;  %v769_v25 = vadd.f32 %v767_v19, %v595_v13  ;;  %v2250_v23 = vpop.eup %2249  ;;  %v394_v13 = vmul.f32 %v362_v8, %v2607_v43 }
 0x2d9   :  { %v787_v31 = vmul.f32 %v2246_v29, %v769_v25  ;;  %v566_v29 = vperm.slane %v439_v15, 0  ;;  %v420_v61 = vmul.f32 1.442695, %v394_v13  ;;  %v422_v15 = vmul.f32 1.442695, %v395_v10 }
 0x2db   :  { %v598_v40 = vmul.f32 %v566_v29, %v496_v26 }
 0x2dd   :  { %678 = vperm.xlu2 %2183, %v525_v59   ;;  %v437_v59 = vrot.slane %v2644_v6, 4 }
 0x2df   :  { %v613_v24 = vpop.permute.xlu1 %612  ;;  %v564_v30 = vperm.slane %v437_v59, 0  ;;  %v2679_v38 = vpop.permute.xlu2 %648 }
 0x2e0   :  { %v619_v44 = vpop.permute.xlu0 %618 }
 0x2e1   :  { %v596_v35 = vmul.f32 %v564_v30, %v482_v3  ;;  %v711_v3 = vmul.f32 %v2653_v37, %v613_v24  ;;  %v731_v4 = vmul.f32 %v729_v56, %v619_v44  ;;  %v2700_v56 = vmul.f32 %v2597_v36, %v2564_v2  ;;  %v2252_v44 = vpop.eup %2251 }
 0x2e3   :  { %v789_v42 = vadd.f32 %v787_v31, %v596_v35  ;;  %v713_v41 = vsel %vm278_vm4, %v711_v3, 0.0  ;;  %v733_v37 = vsel %vm278_vm4, %v731_v4, 0.0  ;;  %v440_v35 = vrot.slane %v2644_v6, 7 }
 0x2e4   :  { %v714_v33 = vrot.slane %v713_v41, 4  ;;  %v734_v34 = vrot.slane %v733_v37, 4  ;;  %v568_v26 = vperm.slane %v2700_v56, 0  ;;  %v708_v3 = vmul.f32 0.0, %v2252_v44 }
 0x2e5   :  { %702 = vperm.xlu2 %2183, %v553_v32   ;;  %v345_v32 = vrot.slane %v2597_v36, 1  ;;  %v807_v58 = vmul.f32 %v2248_v51, %v789_v42  ;;  %v441_v36 = vrot.slane %v2700_v56, 1 }
 0x2e6   :  { %v715_v53 = vadd.f32 %v714_v33, %v713_v41 }
 0x2e7   :  { %v631_v39 = vpop.permute.xlu1 %630  ;;  %v361_v54 = vperm.slane %v345_v32, 0  ;;  %v809_v17 = vadd.f32 %v807_v58, %v597_v63  ;;  %v391_v32 = vmul.f32 %v359_v12, %v2607_v43  ;;  %v444_v58 = vrot.slane %v2700_v56, 4 }
 0x2e8   :  { %v771_v24 = vmul.f32 %v769_v25, %v631_v39  ;;  %v442_v25 = vrot.slane %v2700_v56, 2  ;;  %v364_v39 = vperm.slane %v348_v22, 0  ;;  %v716_v22 = vrot.slane %v715_v53, 2 }
 0x2e9   :  { %v393_v9 = vmul.f32 %v361_v54, %v2607_v43  ;;  %v827_v30 = vmul.f32 %v2250_v23, %v809_v17  ;;  %v811_v51 = vmul.f32 %v809_v17, %v2672_v20  ;;  %v735_v54 = vadd.f32 %v734_v34, %v733_v37 }
 0x2ea   :  { %v773_v45 = vsel %vm278_vm4, %v771_v24, 0.0  ;;  %v396_v8 = vmul.f32 %v364_v39, %v2607_v43  ;;  %v569_v17 = vperm.slane %v441_v36, 0  ;;  %v414_v12 = vmul.f32 1.442695, %v391_v32 }
 0x2eb   :  { %v418_v59 = vmul.f32 1.442695, %v393_v9  ;;  %v2713_v46 = vadd.f32 %v827_v30, %v598_v40  ;;  %v774_v62 = vrot.slane %v773_v45, 4  ;;  %v813_v37 = vsel %vm278_vm4, %v811_v51, 0.0 }
 0x2ec   :  { %v736_v23 = vrot.slane %v735_v54, 2  ;;  %v443_v24 = vrot.slane %v2700_v56, 3  ;;  %v814_v30 = vrot.slane %v813_v37, 4  ;;  %v717_v32 = vadd.f32 %v716_v22, %v715_v53 }
 0x2ed   :  { %2185 = vset.pattern.permute.xlu2 %v2534_v16  ;;  %2253 = vpow2.f32 %v418_v59  ;;  %v831_v20 = vmul.f32 %v2713_v46, %v2679_v38  ;;  %v775_v13 = vadd.f32 %v774_v62, %v773_v45  ;;  %v570_v59 = vperm.slane %v442_v25, 0 }
 0x2ee   :  { %2255 = vpow2.f32 %v420_v61  ;;  %v424_v38 = vmul.f32 1.442695, %v396_v8  ;;  %v737_v40 = vadd.f32 %v736_v23, %v735_v54  ;;  %v567_v36 = vperm.slane %v440_v35, 0 }
 0x2ef   :  { %v2689_v5 = vpop.permute.xlu2 %516  ;;  %v637_v19 = vpop.permute.xlu1 %636  ;;  %2257 = vpow2.f32 %v422_v15  ;;  %v572_v39 = vperm.slane %v444_v58, 0  ;;  %v776_v44 = vrot.slane %v775_v13, 2  ;;  %v426_v61 = vmul.f32 1.442695, %v2611_v47 }
 0x2f0   :  { %v2694_v18 = vpop.permute.xlu0 %502  ;;  %v791_v31 = vmul.f32 %v789_v42, %v637_v19  ;;  %v753_v42 = vsel %vm278_vm4, %v751_v28, 0.0  ;;  %v601_v43 = vmul.f32 %v569_v17, %v2689_v5  ;;  %2259 = vpow2.f32 %v414_v12 }
 0x2f1   :  { %v754_v9 = vrot.slane %v753_v42, 4  ;;  %2261 = vpow2.f32 %v424_v38  ;;  %v815_v51 = vadd.f32 %v814_v30, %v813_v37  ;;  %v446_v53 = vrot.slane %v2700_v56, 6 }
 0x2f2   :  { %v793_v6 = vsel %vm278_vm4, %v791_v31, 0.0  ;;  %v833_v31 = vsel %vm278_vm4, %v831_v20, 0.0  ;;  %v718_v58 = vrot.slane %v717_v32, 1  ;;  %v599_v62 = vmul.f32 %v567_v36, %v2694_v18 }
 0x2f3   :  { %v794_v14 = vrot.slane %v793_v6, 4  ;;  %v2254_v41 = vpop.eup %2253  ;;  %v755_v28 = vadd.f32 %v754_v9, %v753_v42  ;;  %v834_v42 = vrot.slane %v833_v31, 4  ;;  %v777_v47 = vadd.f32 %v776_v44, %v775_v13 }
 0x2f4   :  { %v2256_v34 = vpop.eup %2255  ;;  %2263 = vpow2.f32 %v426_v61  ;;  %v816_v12 = vrot.slane %v815_v51, 2  ;;  %v430_v18 = vmul.f32 1.442695, %v2617_v50  ;;  %v574_v50 = vperm.slane %v446_v53, 0 }
 0x2f5   :  { %v795_v29 = vadd.f32 %v794_v14, %v793_v6  ;;  %v756_v10 = vrot.slane %v755_v28, 2  ;;  %v2258_v35 = vpop.eup %2257  ;;  %v835_v15 = vadd.f32 %v834_v42, %v833_v31 }
 0x2f7   :  { %v524_v57 = vpop.permute.xlu2 %523  ;;  %v796_v6 = vrot.slane %v795_v29, 2  ;;  %v757_v14 = vadd.f32 %v756_v10, %v755_v28 }
 0x2f8   :  { %v2719_v63 = vpop.permute.xlu0 %537  ;;  %v602_v5 = vmul.f32 %v570_v59, %v524_v57  ;;  %v738_v57 = vrot.slane %v737_v40, 1 }
 0x2f9   :  { %v797_v20 = vadd.f32 %v796_v6, %v795_v29  ;;  %v604_v59 = vmul.f32 %v572_v39, %v2719_v63  ;;  %v758_v28 = vrot.slane %v757_v14, 1  ;;  %v836_v29 = vrot.slane %v835_v15, 2 }
 0x2fa   :  { %v739_v23 = vadd.f32 %v738_v57, %v737_v40 }
 0x2fb   :  { %v798_v38 = vrot.slane %v797_v20, 1  ;;  %v759_v10 = vadd.f32 %v758_v28, %v757_v14  ;;  %v837_v42 = vadd.f32 %v836_v29, %v835_v15 }
 0x2fd   :  { %v799_v6 = vadd.f32 %v798_v38, %v797_v20 }
 0x2ff   :  { %v510_v60 = vpop.permute.xlu1 %509 }
 0x300   :  { %v600_v4 = vmul.f32 %v568_v26, %v510_v60  ;;  %v531_v26 = vpop.permute.xlu2 %530  ;;  %v571_v60 = vperm.slane %v443_v24, 0 }
 0x302   :  { %v2724_v19 = vadd.f32 %v708_v3, %v600_v4  ;;  %v428_v3 = vmul.f32 1.442695, %v2614_v49  ;;  %v2260_v4 = vpop.eup %2259  ;;  %v603_v8 = vmul.f32 %v571_v60, %v531_v26  ;;  %v719_v49 = vadd.f32 %v718_v58, %v717_v32 }
 0x303   :  { %v847_v17 = vmul.f32 %v2260_v4, %v2713_v46  ;;  %v2262_v22 = vpop.eup %2261 }
 0x304   :  { %v728_v27 = vmul.f32 %v2254_v41, %v2724_v19  ;;  %v445_v41 = vrot.slane %v2700_v56, 5  ;;  %2265 = vpow2.f32 %v428_v3  ;;  %v2264_v31 = vpop.eup %2263  ;;  %v868_v40 = vsel %vm867_vm12, %v719_v49, %v739_v23 }
 0x305   :  { %v849_v13 = vadd.f32 %v847_v17, %v599_v62  ;;  %2267 = vpow2.f32 %v430_v18  ;;  %v2758_v17 = vld [vmem:[%s3155_s9] ss:$0 sm:$0xff] }
 0x306   :  { %v2731_v33 = vadd.f32 %v728_v27, %v601_v43  ;;  %v778_v43 = vrot.slane %v777_v47, 1  ;;  %v573_v36 = vperm.slane %v445_v41, 0 }
 0x307   :  { %v545_v24 = vpop.permute.xlu1 %544 }
 0x308   :  { %v748_v25 = vmul.f32 %v2256_v34, %v2731_v33  ;;  %v2734_v45 = vpop.permute.xlu0 %684  ;;  %v817_v34 = vadd.f32 %v816_v12, %v815_v51  ;;  %v605_v63 = vmul.f32 %v573_v36, %v545_v24  ;;  %v552_v26 = vpop.permute.xlu2 %551 }
 0x309   :  { %v606_v62 = vmul.f32 %v574_v50, %v552_v26 }
 0x30a   :  { %v2738_v54 = vadd.f32 %v748_v25, %v602_v5  ;;  %v779_v5 = vadd.f32 %v778_v43, %v777_v47  ;;  %v2266_v61 = vpop.eup %2265  ;;  %v818_v51 = vrot.slane %v817_v34, 1 }
 0x30b   :  { %v2268_v47 = vpop.eup %2267 }
 0x30c   :  { %v768_v9 = vmul.f32 %v2258_v35, %v2738_v54  ;;  %v871_v35 = vsel %vm870_vm13, %v868_v40, %v759_v10  ;;  %v819_v14 = vadd.f32 %v818_v51, %v817_v34 }
 0x30d   :  { %v874_v57 = vsel %vm873_vm14, %v871_v35, %v779_v5 }
 0x30e   :  { %v2745_v37 = vadd.f32 %v768_v9, %v603_v8  ;;  %v838_v8 = vrot.slane %v837_v42, 1  ;;  %v877_v9 = vsel %vm3169_vm15, %v874_v57, %v799_v6 }
 0x30f   :  { %v880_v41 = vsel %vm3168_vm1, %v877_v9, %v819_v14 }
 0x310   :  { %v788_v27 = vmul.f32 %v2262_v22, %v2745_v37  ;;  %v655_v46 = vpop.permute.xlu0 %654  ;;  %v839_v22 = vadd.f32 %v838_v8, %v837_v42 }
 0x311   :  { %v851_v30 = vmul.f32 %v849_v13, %v655_v46  ;;  %v705_v13 = vmul.f32 %v2758_v17, %v2561_v1  ;;  %v447_v46 = vrot.slane %v2700_v56, 7 }
 0x312   :  { %v790_v32 = vadd.f32 %v788_v27, %v604_v59  ;;  %v883_v43 = vsel %vm3167_vm2, %v880_v41, %v839_v22 }
 0x313   :  { %v853_v44 = vsel %vm278_vm4, %v851_v30, 0.0  ;;  %v575_v38 = vperm.slane %v447_v46, 0 }
 0x314   :  { %v854_v39 = vrot.slane %v853_v44, 4  ;;  %v808_v25 = vmul.f32 %v2264_v31, %v790_v32  ;;  %v792_v56 = vmul.f32 %v790_v32, %v2734_v45 }
 0x316   :  { %v855_v60 = vadd.f32 %v854_v39, %v853_v44  ;;  %v810_v53 = vadd.f32 %v808_v25, %v605_v63 }
 0x317   :  { %v667_v58 = vpop.permute.xlu1 %666  ;;  %v661_v23 = vpop.permute.xlu2 %660 }
 0x318   :  { %v856_v3 = vrot.slane %v855_v60, 2  ;;  %v828_v4 = vmul.f32 %v2266_v61, %v810_v53  ;;  %v712_v28 = vmul.f32 %v2724_v19, %v661_v23  ;;  %v732_v29 = vmul.f32 %v2731_v33, %v667_v58 }
 0x319   :  { %v800_v33 = vsel %vm278_vm4, %v792_v56, 0.0 }
 0x31a   :  { %v857_v15 = vadd.f32 %v856_v3, %v855_v60  ;;  %v830_v20 = vadd.f32 %v828_v4, %v606_v62  ;;  %v720_v50 = vsel %vm278_vm4, %v712_v28, 0.0  ;;  %v740_v36 = vsel %vm278_vm4, %v732_v29, 0.0 }
 0x31b   :  { %v721_v63 = vrot.slane %v720_v50, 4  ;;  %v741_v19 = vrot.slane %v740_v36, 4  ;;  %v801_v6 = vrot.slane %v800_v33, 4 }
 0x31c   :  { %v858_v12 = vrot.slane %v857_v15, 1  ;;  %v848_v18 = vmul.f32 %v2268_v47, %v830_v20 }
 0x31d   :  { %v722_v10 = vadd.f32 %v721_v63, %v720_v50  ;;  %v742_v42 = vadd.f32 %v741_v19, %v740_v36 }
 0x31e   :  { %v859_v49 = vadd.f32 %v858_v12, %v857_v15 }
 0x31f   :  { %v673_v24 = vpop.permute.xlu1 %672  ;;  %v723_v32 = vrot.slane %v722_v10, 2  ;;  %v743_v35 = vrot.slane %v742_v42, 2 }
 0x320   :  { %v886_v59 = vsel %vm3166_vm3, %v883_v43, %v859_v49  ;;  %v752_v30 = vmul.f32 %v2738_v54, %v673_v24 }
 0x321   :  { %v888_v27 = vadd.f32 %v886_v59, %v705_v13  ;;  %v724_v47 = vadd.f32 %v723_v32, %v722_v10  ;;  %v744_v8 = vadd.f32 %v743_v35, %v742_v42  ;;  %v2055_v32 = vmul.f32 -1.442695, %v2508_v55 }
 0x322   :  { %v760_v44 = vsel %vm278_vm4, %v752_v30, 0.0  ;;  %v2056_v35 = vmul.f32 -1.442695, %v2523_v7  ;;  %v2150_v7 = vld [vmem:[%s3156_s10 + $0x8] sm:$0xff] }
 0x323   :  { %930 = vrot.lane.b32.xlu1 %v888_v27, %s2373_s0  ;;  %v761_v39 = vrot.slane %v760_v44, 4  ;;  %v745_v22 = vrot.slane %v744_v8, 1  ;;  %2269 = vpow2.f32 %v2055_v32  ;;  %v2153_v32 = vld [vmem:[%s3148_s2 + $0x10] sm:$0xff] }
 0x324   :  { %2271 = vpow2.f32 %v2056_v35 }
 0x325   :  { %v762_v26 = vadd.f32 %v761_v39, %v760_v44  ;;  %v746_v28 = vadd.f32 %v745_v22, %v744_v8  ;;  %v2149_v8 = vld [vmem:[%s3156_s10] sm:$0xff] }
 0x327   :  { %v559_v31 = vpop.permute.xlu2 %558  ;;  %v691_v34 = vpop.permute.xlu1 %690  ;;  %v763_v58 = vrot.slane %v762_v26, 2 }
 0x328   :  { %v607_v1 = vmul.f32 %v575_v38, %v559_v31  ;;  %v812_v5 = vmul.f32 %v810_v53, %v691_v34  ;;  %v802_v53 = vadd.f32 %v801_v6, %v800_v33 }
 0x329   :  { %v764_v14 = vadd.f32 %v763_v58, %v762_v26 }
 0x32a   :  { %v850_v40 = vadd.f32 %v848_v18, %v607_v1  ;;  %v820_v54 = vsel %vm278_vm4, %v812_v5, 0.0  ;;  %v803_v9 = vrot.slane %v802_v53, 2  ;;  %v725_v18 = vrot.slane %v724_v47, 1 }
 0x32b   :  { %v821_v60 = vrot.slane %v820_v54, 4  ;;  %v765_v24 = vrot.slane %v764_v14, 1 }
 0x32c   :  { %v804_v23 = vadd.f32 %v803_v9, %v802_v53  ;;  %v2270_v53 = vpop.eup %2269 }
 0x32d   :  { %v822_v57 = vadd.f32 %v821_v60, %v820_v54  ;;  %v766_v30 = vadd.f32 %v765_v24, %v764_v14  ;;  %v2272_v58 = vpop.eup %2271 }
 0x32e   :  { %v805_v38 = vrot.slane %v804_v23, 1 }
 0x32f   :  { %v697_v25 = vpop.permute.xlu1 %696 }
 0x330   :  { %v832_v61 = vmul.f32 %v830_v20, %v697_v25  ;;  %v823_v20 = vrot.slane %v822_v57, 2  ;;  %v806_v63 = vadd.f32 %v805_v38, %v804_v23 }
 0x332   :  { %v840_v51 = vsel %vm278_vm4, %v832_v61, 0.0  ;;  %v824_v13 = vadd.f32 %v823_v20, %v822_v57  ;;  %v896_v57 = vadd.f32 1.0, %v2270_v53 }
 0x333   :  { %v841_v45 = vrot.slane %v840_v51, 4 }
 0x334   :  { %v825_v34 = vrot.slane %v824_v13, 1  ;;  %2273 = vrcp.f32 %v896_v57  ;;  %vm903_vm7 = vweird.f32 %v896_v57 }
 0x335   :  { %v842_v3 = vadd.f32 %v841_v45, %v840_v51  ;;  %v706_v51 = vmul.f32 %v2758_v17, %v2564_v2  ;;  %v2152_v2 = vld [vmem:[%s3156_s10 + $0x18] sm:$0xff]  ;;  %v2151_v17 = vld [vmem:[%s3156_s10 + $0x10] sm:$0xff] }
 0x336   :  { %v826_v39 = vadd.f32 %v825_v34, %v824_v13  ;;  %983 = vmatpush.bf16.msra.mxu2 %v2152_v2  ;;  %v2205_v34 = vld [vmem:[%s3157_s11] ss:$0 sm:$0xff] }
 0x337   :  { %v679_v62 = vpop.permute.xlu2 %678  ;;  %v843_v41 = vrot.slane %v842_v3, 2 }
 0x338   :  { %v772_v4 = vmul.f32 %v2745_v37, %v679_v62  ;;  %v726_v37 = vadd.f32 %v725_v18, %v724_v47  ;;  %v897_v62 = vadd.f32 1.0, %v2272_v58  ;;  %v909_v18 = vand.u32 2147483648, %v896_v57 }
 0x339   :  { %v844_v27 = vadd.f32 %v843_v41, %v842_v3 }
 0x33a   :  { %v780_v15 = vsel %vm278_vm4, %v772_v4, 0.0  ;;  %v869_v56 = vsel %vm867_vm12, %v726_v37, %v746_v28  ;;  %2275 = vrcp.f32 %v897_v62  ;;  %v2274_v55 = vpop.eup %2273  ;;  %984 = vmatpush.bf16.msra.mxu2 %v2151_v17  ;;  %v924_v22 = vand.u32 2147483648, %v897_v62 }
 0x33b   :  { %v781_v12 = vrot.slane %v780_v15, 4  ;;  %v845_v36 = vrot.slane %v844_v27, 1  ;;  %v872_v19 = vsel %vm870_vm13, %v869_v56, %v766_v30  ;;  %v899_v4 = vmul.f32 %v2274_v55, %v896_v57 }
 0x33c   :  { %vm904_vm5 = vweird.f32 %v2274_v55  ;;  %v922_v23 = vand.u32 2147483647, %v897_v62 }
 0x33d   :  { %v782_v49 = vadd.f32 %v781_v12, %v780_v15  ;;  %v846_v25 = vadd.f32 %v845_v36, %v844_v27  ;;  %v900_v9 = vsub.f32 1.0, %v899_v4  ;;  %vm905_vm11 = vmor %vm903_vm7, %vm904_vm5  ;;  %v925_v27 = vor.u32 1.1754944e-38, %v924_v22  ;;  %v2343_v36 = vld [vmem:[%s3172_s28] sm:$0xff] }
 0x33e   :  { %985 = vmatpush.bf16.msra.mxu2 %v2150_v7 }
 0x33f   :  { %v783_v43 = vrot.slane %v782_v49, 2  ;;  %v703_v59 = vpop.permute.xlu2 %702  ;;  %v901_v15 = vmul.f32 %v2274_v55, %v900_v9 }
 0x340   :  { %v852_v46 = vmul.f32 %v850_v40, %v703_v59  ;;  %v2276_v3 = vpop.eup %2275 }
 0x341   :  { %v784_v29 = vadd.f32 %v783_v43, %v782_v49  ;;  %v914_v47 = vmul.f32 %v2276_v3, %v897_v62  ;;  %v902_v12 = vadd.f32 %v2274_v55, %v901_v15  ;;  %vm919_vm6 = vweird.f32 %v2276_v3 }
 0x342   :  { %v860_v31 = vsel %vm278_vm4, %v852_v46, 0.0  ;;  %986 = vmatpush.bf16.msra.mxu2 %v2149_v8  ;;  %v907_v49 = vand.u32 2147483647, %v896_v57  ;;  %v910_v43 = vor.u32 1.1754944e-38, %v909_v18 }
 0x343   :  { %v785_v1 = vrot.slane %v784_v29, 1  ;;  %v861_v50 = vrot.slane %v860_v31, 4  ;;  %v915_v14 = vsub.f32 1.0, %v914_v47  ;;  %v906_v24 = vsel %vm905_vm11, %v2274_v55, %v902_v12 }
 0x345   :  { %v786_v44 = vadd.f32 %v785_v1, %v784_v29  ;;  %v862_v5 = vadd.f32 %v861_v50, %v860_v31  ;;  %v916_v20 = vmul.f32 %v2276_v3, %v915_v14 }
 0x347   :  { %v875_v40 = vsel %vm873_vm14, %v872_v19, %v786_v44  ;;  %v863_v33 = vrot.slane %v862_v5, 2  ;;  %v917_v41 = vadd.f32 %v2276_v3, %v916_v20  ;;  %v2344_v19 = vld [vmem:[%s3172_s28 + $0x8] sm:$0xff] }
 0x348   :  { %v878_v54 = vsel %vm3169_vm15, %v875_v40, %v806_v63  ;;  %vm923_vm15 = vcmp.eq.f32.partialorder %v922_v23, 8.507059e+37 }
 0x349   :  { %v864_v61 = vadd.f32 %v863_v33, %v862_v5  ;;  %v881_v10 = vsel %vm3168_vm1, %v878_v54, %v826_v39  ;;  %vm908_vm1 = vcmp.eq.f32.partialorder %v907_v49, 8.507059e+37 }
 0x34a   :  { %v884_v42 = vsel %vm3167_vm2, %v881_v10, %v846_v25  ;;  %v911_v46 = vsel %vm908_vm1, %v910_v43, %v906_v24  ;;  %v2158_v24 = vld [vmem:[%s3152_s6 + $0x38] sm:$0xff]  ;;  %v2206_v43 = vld [vmem:[%s3149_s3 + $0x1] ss:$0 sm:$0xff] }
 0x34b   :  { %v865_v6 = vrot.slane %v864_v61, 1  ;;  %1197 = vmatpush.bf16.msrb.mxu0 %v2158_v24 }
 0x34d   :  { %v866_v26 = vadd.f32 %v865_v6, %v864_v61 }
 0x34f   :  { %v887_v60 = vsel %vm3166_vm3, %v884_v42, %v866_v26  ;;  %vm918_vm3 = vweird.f32 %v897_v62 }
 0x350   :  { %v889_v45 = vadd.f32 %v887_v60, %v706_v51  ;;  %vm920_vm2 = vmor %vm918_vm3, %vm919_vm6 }
 0x351   :  { %v921_v13 = vsel %vm920_vm2, %v2276_v3, %v917_v41 }
 0x352   :  { %932 = vrot.lane.b32.xlu0 %v889_v45, %s2373_s0  ;;  %v926_v37 = vsel %vm923_vm15, %v925_v27, %v921_v13  ;;  %v2154_v45 = vld [vmem:[%s3148_s2 + $0x18] sm:$0xff]  ;;  %v2157_v13 = vld [vmem:[%s3152_s6 + $0x30] sm:$0xff]  ;;  %v2087_v27 = vld [vmem:[%s3150_s4 + $0x4] sm:$0xf]  ;;  %s2376_s4 = smov 128  }
 0x353   :  { %1068 = vmatpush.bf16.msra.mxu3 %v2154_v45  ;;  %1198 = vmatpush.bf16.msrb.mxu0 %v2157_v13 }
 0x357   :  { %1069 = vmatpush.bf16.msra.mxu3 %v2153_v32 }
 0x395   :  { %v931_v59 = vpop.permute.xlu1 %930 }
 0x396   :  { %v936_v29 = vmul.f32 %v931_v59, %v911_v46  ;;  %v2156_v59 = vld [vmem:[%s3152_s6 + $0x28] sm:$0xff] }
 0x397   :  { %1199 = vmatpush.bf16.msrb.mxu0 %v2156_v59 }
 0x3c4   :  { %v933_v28 = vpop.permute.xlu0 %932 }
 0x3c5   :  { %v937_v38 = vmul.f32 %v933_v28, %v926_v37  ;;  %v2155_v28 = vld [vmem:[%s3152_s6 + $0x20] sm:$0xff] }
 0x3c6   :  { %1200 = vmatpush.bf16.msrb.mxu0 %v2155_v28 }
 0x3c7   :  { %v938_v30 = vpack.c.bf16 %v937_v38, %v936_v29  ;;  %v1078_v29 = vperm.slane %v2087_v27, 3  ;;  %v1085_v38 = vperm.slane %v2087_v27, 0 }
 0x3c9   :  { %950 = vrot.lane.b32.xlu2 %v938_v30, %s2373_s0 }
 0x423   :  { %v951_v31 = vpop.permute.xlu2 %950 }
 0x424   :  { %2073 = vmatmul.msk.bf16.vlgmr.msra.gmra.mxu2 %vm278_vm4, %v951_v31 }
 0x4a7   :  { %v988_v1 = vpop.f32.mrf.mxu2 }
 0x4a8   :  { %v989_v50 = vadd.f32 %v2205_v34, %v988_v1  ;;  %v1094_v1 = vperm.slane %v2087_v27, 1 }
 0x4aa   :  { %v2812_v56 = vadd.f32 %v2343_v36, %v989_v50 }
 0x4ac   :  { %v995_v44 = vsel %vm65_vm0, %v2812_v56, 0.0 }
 0x4ad   :  { %996 = vadd.xlane.f32.xlu1 %v995_v44 }
 0x4af   :  { %v990_v5 = vpop.f32.mrf.mxu2 }
 0x4b0   :  { %v991_v63 = vadd.f32 %v2205_v34, %v990_v5 }
 0x4b2   :  { %v2819_v39 = vadd.f32 %v2344_v19, %v991_v63  ;;  %v1103_v63 = vperm.slane %v2087_v27, 2 }
 0x4b4   :  { %v998_v40 = vsel %vm65_vm0, %v2819_v39, 0.0 }
 0x4b5   :  { %999 = vadd.xlane.f32.xlu0 %v998_v40 }
 0x520   :  { %v997_v33 = vpop.xlane.xlu1 %996 }
 0x521   :  { %v1001_v25 = vmul.f32 %v997_v33, %v2479_v11 }
 0x523   :  { %v1003_v54 = vsub.f32 %v2812_v56, %v1001_v25 }
 0x525   :  { %v1005_v61 = vmul.f32 %v1003_v54, %v1003_v54 }
 0x527   :  { %v1007_v10 = vsel %vm65_vm0, %v1005_v61, 0.0 }
 0x528   :  { %v1000_v42 = vpop.xlane.xlu0 %999  ;;  %1008 = vadd.xlane.f32.xlu2 %v1007_v10 }
 0x529   :  { %v1002_v6 = vmul.f32 %v1000_v42, %v2479_v11 }
 0x52b   :  { %v1004_v26 = vsub.f32 %v2819_v39, %v1002_v6 }
 0x52d   :  { %v1006_v51 = vmul.f32 %v1004_v26, %v1004_v26 }
 0x52f   :  { %v1010_v60 = vsel %vm65_vm0, %v1006_v51, 0.0  ;;  %v2207_v51 = vld [vmem:[%s3151_s5 + $0x1] ss:$0 sm:$0xff]  ;;  %s2377_s5 = smov 8  }
 0x530   :  { %1011 = vadd.xlane.f32.xlu1 %v1010_v60 }
 0x59b   :  { %v1009_v35 = vpop.xlane.xlu2 %1008 }
 0x59c   :  { %v1013_v53 = vmul.f32 %v1009_v35, %v2479_v11 }
 0x59e   :  { %v1015_v58 = vadd.f32 1e-05, %v1013_v53 }
 0x5a0   :  { %2277 = vrsqrt.f32 %v1015_v58  ;;  %vm1023_vm1 = vweird.f32 %v1015_v58 }
 0x5a3   :  { %v1012_v57 = vpop.xlane.xlu1 %1011 }
 0x5a4   :  { %v1014_v62 = vmul.f32 %v1012_v57, %v2479_v11 }
 0x5a6   :  { %v2278_v2 = vpop.eup %2277  ;;  %v1016_v17 = vadd.f32 1e-05, %v1014_v62 }
 0x5a7   :  { %v1018_v55 = vmul.f32 %v2278_v2, %v1015_v58  ;;  %vm1024_vm15 = vweird.f32 %v2278_v2 }
 0x5a8   :  { %2279 = vrsqrt.f32 %v1016_v17  ;;  %vm1025_vm3 = vmor %vm1023_vm1, %vm1024_vm15  ;;  %vm1033_vm5 = vweird.f32 %v1016_v17 }
 0x5a9   :  { %v1019_v3 = vmul.f32 %v2278_v2, %v1018_v55 }
 0x5ab   :  { %v1020_v7 = vmul.f32 0.5, %v1019_v3 }
 0x5ad   :  { %v1021_v47 = vsub.f32 1.5, %v1020_v7 }
 0x5ae   :  { %v2280_v4 = vpop.eup %2279 }
 0x5af   :  { %v1028_v8 = vmul.f32 %v2280_v4, %v1016_v17  ;;  %v1022_v14 = vmul.f32 %v2278_v2, %v1021_v47  ;;  %vm1034_vm2 = vweird.f32 %v2280_v4 }
 0x5b0   :  { %vm1035_vm6 = vmor %vm1033_vm5, %vm1034_vm2 }
 0x5b1   :  { %v1029_v9 = vmul.f32 %v2280_v4, %v1028_v8  ;;  %v1026_v41 = vsel %vm1025_vm3, %v2278_v2, %v1022_v14 }
 0x5b2   :  { %v1037_v22 = vmul.f32 %v1026_v41, %v1003_v54 }
 0x5b3   :  { %v1030_v15 = vmul.f32 0.5, %v1029_v9 }
 0x5b5   :  { %v1031_v20 = vsub.f32 1.5, %v1030_v15 }
 0x5b7   :  { %v1032_v12 = vmul.f32 %v2280_v4, %v1031_v20 }
 0x5b9   :  { %v1036_v18 = vsel %vm1035_vm6, %v2280_v4, %v1032_v12 }
 0x5ba   :  { %v1038_v49 = vmul.f32 %v1036_v18, %v1004_v26 }
 0x5bc   :  { %v1039_v23 = vpack.c.bf16 %v1038_v49, %v1037_v22 }
 0x5be   :  { %2086 = vmatmul.msk.bf16.vlgmr.msra.gmra.mxu3 %vm65_vm0, %v1039_v23 }
 0x641   :  { %v1071_v46 = vpop.f32.mrf.mxu3 }
 0x642   :  { %v2853_v37 = vadd.f32 %v2206_v43, %v1071_v46 }
 0x644   :  { %v1081_v30 = vrot.slane %v2853_v37, 5  ;;  %v1090_v31 = vrot.slane %v2853_v37, 6  ;;  %v1099_v34 = vrot.slane %v2853_v37, 7  ;;  %v1079_v44 = vmul.f32 %v1078_v29, %v2853_v37 }
 0x646   :  { %v1083_v50 = vsel %vm159_vm8, %v1081_v30, 0.0  ;;  %v1092_v36 = vsel %vm169_vm9, %v1090_v31, 0.0  ;;  %v1101_v19 = vsel %vm179_vm10, %v1099_v34, 0.0 }
 0x647   :  { %v1086_v5 = vmul.f32 %v1085_v38, %v1083_v50  ;;  %v1095_v33 = vmul.f32 %v1094_v1, %v1092_v36  ;;  %v1104_v10 = vmul.f32 %v1103_v63, %v1101_v19 }
 0x649   :  { %v1088_v40 = vadd.f32 %v1086_v5, %v1079_v44  ;;  %v1073_v25 = vpop.f32.mrf.mxu3 }
 0x64a   :  { %v2868_v54 = vadd.f32 %v2206_v43, %v1073_v25 }
 0x64b   :  { %v1097_v61 = vadd.f32 %v1095_v33, %v1088_v40 }
 0x64c   :  { %v1082_v42 = vrot.slane %v2868_v54, 5  ;;  %v1091_v6 = vrot.slane %v2868_v54, 6  ;;  %v1100_v26 = vrot.slane %v2868_v54, 7  ;;  %v1080_v35 = vmul.f32 %v1078_v29, %v2868_v54 }
 0x64d   :  { %v1106_v60 = vadd.f32 %v1104_v10, %v1097_v61 }
 0x64e   :  { %v1084_v45 = vsel %vm159_vm8, %v1082_v42, 0.0  ;;  %v1093_v32 = vsel %vm169_vm9, %v1091_v6, 0.0  ;;  %v1102_v58 = vsel %vm179_vm10, %v1100_v26, 0.0 }
 0x64f   :  { %v1087_v53 = vmul.f32 %v1085_v38, %v1084_v45  ;;  %v1110_v57 = vadd.f32 %v2207_v51, %v1106_v60  ;;  %v1096_v2 = vmul.f32 %v1094_v1, %v1093_v32  ;;  %v1105_v3 = vmul.f32 %v1103_v63, %v1102_v58  ;;  %v2208_v63 = vld [vmem:[%s3153_s7 + $0x1] ss:$0 sm:$0xff] }
 0x651   :  { %v1089_v62 = vadd.f32 %v1087_v53, %v1080_v35  ;;  %v2088_v17 = vmul.f32 -1.442695, %v1110_v57 }
 0x653   :  { %v1098_v55 = vadd.f32 %v1096_v2, %v1089_v62  ;;  %2281 = vpow2.f32 %v2088_v17 }
 0x655   :  { %v1107_v7 = vadd.f32 %v1105_v3, %v1098_v55 }
 0x657   :  { %v1111_v4 = vadd.f32 %v2207_v51, %v1107_v7 }
 0x659   :  { %v2089_v47 = vmul.f32 -1.442695, %v1111_v4  ;;  %v2282_v8 = vpop.eup %2281 }
 0x65a   :  { %v1118_v9 = vadd.f32 1.0, %v2282_v8 }
 0x65b   :  { %2283 = vpow2.f32 %v2089_v47 }
 0x65c   :  { %2285 = vrcp.f32 %v1118_v9  ;;  %v1131_v49 = vand.u32 2147483648, %v1118_v9  ;;  %vm1125_vm9 = vweird.f32 %v1118_v9  ;;  %v1129_v23 = vand.u32 2147483647, %v1118_v9 }
 0x65e   :  { %v1132_v59 = vor.u32 1.1754944e-38, %v1131_v49  ;;  %vm1130_vm7 = vcmp.eq.f32.partialorder %v1129_v23, 8.507059e+37  ;;  %v2946_v49 = vld [vmem:[%s3154_s8 + $0x8] sm:$0xff] }
 0x661   :  { %v2284_v14 = vpop.eup %2283 }
 0x662   :  { %v1119_v15 = vadd.f32 1.0, %v2284_v14  ;;  %v2286_v20 = vpop.eup %2285 }
 0x663   :  { %v1121_v12 = vmul.f32 %v2286_v20, %v1118_v9  ;;  %vm1126_vm8 = vweird.f32 %v2286_v20 }
 0x664   :  { %2287 = vrcp.f32 %v1119_v15  ;;  %vm1127_vm10 = vmor %vm1125_vm9, %vm1126_vm8  ;;  %v1146_v27 = vand.u32 2147483648, %v1119_v15  ;;  %v1144_v28 = vand.u32 2147483647, %v1119_v15  ;;  %vm1140_vm15 = vweird.f32 %v1119_v15 }
 0x665   :  { %v1122_v52 = vsub.f32 1.0, %v1121_v12  ;;  %vm3174_vm9 = vcmask 1043456  }
 0x666   :  { %v1147_v30 = vor.u32 1.1754944e-38, %v1146_v27  ;;  %vm1145_vm2 = vcmp.eq.f32.partialorder %v1144_v28, 8.507059e+37 }
 0x667   :  { %v1123_v41 = vmul.f32 %v2286_v20, %v1122_v52 }
 0x669   :  { %v1124_v22 = vadd.f32 %v2286_v20, %v1123_v41 }
 0x66a   :  { %v2288_v18 = vpop.eup %2287 }
 0x66b   :  { %v1136_v24 = vmul.f32 %v2288_v18, %v1119_v15  ;;  %v1128_v13 = vsel %vm1127_vm10, %v2286_v20, %v1124_v22  ;;  %vm1141_vm11 = vweird.f32 %v2288_v18  ;;  %vm3175_vm10 = vcmask 1044480  }
 0x66c   :  { %v1133_v29 = vsel %vm1130_vm7, %v1132_v59, %v1128_v13  ;;  %vm1142_vm1 = vmor %vm1140_vm15, %vm1141_vm11  ;;  %vm3176_vm7 = vcmask 1045504   ;;  %vm3177_vm11 = vcmask 1046528  }
 0x66d   :  { %v1137_v43 = vsub.f32 1.0, %v1136_v24  ;;  %v1150_v34 = vmul.f32 %v1133_v29, %v1110_v57  ;;  %vm3178_vm15 = vmmov %vm3174_vm9 }
 0x66f   :  { %v1138_v46 = vmul.f32 %v2288_v18, %v1137_v43  ;;  %v2884_v36 = vmul.f32 %v1150_v34, %v2556_v48 }
 0x671   :  { %v1139_v38 = vadd.f32 %v2288_v18, %v1138_v46 }
 0x673   :  { %v1143_v31 = vsel %vm1142_vm1, %v2288_v18, %v1139_v38  ;;  %vm3180_vm1 = vmmov %vm3176_vm7 }
 0x674   :  { %v1148_v1 = vsel %vm1145_vm2, %v1147_v30, %v1143_v31 }
 0x675   :  { %v1151_v50 = vmul.f32 %v1148_v1, %v1111_v4 }
 0x677   :  { %v2887_v44 = vmul.f32 %v1151_v50, %v2558_v0 }
 0x679   :  { %v1154_v5 = vpack.c.bf16 %v2887_v44, %v2884_v36 }
 0x67b   :  { %2114 = vmatmul.msk.bf16.vlgmr.msrb.gmra.mxu0 %vm278_vm4, %v1154_v5 }
 0x6f8   :  { %v1202_v19 = vpop.f32.mrf.mxu0 }
 0x6f9   :  { %v2895_v40 = vadd.f32 %v2208_v63, %v1202_v19 }
 0x6fb   :  { %v1388_v33 = vperm.slane %v2895_v40, 4  ;;  %v1367_v48 = vperm.slane %v2895_v40, 1  ;;  %v1360_v25 = vperm.slane %v2895_v40, 0  ;;  %v1374_v0 = vperm.slane %v2895_v40, 2 }
 0x6fc   :  { %v1395_v61 = vperm.slane %v2895_v40, 5  ;;  %v1381_v10 = vperm.slane %v2895_v40, 3  ;;  %v1402_v42 = vperm.slane %v2895_v40, 6  ;;  %v1216_v26 = vand.u32 2147483647, %v2895_v40 }
 0x6fd   :  { %1393 = vperm.xlu0 %2187, %v1388_v33   ;;  %1372 = vperm.xlu1 %2186, %v1367_v48   ;;  %v1409_v53 = vperm.slane %v2895_v40, 7  ;;  %v1210_v20 = vmax.f32 %v2895_v40, 0.0  ;;  %vm1212_vm5 = vcmp.ne.f32.partialorder %v2895_v40, %v2895_v40 }
 0x6fe   :  { %1365 = vperm.xlu2 %2185, %v1360_v25   ;;  %v1218_v45 = vsub.f32 0.0, %v1216_v26 }
 0x700   :  { %v1204_v6 = vpop.f32.mrf.mxu0  ;;  %v1220_v35 = vmul.f32 1.442695, %v1218_v45 }
 0x701   :  { %v2910_v51 = vadd.f32 %v2208_v63, %v1204_v6 }
 0x702   :  { %2289 = vpow2.f32 %v1220_v35 }
 0x703   :  { %v1416_v60 = vperm.slane %v2910_v51, 0  ;;  %v1423_v32 = vperm.slane %v2910_v51, 1  ;;  %v1451_v58 = vperm.slane %v2910_v51, 5  ;;  %v1430_v57 = vperm.slane %v2910_v51, 2 }
 0x704   :  { %v1437_v2 = vperm.slane %v2910_v51, 3  ;;  %v1458_v3 = vperm.slane %v2910_v51, 6  ;;  %v1444_v9 = vperm.slane %v2910_v51, 4  ;;  %v1465_v52 = vperm.slane %v2910_v51, 7 }
 0x705   :  { %2188 = vset.pattern.permute.xlu0 %v2584_v21  ;;  %1379 = vperm.xlu1 %2186, %v1374_v0   ;;  %v1217_v31 = vand.u32 2147483647, %v2910_v51  ;;  %vm1213_vm8 = vcmp.ne.f32.partialorder %v2910_v51, %v2910_v51 }
 0x706   :  { %1400 = vperm.xlu2 %2185, %v1395_v61  }
 0x707   :  { %v1219_v50 = vsub.f32 0.0, %v1217_v31 }
 0x708   :  { %v2290_v62 = vpop.eup %2289 }
 0x709   :  { %v1224_v17 = vadd.f32 1.0, %v2290_v62  ;;  %v1227_v55 = vmul.f32 -0.5, %v2290_v62  ;;  %v1230_v47 = vand.u32 2147483647, %v2290_v62 }
 0x70b   :  { %2291 = vlog2.f32 %v1224_v17  ;;  %v1228_v4 = vadd.f32 1.0, %v1227_v55  ;;  %vm1231_vm3 = vcmp.lt.f32.partialorder %v1230_v47, 0.0004427343 }
 0x70d   :  { %1386 = vperm.xlu1 %2186, %v1381_v10   ;;  %1524 = vperm.xlu0 %2188, %v1360_v25   ;;  %v1229_v14 = vmul.f32 %v2290_v62, %v1228_v4  ;;  %v1222_v25 = vmul.f32 1.442695, %v1219_v50 }
 0x70e   :  { %2190 = vset.pattern.permute.xlu2 %v2584_v21 }
 0x711   :  { %v2292_v7 = vpop.eup %2291 }
 0x712   :  { %v1226_v8 = vmul.f32 0.6931472, %v2292_v7 }
 0x714   :  { %v1232_v15 = vsel %vm1231_vm3, %v1229_v14, %v1226_v8 }
 0x715   :  { %1407 = vperm.xlu1 %2186, %v1402_v42   ;;  %1542 = vperm.xlu0 %2188, %v1381_v10   ;;  %v1242_v12 = vadd.f32 %v1232_v15, %v1210_v20 }
 0x716   :  { %1536 = vperm.xlu2 %2190, %v1374_v0  }
 0x717   :  { %v2936_v41 = vsel %vm1212_vm5, %v2895_v40, %v1242_v12 }
 0x718   :  { %v2940_v18 = vmul.f32 %v2936_v41, %v2884_v36  ;;  %v1264_v22 = vperm.slane %v2936_v41, 0  ;;  %v1250_v43 = vrot.slane %v2936_v41, 1  ;;  %v1251_v38 = vrot.slane %v2936_v41, 2 }
 0x719   :  { %v1252_v19 = vrot.slane %v2936_v41, 3  ;;  %v1253_v10 = vrot.slane %v2936_v41, 4  ;;  %v1254_v62 = vrot.slane %v2936_v41, 5  ;;  %v1255_v7 = vrot.slane %v2936_v41, 6 }
 0x71a   :  { %v1296_v24 = vmul.f32 %v2946_v49, %v1264_v22  ;;  %v1350_v13 = vrot.slane %v2940_v18, 5  ;;  %v1265_v46 = vperm.slane %v1250_v43, 0  ;;  %v1266_v34 = vperm.slane %v1251_v38, 0 }
 0x71b   :  { %v1268_v35 = vperm.slane %v1253_v10, 0  ;;  %v1347_v17 = vrot.slane %v2940_v18, 2  ;;  %v1269_v47 = vperm.slane %v1254_v62, 0  ;;  %v1270_v22 = vperm.slane %v1255_v7, 0 }
 0x71c   :  { %v1312_v59 = vmul.f32 1.442695, %v1296_v24  ;;  %v1477_v27 = vperm.slane %v1350_v13, 0  ;;  %v1297_v30 = vmul.f32 %v2946_v49, %v1265_v46  ;;  %v1298_v63 = vmul.f32 %v2946_v49, %v1266_v34 }
 0x71d   :  { %2189 = vset.pattern.permute.xlu1 %v2584_v21  ;;  %1560 = vperm.xlu0 %2188, %v1402_v42   ;;  %v1267_v42 = vperm.slane %v1252_v19, 0  ;;  %v1256_v24 = vrot.slane %v2936_v41, 7  ;;  %v1348_v43 = vrot.slane %v2940_v18, 3  ;;  %v1302_v46 = vmul.f32 %v2946_v49, %v1270_v22 }
 0x71e   :  { %1548 = vperm.xlu2 %2190, %v1388_v33   ;;  %2293 = vpow2.f32 %v1312_v59  ;;  %v1314_v1 = vmul.f32 1.442695, %v1297_v30  ;;  %v1349_v30 = vrot.slane %v2940_v18, 4 }
 0x71f   :  { %v1271_v38 = vperm.slane %v1256_v24, 0  ;;  %v1475_v31 = vperm.slane %v1348_v43, 0 }
 0x720   :  { %2295 = vpow2.f32 %v1314_v1 }
 0x721   :  { %2297 = vpow2.f32 %v1222_v25  ;;  %v1303_v19 = vmul.f32 %v2946_v49, %v1271_v38 }
 0x724   :  { %v2294_v5 = vpop.eup %2293 }
 0x725   :  { %1530 = vperm.xlu1 %2189, %v1367_v48   ;;  %2193 = vset.pattern.permute.xlu0 %v2534_v16  ;;  %v1346_v48 = vrot.slane %v2940_v18, 1  ;;  %v1619_v0 = vmul.f32 0.0, %v2294_v5 }
 0x726   :  { %2194 = vset.pattern.permute.xlu2 %v2534_v16 }
 0x727   :  { %v1473_v26 = vperm.slane %v1346_v48, 0 }
 0x72d   :  { %2191 = vset.pattern.permute.xlu1 %v2534_v16  ;;  %1421 = vperm.xlu0 %2193, %v1416_v60  }
 0x72e   :  { %1428 = vperm.xlu2 %2194, %v1423_v32  }
 0x735   :  { %1414 = vperm.xlu1 %2191, %v1409_v53   ;;  %1456 = vperm.xlu0 %2193, %v1451_v58  }
 0x736   :  { %1435 = vperm.xlu2 %2194, %v1430_v57  }
 0x73d   :  { %2192 = vset.pattern.permute.xlu1 %v2584_v21  ;;  %2198 = vset.pattern.permute.xlu0 %v2584_v21 }
 0x73e   :  { %1442 = vperm.xlu2 %2194, %v1437_v2  }
 0x745   :  { %1554 = vperm.xlu1 %2192, %v1395_v61   ;;  %1584 = vperm.xlu0 %2198, %v1430_v57   ;;  %v1316_v61 = vmul.f32 1.442695, %v1298_v63  ;;  %v1299_v57 = vmul.f32 %v2946_v49, %v1267_v42  ;;  %v1324_v63 = vmul.f32 1.442695, %v1302_v46  ;;  %v1351_v42 = vrot.slane %v2940_v18, 6 }
 0x746   :  { %1463 = vperm.xlu2 %2194, %v1458_v3  }
 0x747   :  { %2299 = vpow2.f32 %v1316_v61  ;;  %v1318_v4 = vmul.f32 1.442695, %v1299_v57  ;;  %v1478_v7 = vperm.slane %v1351_v42, 0 }
 0x749   :  { %2301 = vpow2.f32 %v1318_v4 }
 0x74d   :  { %2195 = vset.pattern.permute.xlu1 %v2534_v16  ;;  %1596 = vperm.xlu0 %2198, %v1444_v9  }
 0x74e   :  { %2196 = vset.pattern.permute.xlu2 %v2584_v21 }
 0x755   :  { %1449 = vperm.xlu1 %2195, %v1444_v9   ;;  %1614 = vperm.xlu0 %2198, %v1465_v52   ;;  %v1474_v9 = vperm.slane %v1347_v17, 0 }
 0x756   :  { %1572 = vperm.xlu2 %2196, %v1416_v60  }
 0x758   :  { %v1366_v23 = vpop.permute.xlu2 %1365 }
 0x75d   :  { %2197 = vset.pattern.permute.xlu1 %v2584_v21 }
 0x75e   :  { %2199 = vset.pattern.permute.xlu2 %v2534_v16  ;;  %v1472_v16 = vperm.slane %v2940_v18, 0 }
 0x760   :  { %v1401_v28 = vpop.permute.xlu2 %1400  ;;  %v1504_v33 = vmul.f32 %v1472_v16, %v1366_v23 }
 0x761   :  { %v2953_v29 = vmul.f32 %v1477_v27, %v1401_v28 }
 0x762   :  { %v2963_v6 = vadd.f32 %v1619_v0, %v1504_v33  ;;  %v1476_v33 = vperm.slane %v1349_v30, 0 }
 0x765   :  { %1578 = vperm.xlu1 %2197, %v1423_v32   ;;  %v2296_v32 = vpop.eup %2295 }
 0x766   :  { %1470 = vperm.xlu2 %2199, %v1465_v52   ;;  %v2298_v8 = vpop.eup %2297 }
 0x767   :  { %v2300_v14 = vpop.eup %2299  ;;  %v1233_v59 = vadd.f32 1.0, %v2298_v8  ;;  %v1236_v5 = vmul.f32 -0.5, %v2298_v8 }
 0x768   :  { %v2302_v34 = vpop.eup %2301 }
 0x769   :  { %v1237_v40 = vadd.f32 1.0, %v1236_v5 }
 0x76d   :  { %1590 = vperm.xlu1 %2197, %v1437_v2   ;;  %v1639_v2 = vmul.f32 %v2296_v32, %v2963_v6 }
 0x76e   :  { %2200 = vset.pattern.permute.xlu2 %v2584_v21  ;;  %v1300_v21 = vmul.f32 %v2946_v49, %v1268_v35 }
 0x76f   :  { %v1373_v60 = vpop.permute.xlu1 %1372  ;;  %v1394_v15 = vpop.permute.xlu0 %1393 }
 0x770   :  { %v1505_v45 = vmul.f32 %v1473_v26, %v1373_v60  ;;  %v1320_v23 = vmul.f32 1.442695, %v1300_v21  ;;  %v1537_v27 = vpop.permute.xlu2 %1536  ;;  %v1508_v61 = vmul.f32 %v1476_v33, %v1394_v15  ;;  %v1239_v60 = vand.u32 2147483647, %v2298_v8 }
 0x772   :  { %v2970_v55 = vadd.f32 %v1639_v2, %v1505_v45  ;;  %2303 = vpow2.f32 %v1320_v23  ;;  %v1238_v2 = vmul.f32 %v2298_v8, %v1237_v40  ;;  %vm1240_vm6 = vcmp.lt.f32.partialorder %v1239_v60, 0.0004427343 }
 0x773   :  { %2305 = vlog2.f32 %v1233_v59 }
 0x774   :  { %v1659_v52 = vmul.f32 %v2300_v14, %v2970_v55 }
 0x775   :  { %1608 = vperm.xlu1 %2197, %v1458_v3   ;;  %v1301_v3 = vmul.f32 %v2946_v49, %v1269_v47 }
 0x776   :  { %1602 = vperm.xlu2 %2200, %v1451_v58  }
 0x777   :  { %v1380_v20 = vpop.permute.xlu1 %1379  ;;  %v1322_v28 = vmul.f32 1.442695, %v1301_v3 }
 0x778   :  { %v1506_v12 = vmul.f32 %v1474_v9, %v1380_v20  ;;  %v2304_v25 = vpop.eup %2303  ;;  %v1549_v9 = vpop.permute.xlu2 %1548  ;;  %v1211_v20 = vmax.f32 %v2910_v51, 0.0 }
 0x779   :  { %2307 = vpow2.f32 %v1322_v28  ;;  %v2306_v0 = vpop.eup %2305 }
 0x77a   :  { %v1661_v13 = vadd.f32 %v1659_v52, %v1506_v12  ;;  %2309 = vpow2.f32 %v1324_v63  ;;  %v1235_v32 = vmul.f32 0.6931472, %v2306_v0 }
 0x77c   :  { %v1663_v58 = vmul.f32 %v1661_v13, %v1537_v27  ;;  %v1679_v16 = vmul.f32 %v2302_v34, %v1661_v13  ;;  %v1241_v47 = vsel %vm1240_vm6, %v1238_v2, %v1235_v32 }
 0x77d   :  { %v1243_v22 = vadd.f32 %v1241_v47, %v1211_v20 }
 0x77e   :  { %1566 = vperm.xlu2 %2200, %v1409_v53   ;;  %v1326_v53 = vmul.f32 1.442695, %v1303_v19  ;;  %v1665_v3 = vsel %vm278_vm4, %v1663_v58, 0.0 }
 0x77f   :  { %v1387_v41 = vpop.permute.xlu1 %1386  ;;  %v1525_v1 = vpop.permute.xlu0 %1524  ;;  %v1666_v59 = vrot.slane %v1665_v3, 4  ;;  %v3006_v27 = vsel %vm1213_vm8, %v2910_v51, %v1243_v22 }
 0x780   :  { %v1507_v50 = vmul.f32 %v1475_v31, %v1387_v41  ;;  %v2308_v45 = vpop.eup %2307  ;;  %2311 = vpow2.f32 %v1326_v53  ;;  %v1623_v17 = vmul.f32 %v2963_v6, %v1525_v1  ;;  %v1272_v58 = vperm.slane %v3006_v27, 0 }
 0x781   :  { %v2310_v4 = vpop.eup %2309  ;;  %v1667_v30 = vadd.f32 %v1666_v59, %v1665_v3  ;;  %v3017_v2 = vmul.f32 %v3006_v27, %v2887_v44 }
 0x782   :  { %v1681_v48 = vadd.f32 %v1679_v16, %v1507_v50  ;;  %v1625_v8 = vsel %vm278_vm4, %v1623_v17, 0.0  ;;  %v1257_v16 = vrot.slane %v3006_v27, 1  ;;  %v1304_v5 = vmul.f32 %v2946_v49, %v1272_v58 }
 0x783   :  { %v1626_v13 = vrot.slane %v1625_v8, 4  ;;  %v1668_v63 = vrot.slane %v1667_v30, 2  ;;  %v1352_v17 = vrot.slane %v2940_v18, 7  ;;  %v1480_v22 = vperm.slane %v3017_v2, 0 }
 0x784   :  { %v1699_v10 = vmul.f32 %v2304_v25, %v1681_v48  ;;  %v1273_v40 = vperm.slane %v1257_v16, 0  ;;  %v1328_v53 = vmul.f32 1.442695, %v1304_v5 }
 0x785   :  { %v1627_v38 = vadd.f32 %v1626_v13, %v1625_v8  ;;  %v1669_v42 = vadd.f32 %v1668_v63, %v1667_v30 }
 0x786   :  { %v1701_v26 = vadd.f32 %v1699_v10, %v1508_v61  ;;  %v2312_v6 = vpop.eup %2311  ;;  %2313 = vpow2.f32 %v1328_v53 }
 0x787   :  { %v1408_v57 = vpop.permute.xlu1 %1407  ;;  %v1543_v62 = vpop.permute.xlu0 %1542  ;;  %v1628_v50 = vrot.slane %v1627_v38, 2 }
 0x788   :  { %v1719_v35 = vmul.f32 %v2308_v45, %v1701_v26  ;;  %v1510_v14 = vmul.f32 %v1478_v7, %v1408_v57  ;;  %v1683_v15 = vmul.f32 %v1681_v48, %v1543_v62  ;;  %v1703_v52 = vmul.f32 %v1701_v26, %v1549_v9  ;;  %v1429_v19 = vpop.permute.xlu2 %1428 }
 0x789   :  { %v1629_v0 = vadd.f32 %v1628_v50, %v1627_v38  ;;  %v1258_v45 = vrot.slane %v3006_v27, 2  ;;  %v1305_v57 = vmul.f32 %v2946_v49, %v1273_v40  ;;  %v1670_v62 = vrot.slane %v1669_v42, 1 }
 0x78a   :  { %v2990_v21 = vadd.f32 %v1719_v35, %v2953_v29  ;;  %v1685_v29 = vsel %vm278_vm4, %v1683_v15, 0.0  ;;  %v1705_v43 = vsel %vm278_vm4, %v1703_v52, 0.0  ;;  %v1259_v38 = vrot.slane %v3006_v27, 3 }
 0x78b   :  { %v1686_v46 = vrot.slane %v1685_v29, 4  ;;  %v1706_v28 = vrot.slane %v1705_v43, 4  ;;  %v1630_v32 = vrot.slane %v1629_v0, 1  ;;  %v1274_v52 = vperm.slane %v1258_v45, 0 }
 0x78c   :  { %v1739_v12 = vmul.f32 %v2310_v4, %v2990_v21  ;;  %v1671_v8 = vadd.f32 %v1670_v62, %v1669_v42  ;;  %v2314_v3 = vpop.eup %2313  ;;  %v1353_v50 = vrot.slane %v3017_v2, 1  ;;  %v1275_v5 = vperm.slane %v1259_v38, 0 }
 0x78d   :  { %v1687_v31 = vadd.f32 %v1686_v46, %v1685_v29  ;;  %v1707_v41 = vadd.f32 %v1706_v28, %v1705_v43  ;;  %v1306_v58 = vmul.f32 %v2946_v49, %v1274_v52  ;;  %v1261_v42 = vrot.slane %v3006_v27, 5 }
 0x78e   :  { %v2995_v23 = vadd.f32 %v1739_v12, %v1510_v14  ;;  %v1631_v14 = vadd.f32 %v1630_v32, %v1629_v0  ;;  %v1330_v12 = vmul.f32 1.442695, %v1305_v57 }
 0x78f   :  { %v1688_v33 = vrot.slane %v1687_v31, 2  ;;  %v1708_v25 = vrot.slane %v1707_v41, 2  ;;  %v1561_v61 = vpop.permute.xlu0 %1560  ;;  %v1332_v63 = vmul.f32 1.442695, %v1306_v58 }
 0x790   :  { %v3000_v24 = vmul.f32 %v2312_v6, %v2995_v23  ;;  %v1436_v9 = vpop.permute.xlu2 %1435  ;;  %v1479_v6 = vperm.slane %v1352_v17, 0  ;;  %2315 = vpow2.f32 %v1330_v12  ;;  %v1355_v12 = vrot.slane %v3017_v2, 3 }
 0x791   :  { %v1689_v26 = vadd.f32 %v1688_v33, %v1687_v31  ;;  %v1709_v60 = vadd.f32 %v1708_v25, %v1707_v41  ;;  %v1620_v31 = vmul.f32 0.0, %v2314_v3  ;;  %v1481_v25 = vperm.slane %v1353_v50, 0 }
 0x792   :  { %2317 = vpow2.f32 %v1332_v63  ;;  %v1356_v50 = vrot.slane %v3017_v2, 4 }
 0x793   :  { %v1690_v7 = vrot.slane %v1689_v26, 1  ;;  %v1710_v47 = vrot.slane %v1709_v60, 1  ;;  %v1513_v40 = vmul.f32 %v1481_v25, %v1429_v19  ;;  %v1277_v19 = vperm.slane %v1261_v42, 0 }
 0x795   :  { %v1691_v29 = vadd.f32 %v1690_v7, %v1689_v26  ;;  %v1711_v59 = vadd.f32 %v1710_v47, %v1709_v60 }
 0x796   :  { %v2316_v33 = vpop.eup %2315 }
 0x797   :  { %v1531_v34 = vpop.permute.xlu1 %1530 }
 0x798   :  { %v1643_v1 = vmul.f32 %v2970_v55, %v1531_v34  ;;  %v2318_v45 = vpop.eup %2317 }
 0x79a   :  { %v1645_v51 = vsel %vm278_vm4, %v1643_v1, 0.0  ;;  %v1743_v1 = vmul.f32 %v2995_v23, %v1561_v61  ;;  %v1354_v61 = vrot.slane %v3017_v2, 2 }
 0x79b   :  { %v1646_v48 = vrot.slane %v1645_v51, 4 }
 0x79d   :  { %v1647_v10 = vadd.f32 %v1646_v48, %v1645_v51  ;;  %v1443_v51 = vpop.permute.xlu2 %1442  ;;  %v1745_v48 = vsel %vm278_vm4, %v1743_v1, 0.0 }
 0x79e   :  { %v1746_v23 = vrot.slane %v1745_v48, 4 }
 0x79f   :  { %v1648_v55 = vrot.slane %v1647_v10, 2  ;;  %v1422_v20 = vpop.permute.xlu0 %1421 }
 0x7a0   :  { %v1512_v46 = vmul.f32 %v1480_v22, %v1422_v20  ;;  %v1747_v60 = vadd.f32 %v1746_v23, %v1745_v48 }
 0x7a1   :  { %v1649_v35 = vadd.f32 %v1648_v55, %v1647_v10  ;;  %v1260_v10 = vrot.slane %v3006_v27, 4 }
 0x7a2   :  { %v3034_v16 = vadd.f32 %v1620_v31, %v1512_v46  ;;  %v1748_v47 = vrot.slane %v1747_v60, 2 }
 0x7a3   :  { %v1650_v4 = vrot.slane %v1649_v35, 1  ;;  %v1276_v55 = vperm.slane %v1260_v10, 0  ;;  %v1484_v10 = vperm.slane %v1356_v50, 0 }
 0x7a4   :  { %v1640_v0 = vmul.f32 %v2316_v33, %v3034_v16 }
 0x7a5   :  { %v1651_v15 = vadd.f32 %v1650_v4, %v1649_v35  ;;  %v1482_v35 = vperm.slane %v1354_v61, 0  ;;  %v3044_v57 = vpop.permute.xlu2 %1463  ;;  %v1308_v7 = vmul.f32 %v2946_v49, %v1276_v55  ;;  %v1262_v4 = vrot.slane %v3006_v27, 6 }
 0x7a6   :  { %v3041_v53 = vadd.f32 %v1640_v0, %v1513_v40  ;;  %v1357_v0 = vrot.slane %v3017_v2, 5 }
 0x7a7   :  { %v1779_v13 = vsel %vm867_vm12, %v1631_v14, %v1651_v15  ;;  %v1415_v43 = vpop.permute.xlu1 %1414  ;;  %v1514_v14 = vmul.f32 %v1482_v35, %v1436_v9  ;;  %v1278_v3 = vperm.slane %v1262_v4, 0 }
 0x7a8   :  { %v1781_v18 = vsel %vm870_vm13, %v1779_v13, %v1671_v8  ;;  %v1511_v28 = vmul.f32 %v1479_v6, %v1415_v43  ;;  %v1660_v17 = vmul.f32 %v2318_v45, %v3041_v53  ;;  %v1309_v8 = vmul.f32 %v2946_v49, %v1277_v19  ;;  %v1457_v13 = vpop.permute.xlu0 %1456 }
 0x7a9   :  { %v1783_v30 = vsel %vm873_vm14, %v1781_v18, %v1691_v29  ;;  %v1263_v6 = vrot.slane %v3006_v27, 7  ;;  %v1749_v29 = vadd.f32 %v1748_v47, %v1747_v60  ;;  %v1483_v18 = vperm.slane %v1355_v12, 0 }
 0x7aa   :  { %v3027_v34 = vadd.f32 %v3000_v24, %v1511_v28  ;;  %v3030_v41 = vsel %vm3174_vm9, %v1783_v30, %v1711_v59  ;;  %v1307_v24 = vmul.f32 %v2946_v49, %v1275_v5  ;;  %v1662_v52 = vadd.f32 %v1660_v17, %v1514_v14 }
 0x7ab   :  { %v1338_v28 = vmul.f32 1.442695, %v1309_v8  ;;  %v1279_v58 = vperm.slane %v1263_v6, 0  ;;  %v1310_v30 = vmul.f32 %v2946_v49, %v1278_v3  ;;  %v1750_v31 = vrot.slane %v1749_v29, 1 }
 0x7ac   :  { %v1334_v26 = vmul.f32 1.442695, %v1307_v24  ;;  %v1515_v1 = vmul.f32 %v1483_v18, %v1443_v51  ;;  %v1358_v60 = vrot.slane %v3017_v2, 6  ;;  %v1485_v45 = vperm.slane %v1357_v0, 0 }
 0x7ad   :  { %v1311_v33 = vmul.f32 %v2946_v49, %v1279_v58  ;;  %v1340_v48 = vmul.f32 1.442695, %v1310_v30  ;;  %v1751_v25 = vadd.f32 %v1750_v31, %v1749_v29  ;;  %v1359_v47 = vrot.slane %v3017_v2, 7 }
 0x7ae   :  { %2319 = vpow2.f32 %v1334_v26  ;;  %v1486_v19 = vperm.slane %v1358_v60, 0 }
 0x7af   :  { %v1342_v49 = vmul.f32 1.442695, %v1311_v33  ;;  %v1487_v3 = vperm.slane %v1359_v47, 0 }
 0x7b0   :  { %v1573_v46 = vpop.permute.xlu2 %1572  ;;  %v1518_v14 = vmul.f32 %v1486_v19, %v3044_v57 }
 0x7b1   :  { %v1624_v4 = vmul.f32 %v3034_v16, %v1573_v46 }
 0x7b3   :  { %v1632_v6 = vsel %vm278_vm4, %v1624_v4, 0.0 }
 0x7b4   :  { %v2320_v43 = vpop.eup %2319 }
 0x7b5   :  { %v1680_v9 = vmul.f32 %v2320_v43, %v1662_v52  ;;  %v1633_v43 = vrot.slane %v1632_v6, 4 }
 0x7b7   :  { %v1555_v32 = vpop.permute.xlu1 %1554  ;;  %v3056_v27 = vadd.f32 %v1680_v9, %v1515_v1  ;;  %v1585_v24 = vpop.permute.xlu0 %1584 }
 0x7b8   :  { %v1723_v62 = vmul.f32 %v2990_v21, %v1555_v32  ;;  %v1336_v21 = vmul.f32 1.442695, %v1308_v7  ;;  %v1664_v8 = vmul.f32 %v1662_v52, %v1585_v24 }
 0x7ba   :  { %v1725_v15 = vsel %vm278_vm4, %v1723_v62, 0.0  ;;  %2321 = vpow2.f32 %v1336_v21  ;;  %v1517_v62 = vmul.f32 %v1485_v45, %v1457_v13 }
 0x7bb   :  { %v1726_v20 = vrot.slane %v1725_v15, 4  ;;  %2323 = vpow2.f32 %v1338_v28 }
 0x7bc   :  { %2325 = vpow2.f32 %v1340_v48 }
 0x7bd   :  { %v1727_v22 = vadd.f32 %v1726_v20, %v1725_v15  ;;  %2327 = vpow2.f32 %v1342_v49 }
 0x7bf   :  { %v1728_v59 = vrot.slane %v1727_v22, 2  ;;  %v1597_v15 = vpop.permute.xlu0 %1596 }
 0x7c0   :  { %v2322_v40 = vpop.eup %2321  ;;  %v1471_v61 = vpop.permute.xlu2 %1470 }
 0x7c1   :  { %v1729_v38 = vadd.f32 %v1728_v59, %v1727_v22  ;;  %v1700_v26 = vmul.f32 %v2322_v40, %v3056_v27  ;;  %v2324_v35 = vpop.eup %2323  ;;  %v1519_v13 = vmul.f32 %v1487_v3, %v1471_v61  ;;  %v1672_v59 = vsel %vm278_vm4, %v1664_v8, 0.0 }
 0x7c2   :  { %v1673_v9 = vrot.slane %v1672_v59, 4 }
 0x7c3   :  { %v1730_v5 = vrot.slane %v1729_v38, 1 }
 0x7c4   :  { %v1674_v33 = vadd.f32 %v1673_v9, %v1672_v59 }
 0x7c5   :  { %v1731_v63 = vadd.f32 %v1730_v5, %v1729_v38  ;;  %v1634_v38 = vadd.f32 %v1633_v43, %v1632_v6 }
 0x7c7   :  { %v1450_v23 = vpop.permute.xlu1 %1449  ;;  %v1787_v51 = vsel %vm3175_vm10, %v3030_v41, %v1731_v63  ;;  %v2326_v41 = vpop.eup %2325  ;;  %v1635_v0 = vrot.slane %v1634_v38, 2 }
 0x7c8   :  { %v1516_v42 = vmul.f32 %v1484_v10, %v1450_v23  ;;  %v3064_v55 = vsel %vm3176_vm7, %v1787_v51, %v1751_v25  ;;  %v2328_v21 = vpop.eup %2327  ;;  %v1615_v30 = vpop.permute.xlu0 %1614 }
 0x7c9   :  { %v1636_v60 = vadd.f32 %v1635_v0, %v1634_v38 }
 0x7ca   :  { %v1702_v32 = vadd.f32 %v1700_v26, %v1516_v42  ;;  %v1675_v42 = vrot.slane %v1674_v33, 2 }
 0x7cc   :  { %v1720_v17 = vmul.f32 %v2324_v35, %v1702_v32  ;;  %v1704_v18 = vmul.f32 %v1702_v32, %v1597_v15  ;;  %v1676_v4 = vadd.f32 %v1675_v42, %v1674_v33  ;;  %v2116_v42 = vmul.f32 -1.442695, %v2853_v37 }
 0x7ce   :  { %v1722_v7 = vadd.f32 %v1720_v17, %v1517_v62  ;;  %v1712_v58 = vsel %vm278_vm4, %v1704_v18, 0.0  ;;  %v2209_v17 = vld [vmem:[%s3155_s9 + $0x1] ss:$0 sm:$0xff]  ;;  %v1677_v43 = vrot.slane %v1676_v4, 1  ;;  %2329 = vpow2.f32 %v2116_v42 }
 0x7cf   :  { %v1713_v48 = vrot.slane %v1712_v58, 4 }
 0x7d0   :  { %v1740_v20 = vmul.f32 %v2326_v41, %v1722_v7  ;;  %v1603_v12 = vpop.permute.xlu2 %1602  ;;  %v1678_v38 = vadd.f32 %v1677_v43, %v1676_v4 }
 0x7d1   :  { %v1724_v28 = vmul.f32 %v1722_v7, %v1603_v12  ;;  %v1714_v26 = vadd.f32 %v1713_v48, %v1712_v58 }
 0x7d2   :  { %v1742_v22 = vadd.f32 %v1740_v20, %v1518_v14 }
 0x7d3   :  { %v1715_v47 = vrot.slane %v1714_v26, 2 }
 0x7d4   :  { %v1760_v29 = vmul.f32 %v2328_v21, %v1742_v22  ;;  %v1617_v21 = vmul.f32 %v2209_v17, %v2884_v36 }
 0x7d5   :  { %v1716_v59 = vadd.f32 %v1715_v47, %v1714_v26  ;;  %v2117_v26 = vmul.f32 -1.442695, %v2868_v54  ;;  %v2160_v54 = vld [vmem:[%s3156_s10 + $0x28] sm:$0xff] }
 0x7d6   :  { %v1762_v16 = vadd.f32 %v1760_v29, %v1519_v13 }
 0x7d7   :  { %v1579_v46 = vpop.permute.xlu1 %1578  ;;  %2331 = vpow2.f32 %v2117_v26 }
 0x7d8   :  { %v1644_v2 = vmul.f32 %v3041_v53, %v1579_v46  ;;  %v1567_v57 = vpop.permute.xlu2 %1566  ;;  %v1764_v1 = vmul.f32 %v1762_v16, %v1615_v30  ;;  %v1732_v53 = vsel %vm278_vm4, %v1724_v28, 0.0 }
 0x7d9   :  { %v1763_v52 = vmul.f32 %v3027_v34, %v1567_v57  ;;  %v1733_v23 = vrot.slane %v1732_v53, 4 }
 0x7da   :  { %v1652_v31 = vsel %vm278_vm4, %v1644_v2, 0.0  ;;  %v1772_v34 = vsel %vm278_vm4, %v1764_v1, 0.0 }
 0x7db   :  { %v1653_v50 = vrot.slane %v1652_v31, 4  ;;  %v1765_v5 = vsel %vm278_vm4, %v1763_v52, 0.0  ;;  %v1773_v45 = vrot.slane %v1772_v34, 4  ;;  %v1734_v19 = vadd.f32 %v1733_v23, %v1732_v53 }
 0x7dc   :  { %v1766_v63 = vrot.slane %v1765_v5, 4 }
 0x7dd   :  { %v1654_v25 = vadd.f32 %v1653_v50, %v1652_v31  ;;  %v1774_v15 = vadd.f32 %v1773_v45, %v1772_v34  ;;  %v1735_v6 = vrot.slane %v1734_v19, 2 }
 0x7de   :  { %v1767_v24 = vadd.f32 %v1766_v63, %v1765_v5 }
 0x7df   :  { %v1655_v10 = vrot.slane %v1654_v25, 2  ;;  %v1591_v40 = vpop.permute.xlu1 %1590  ;;  %v1775_v2 = vrot.slane %v1774_v15, 2  ;;  %v1736_v52 = vadd.f32 %v1735_v6, %v1734_v19 }
 0x7e0   :  { %v1768_v51 = vrot.slane %v1767_v24, 2  ;;  %v1684_v61 = vmul.f32 %v3056_v27, %v1591_v40  ;;  %v1637_v27 = vrot.slane %v1636_v60, 1  ;;  %v1618_v40 = vmul.f32 %v2209_v17, %v2887_v44  ;;  %v2162_v44 = vld [vmem:[%s3156_s10 + $0x38] sm:$0xff] }
 0x7e1   :  { %v1656_v49 = vadd.f32 %v1655_v10, %v1654_v25  ;;  %v1737_v50 = vrot.slane %v1736_v52, 1  ;;  %1889 = vmatpush.bf16.msrb.mxu3 %v2162_v44  ;;  %v2211_v44 = vld [vmem:[%s3158_s12] ss:$0 sm:$0xff] }
 0x7e2   :  { %v1769_v32 = vadd.f32 %v1768_v51, %v1767_v24  ;;  %v1692_v35 = vsel %vm278_vm4, %v1684_v61, 0.0  ;;  %v1638_v46 = vadd.f32 %v1637_v27, %v1636_v60 }
 0x7e3   :  { %v1693_v62 = vrot.slane %v1692_v35, 4  ;;  %v1657_v7 = vrot.slane %v1656_v49, 1  ;;  %v1738_v0 = vadd.f32 %v1737_v50, %v1736_v52 }
 0x7e4   :  { %v1770_v41 = vrot.slane %v1769_v32, 1 }
 0x7e5   :  { %v1694_v14 = vadd.f32 %v1693_v62, %v1692_v35  ;;  %v1658_v3 = vadd.f32 %v1657_v7, %v1656_v49  ;;  %v2330_v49 = vpop.eup %2329  ;;  %v2161_v35 = vld [vmem:[%s3156_s10 + $0x30] sm:$0xff]  ;;  %v2159_v7 = vld [vmem:[%s3156_s10 + $0x20] sm:$0xff] }
 0x7e6   :  { %v1771_v20 = vadd.f32 %v1770_v41, %v1769_v32  ;;  %v2332_v60 = vpop.eup %2331  ;;  %v1801_v45 = vadd.f32 1.0, %v2330_v49  ;;  %1890 = vmatpush.bf16.msrb.mxu3 %v2161_v35 }
 0x7e7   :  { %v1695_v12 = vrot.slane %v1694_v14, 2  ;;  %v1609_v8 = vpop.permute.xlu1 %1608  ;;  %v1780_v36 = vsel %vm867_vm12, %v1638_v46, %v1658_v3  ;;  %vm3179_vm12 = vmmov %vm3175_vm10  ;;  %v1802_v32 = vadd.f32 1.0, %v2332_v60 }
 0x7e8   :  { %v1744_v29 = vmul.f32 %v1742_v22, %v1609_v8  ;;  %v1791_v13 = vsel %vm3177_vm11, %v3064_v55, %v1771_v20  ;;  %v1717_v22 = vrot.slane %v1716_v59, 1  ;;  %v1776_v55 = vadd.f32 %v1775_v2, %v1774_v15 }
 0x7e9   :  { %v1696_v18 = vadd.f32 %v1695_v12, %v1694_v14  ;;  %v1793_v16 = vadd.f32 %v1791_v13, %v1617_v21  ;;  %v1782_v31 = vsel %vm870_vm13, %v1780_v36, %v1678_v38  ;;  %vm3181_vm13 = vmmov %vm3177_vm11  ;;  %2333 = vrcp.f32 %v1801_v45 }
 0x7ea   :  { %v1752_v57 = vsel %vm278_vm4, %v1744_v29, 0.0  ;;  %v1718_v63 = vadd.f32 %v1717_v22, %v1716_v59  ;;  %v1777_v48 = vrot.slane %v1776_v55, 1  ;;  %2335 = vrcp.f32 %v1802_v32  ;;  %1891 = vmatpush.bf16.msrb.mxu3 %v2160_v54 }
 0x7eb   :  { %v1697_v9 = vrot.slane %v1696_v18, 1  ;;  %v1753_v28 = vrot.slane %v1752_v57, 4  ;;  %1835 = vrot.lane.b32.xlu1 %v1793_v16, %s2373_s0  ;;  %v1829_v20 = vand.u32 2147483648, %v1802_v32  ;;  %vm1808_vm3 = vweird.f32 %v1801_v45 }
 0x7ec   :  { %v1778_v34 = vadd.f32 %v1777_v48, %v1776_v55  ;;  %v1814_v12 = vand.u32 2147483648, %v1801_v45  ;;  %vm1823_vm5 = vweird.f32 %v1802_v32  ;;  %v1827_v8 = vand.u32 2147483647, %v1802_v32 }
 0x7ed   :  { %v1698_v58 = vadd.f32 %v1697_v9, %v1696_v18  ;;  %v1754_v30 = vadd.f32 %v1753_v28, %v1752_v57  ;;  %v1812_v21 = vand.u32 2147483647, %v1801_v45  ;;  %v1830_v29 = vor.u32 1.1754944e-38, %v1829_v20  ;;  %v2210_v28 = vld [vmem:[%s3157_s11 + $0x1] ss:$0 sm:$0xff] }
 0x7ee   :  { %1892 = vmatpush.bf16.msrb.mxu3 %v2159_v7  ;;  %v1815_v43 = vor.u32 1.1754944e-38, %v1814_v12  ;;  %vm1828_vm9 = vcmp.eq.f32.partialorder %v1827_v8, 8.507059e+37 }
 0x7ef   :  { %v1755_v1 = vrot.slane %v1754_v30, 2  ;;  %v1784_v5 = vsel %vm873_vm14, %v1782_v31, %v1698_v58  ;;  %v2334_v37 = vpop.eup %2333  ;;  %vm1813_vm10 = vcmp.eq.f32.partialorder %v1812_v21, 8.507059e+37 }
 0x7f0   :  { %v1786_v25 = vsel %vm3178_vm15, %v1784_v5, %v1718_v63  ;;  %v2336_v62 = vpop.eup %2335  ;;  %v1804_v19 = vmul.f32 %v2334_v37, %v1801_v45  ;;  %vm1809_vm14 = vweird.f32 %v2334_v37 }
 0x7f1   :  { %v1756_v33 = vadd.f32 %v1755_v1, %v1754_v30  ;;  %v1788_v10 = vsel %vm3179_vm12, %v1786_v25, %v1738_v0  ;;  %v1819_v17 = vmul.f32 %v2336_v62, %v1802_v32  ;;  %vm1824_vm2 = vweird.f32 %v2336_v62  ;;  %vm1810_vm6 = vmor %vm1808_vm3, %vm1809_vm14 }
 0x7f2   :  { %v1805_v4 = vsub.f32 1.0, %v1804_v19  ;;  %vm1825_vm8 = vmor %vm1823_vm5, %vm1824_vm2  ;;  %vm1994_vm14 = vcmask 254976   ;;  %vm2003_vm2 = vcmask 1024  }
 0x7f3   :  { %v1757_v53 = vrot.slane %v1756_v33, 1  ;;  %v1820_v41 = vsub.f32 1.0, %v1819_v17 }
 0x7f4   :  { %v1806_v14 = vmul.f32 %v2334_v37, %v1805_v4 }
 0x7f5   :  { %v1758_v24 = vadd.f32 %v1757_v53, %v1756_v33  ;;  %v1821_v47 = vmul.f32 %v2336_v62, %v1820_v41 }
 0x7f6   :  { %v1807_v15 = vadd.f32 %v2334_v37, %v1806_v14 }
 0x7f7   :  { %v1790_v23 = vsel %vm3180_vm1, %v1788_v10, %v1758_v24  ;;  %v1822_v27 = vadd.f32 %v2336_v62, %v1821_v47 }
 0x7f8   :  { %v1792_v51 = vsel %vm3181_vm13, %v1790_v23, %v1778_v34  ;;  %v1811_v3 = vsel %vm1810_vm6, %v2334_v37, %v1807_v15 }
 0x7f9   :  { %v1794_v61 = vadd.f32 %v1792_v51, %v1618_v40  ;;  %v1826_v6 = vsel %vm1825_vm8, %v2336_v62, %v1822_v27  ;;  %v1816_v18 = vsel %vm1813_vm10, %v1815_v43, %v1811_v3  ;;  %v2212_v62 = vld [vmem:[%s3159_s13] ss:$0 sm:$0xff] }
 0x7fa   :  { %v1831_v59 = vsel %vm1828_vm9, %v1830_v29, %v1826_v6 }
 0x7fb   :  { %1837 = vrot.lane.b32.xlu2 %v1794_v61, %s2373_s0 }
 0x855   :  { %v1838_v13 = vpop.permute.xlu2 %1837 }
 0x856   :  { %v1842_v46 = vmul.f32 %v1838_v13, %v1831_v59 }
 0x85d   :  { %v1836_v16 = vpop.permute.xlu1 %1835 }
 0x85e   :  { %v1841_v2 = vmul.f32 %v1836_v16, %v1816_v18 }
 0x860   :  { %v1843_v57 = vpack.c.bf16 %v1842_v46, %v1841_v2 }
 0x862   :  { %1856 = vrot.lane.b32.xlu0 %v1843_v57, %s2373_s0 }
 0x8d4   :  { %v1857_v9 = vpop.permute.xlu0 %1856 }
 0x8d5   :  { %2142 = vmatmul.msk.bf16.vlgmr.msrb.gmra.mxu3 %vm278_vm4, %v1857_v9 }
 0x958   :  { %v1894_v52 = vpop.f32.mrf.mxu3 }
 0x959   :  { %v1895_v36 = vadd.f32 %v2210_v28, %v1894_v52 }
 0x95b   :  { %v1899_v38 = vadd.f32 %v1895_v36, %v2812_v56 }
 0x95d   :  { %v1901_v22 = vsel %vm65_vm0, %v1899_v38, 0.0 }
 0x95e   :  { %1902 = vadd.xlane.f32.xlu2 %v1901_v22 }
 0x960   :  { %v1896_v58 = vpop.f32.mrf.mxu3 }
 0x961   :  { %v1897_v30 = vadd.f32 %v2210_v28, %v1896_v58 }
 0x963   :  { %v1900_v55 = vadd.f32 %v1897_v30, %v2819_v39  ;;  %v2213_v30 = vld [vmem:[%s3160_s14] ss:$0 sm:$0xff] }
 0x965   :  { %v1904_v31 = vsel %vm65_vm0, %v1900_v55, 0.0 }
 0x966   :  { %1905 = vadd.xlane.f32.xlu1 %v1904_v31 }
 0x9d1   :  { %v1903_v1 = vpop.xlane.xlu2 %1902 }
 0x9d2   :  { %v1907_v50 = vmul.f32 %v1903_v1, %v2479_v11 }
 0x9d4   :  { %v1909_v5 = vsub.f32 %v1899_v38, %v1907_v50 }
 0x9d6   :  { %v1911_v63 = vmul.f32 %v1909_v5, %v1909_v5 }
 0x9d8   :  { %v1913_v33 = vsel %vm65_vm0, %v1911_v63, 0.0  ;;  %v2214_v63 = vld [vmem:[#allocation2] ss:$0 sm:$0xff] }
 0x9d9   :  { %v1906_v48 = vpop.xlane.xlu1 %1905  ;;  %1914 = vadd.xlane.f32.xlu1 %v1913_v33 }
 0x9da   :  { %v1908_v56 = vmul.f32 %v1906_v48, %v2479_v11 }
 0x9dc   :  { %v1910_v53 = vsub.f32 %v1900_v55, %v1908_v56 }
 0x9de   :  { %v1912_v25 = vmul.f32 %v1910_v53, %v1910_v53 }
 0x9e0   :  { %v1916_v0 = vsel %vm65_vm0, %v1912_v25, 0.0 }
 0x9e1   :  { %1917 = vadd.xlane.f32.xlu0 %v1916_v0 }
 0xa4c   :  { %v1915_v39 = vpop.xlane.xlu1 %1914 }
 0xa4d   :  { %v1919_v24 = vmul.f32 %v1915_v39, %v2479_v11 }
 0xa4f   :  { %v1921_v34 = vadd.f32 1e-05, %v1919_v24 }
 0xa51   :  { %2337 = vrsqrt.f32 %v1921_v34  ;;  %vm1929_vm7 = vweird.f32 %v1921_v34 }
 0xa54   :  { %v1918_v10 = vpop.xlane.xlu0 %1917 }
 0xa55   :  { %v1920_v40 = vmul.f32 %v1918_v10, %v2479_v11  ;;  %v2374_v11 = vmov 8.0  }
 0xa57   :  { %v2338_v23 = vpop.eup %2337  ;;  %v1922_v51 = vadd.f32 1e-05, %v1920_v40 }
 0xa58   :  { %v1924_v61 = vmul.f32 %v2338_v23, %v1921_v34  ;;  %vm1930_vm4 = vweird.f32 %v2338_v23 }
 0xa59   :  { %2339 = vrsqrt.f32 %v1922_v51  ;;  %vm1931_vm11 = vmor %vm1929_vm7, %vm1930_vm4  ;;  %vm1939_vm12 = vweird.f32 %v1922_v51 }
 0xa5a   :  { %v1925_v42 = vmul.f32 %v2338_v23, %v1924_v61  ;;  %2341 = vrcp.f32 %v2374_v11 }
 0xa5c   :  { %v1926_v26 = vmul.f32 0.5, %v1925_v42 }
 0xa5e   :  { %v1927_v49 = vsub.f32 1.5, %v1926_v26 }
 0xa5f   :  { %v2340_v60 = vpop.eup %2339 }
 0xa60   :  { %v1928_v45 = vmul.f32 %v2338_v23, %v1927_v49  ;;  %v1934_v32 = vmul.f32 %v2340_v60, %v1922_v51  ;;  %vm1940_vm15 = vweird.f32 %v2340_v60  ;;  %v2342_v4 = vpop.eup %2341 }
 0xa61   :  { %vm1941_vm1 = vmor %vm1939_vm12, %vm1940_vm15  ;;  %v1974_v12 = vmul.f32 8.0, %v2342_v4  ;;  %vm1978_vm13 = vweird.f32 %v2342_v4 }
 0xa62   :  { %v1932_v35 = vsel %vm1931_vm11, %v2338_v23, %v1928_v45  ;;  %v1935_v37 = vmul.f32 %v2340_v60, %v1934_v32 }
 0xa63   :  { %v1943_v54 = vmul.f32 %v1932_v35, %v1909_v5  ;;  %v1975_v29 = vsub.f32 1.0, %v1974_v12 }
 0xa64   :  { %v1936_v17 = vmul.f32 0.5, %v1935_v37 }
 0xa65   :  { %v1949_v19 = vmul.f32 %v2211_v44, %v1943_v54  ;;  %v1976_v18 = vmul.f32 %v2342_v4, %v1975_v29 }
 0xa66   :  { %v1937_v7 = vsub.f32 1.5, %v1936_v17 }
 0xa67   :  { %v1955_v41 = vadd.f32 %v2212_v62, %v1949_v19  ;;  %v1977_v57 = vadd.f32 %v2342_v4, %v1976_v18 }
 0xa68   :  { %v1938_v47 = vmul.f32 %v2340_v60, %v1937_v7 }
 0xa69   :  { %1957 = vst.msk [vmem:[#allocation3] sm:$0xff] %vm65_vm0, %v1955_v41  ;;  %v1959_v14 = vsel %vm65_vm0, %v1955_v41, 0.0  ;;  %v1979_v36 = vsel %vm1978_vm13, %v2342_v4, %v1977_v57 }
 0xa6a   :  { %v1942_v27 = vsel %vm1941_vm1, %v2340_v60, %v1938_v47  ;;  %v1960_v15 = vrot.slane %v1959_v14, 4 }
 0xa6b   :  { %v1944_v20 = vmul.f32 %v1942_v27, %v1910_v53 }
 0xa6c   :  { %v1961_v8 = vadd.f32 %v1960_v15, %v1959_v14 }
 0xa6d   :  { %v1950_v21 = vmul.f32 %v2211_v44, %v1944_v20 }
 0xa6e   :  { %v1962_v6 = vrot.slane %v1961_v8, 2 }
 0xa6f   :  { %v1956_v3 = vadd.f32 %v2212_v62, %v1950_v21 }
 0xa70   :  { %v1963_v43 = vadd.f32 %v1962_v6, %v1961_v8 }
 0xa71   :  { %1958 = vst.msk [vmem:[#allocation3 + $0x8] sm:$0xff] %vm65_vm0, %v1956_v3  ;;  %v1966_v13 = vsel %vm65_vm0, %v1956_v3, 0.0  ;;  %vm1991_vm0 = vcmask 1041409  }
 0xa72   :  { %v1967_v59 = vrot.slane %v1966_v13, 4  ;;  %v1964_v46 = vrot.slane %v1963_v43, 1  ;;  %2017 = dma.vmem_to_hbm [thread:$0]  %s2010_s27, 256, %s2012_s25, [#allocation4], %s2376_s4, %s2376_s4, %s2377_s5  }
 0xa74   :  { %v1968_v16 = vadd.f32 %v1967_v59, %v1966_v13  ;;  %v1965_v28 = vadd.f32 %v1964_v46, %v1963_v43 }
 0xa76   :  { %v1969_v2 = vrot.slane %v1968_v16, 2  ;;  %v1980_v22 = vmul.f32 %v1979_v36, %v1965_v28 }
 0xa78   :  { %v1970_v9 = vadd.f32 %v1969_v2, %v1968_v16  ;;  %v1986_v31 = vmul.f32 %v2213_v30, %v1980_v22 }
 0xa7a   :  { %v1971_v52 = vrot.slane %v1970_v9, 1 }
 0xa7c   :  { %v1972_v38 = vadd.f32 %v1971_v52, %v1970_v9 }
 0xa7e   :  { %v1981_v58 = vmul.f32 %v1979_v36, %v1972_v38 }
 0xa80   :  { %v1987_v55 = vmul.f32 %v2213_v30, %v1981_v58 }
 0xa82   :  { %v1990_v1 = vrot.slane %v1987_v55, 7 }
 0xa84   :  { %v1992_v50 = vsel %vm1991_vm0, %v1990_v1, %v1986_v31 }
 0xa85   :  { %v1995_v5 = vsel %vm1994_vm14, %v1992_v50, 0.0 }
 0xa86   :  { %1996 = vadd.xlane.f32.xlu2 %v1995_v5 }
 0xaf9   :  { %v1997_v33 = vpop.xlane.xlu2 %1996 }
 0xafa   :  { %v2002_v48 = vadd.f32 %v2214_v63, %v1997_v33 }
 0xafc   :  { %2004 = vst.msk [vmem:[%s3163_s17] sm:$0x3] %vm2003_vm2, %v2002_v48 }
 0xafd   :  { %2369 = dma.done.wait [#allocation4], 256  }
 0xafe   :  { %2370 = vsyncadd [#allocation4], 4294967040 }
 0xaff   :  { %2026 = vsyncpa [#allocation4], 1 }

</bundles_post_ra>
